<compile_context>
chip_gen: v5e
topology: v5e:2x2
jax: 0.10.0
libtpu: 0.0.40
codegen_flags: <defaults>
</compile_context>

<pallas_src>
import math

import jax
import jax.numpy as jnp
from jax.experimental import pallas as pl
from jax.experimental.pallas import tpu as pltpu


def dgc_kernel(x_ref, adj_ref, adjt_ref, bd_ref, out_ref):
    # Batch-on-lanes blocks:
    #   x_ref    : (N*F_in, BB)         x_l[n*F_in + i, b]   = x[b, n, i]
    #   adj_ref  : (N, N, BB)           adj_l[i, j, b]       = adj[b, i, j]
    #   adjt_ref : (N, N, BB)           adj_t[j, i, b]       = adj[b, i, j]
    #   bd_ref   : (N*2F_out, N*F_in)   blockdiag_N([W1|W2]^T)
    #   out_ref  : (N, F_out, BB)       out_l[i, f, b]       = out[b, i, f]
    N = adj_ref.shape[0]
    bb = adj_ref.shape[2]
    F2 = bd_ref.shape[0] // N          # 2 * F_out
    F_out = F2 // 2

    adj = adj_ref[...]                 # (N, N, bb)
    adj_t = adjt_ref[...]              # (N, N, bb)

    # ---- Feature matmul for BOTH branches: one full-depth MXU matmul -------
    # h[(n, o), b] = sum_i W_cat[i, o] * x[b, n, i]
    h = jnp.dot(bd_ref[...], x_ref[...],
                preferred_element_type=jnp.float32)            # (N*F2, bb)
    h = h.reshape(N, F2, bb)           # [n, o, b]; lane dim untouched -> free
    # o < F_out -> W1 branch; o >= F_out -> W2 branch (sublane-aligned split).

    # ---- Normalization: leading-axis reductions + exact reciprocals --------
    # rowsum[i, b] = sum_j adj[b, i, j];  colsum[j, b] = sum_i adj[b, i, j]
    r_row = pl.reciprocal(jnp.sum(adj_t, axis=0), approx=False)   # (N, bb)
    r_col = pl.reciprocal(jnp.sum(adj, axis=0), approx=False)     # (N, bb)

    # ---- adj contractions on the VPU: unrolled N-term broadcast MACs -------
    #   o1[i, f, b] = sum_j adj[b, i, j] * h1[j, f, b]   (uses adj_t[j] slabs)
    #   o2[j, f, b] = sum_i adj[b, i, j] * h2[i, f, b]   (uses adj_l[i] slabs)
    # Lane dim is the batch, so every multiply/add is lane-dense; no tiny
    # batched MXU matmuls and no cross-lane extracts.  Static unroll (N small).
    o1 = jnp.zeros((N, F_out, bb), jnp.float32)
    o2 = jnp.zeros((N, F_out, bb), jnp.float32)
    for k in range(N):
        h1_k = h[k, :F_out, :]                               # (F_out, bb)
        h2_k = h[k, F_out:, :]                               # (F_out, bb)
        o1 = o1 + adj_t[k][:, None, :] * h1_k[None, :, :]    # (N, F_out, bb)
        o2 = o2 + adj[k][:, None, :] * h2_k[None, :, :]

    o1 = jnp.maximum(o1 * r_row[:, None, :], 0.0)
    o2 = jnp.maximum(o2 * r_col[:, None, :], 0.0)

    # (out1 + out2) / 2 ; dropout(p=0.1) is identity in eval mode.
    out_ref[...] = ((o1 + o2) * 0.5).astype(out_ref.dtype)


def _pick_graph_block(B, requested):
    """Graphs per grid step.

    Lane-aligned (multiple of 128) whenever we actually block the batch, and
    capped near B//2 so that v7x's two TensorCores both receive grid steps.
    """
    if B <= requested:
        return B                      # single block == full batch dim (valid)
    bb = min(requested, max(B // 2, 1))
    bb = max(128, (bb // 128) * 128)  # keep last block dim 128-aligned
    return min(bb, B)


def directed_graph_convolution(inputs, adj, w1, w2, *, graphs_per_block=512):
    """inputs: (B, N, F_in), adj: (B, N, N), w1/w2: (F_in, F_out) -> (B, N, F_out).

    Eval-mode forward of DirectedGraphConvolution.  Zero row/column sums in
    adj produce Inf/NaN exactly as the PyTorch reference does.
    """
    B, N, F_in = inputs.shape
    F_out = w1.shape[1]
    F2 = 2 * F_out

    # ---- batch-on-lanes relayout (XLA side) --------------------------------
    x_l = jnp.transpose(inputs, (1, 2, 0)).reshape(N * F_in, B)   # [(n,i), b]
    adj_l = jnp.transpose(adj, (1, 2, 0))                         # [i, j, b]
    adj_t = jnp.transpose(adj, (2, 1, 0))                         # [j, i, b]

    # Block-diagonal weights: bd[(n,o), (m,i)] = delta_{nm} * [W1|W2][i, o].
    w_cat = jnp.concatenate([w1, w2], axis=1)                     # (F_in, 2F)
    bd = jnp.kron(jnp.eye(N, dtype=w_cat.dtype), w_cat.T)         # (N*2F, N*F_in)

    bb = _pick_graph_block(B, graphs_per_block)
    grid = (pl.cdiv(B, bb),)

    flops = 2 * B * N * F_in * F2 + 2 * (2 * B * N * N * F_out)
    bytes_accessed = 4 * (B * N * F_in + 2 * B * N * N + B * N * F_out
                          + (N * F2) * (N * F_in))

    out_l = pl.pallas_call(
        dgc_kernel,
        out_shape=jax.ShapeDtypeStruct((N, F_out, B), inputs.dtype),
        grid=grid,
        in_specs=[
            pl.BlockSpec((N * F_in, bb), lambda g: (0, g)),        # x (lanes=batch)
            pl.BlockSpec((N, N, bb), lambda g: (0, 0, g)),         # adj  [i,j,b]
            pl.BlockSpec((N, N, bb), lambda g: (0, 0, g)),         # adjT [j,i,b]
            pl.BlockSpec((N * F2, N * F_in), lambda g: (0, 0)),    # blockdiag W
        ],
        out_specs=pl.BlockSpec((N, F_out, bb), lambda g: (0, 0, g)),
        compiler_params=pltpu.CompilerParams(
            dimension_semantics=("parallel",),
            vmem_limit_bytes=32 * 1024 * 1024,
        ),
        cost_estimate=pl.CostEstimate(
            flops=flops, transcendentals=0, bytes_accessed=bytes_accessed),
    )(x_l, adj_l, adj_t, bd)

    # Back to the reference layout (B, N, F_out).
    return jnp.transpose(out_l, (2, 0, 1))


def _xavier_uniform(key, fan_in, fan_out, dtype=jnp.float32):
    bound = math.sqrt(6.0 / (fan_in + fan_out))
    return jax.random.uniform(key, (fan_in, fan_out), dtype=dtype,
                              minval=-bound, maxval=bound)


def _reference(inputs, adj, w1, w2):
    rowsum = jnp.sum(adj, axis=2, keepdims=True)
    norm_adj = adj / rowsum
    out1 = jax.nn.relu(jnp.matmul(norm_adj, jnp.matmul(inputs, w1)))
    adj_t = jnp.transpose(adj, (0, 2, 1))
    inv_norm_adj = adj_t / jnp.sum(adj_t, axis=2, keepdims=True)
    out2 = jax.nn.relu(jnp.matmul(inv_norm_adj, jnp.matmul(inputs, w2)))
    return (out1 + out2) / 2.0


if __name__ == "__main__":
    key = jax.random.PRNGKey(0)
    k_x, k_adj, k_w1, k_w2 = jax.random.split(key, 4)

    B, N = 2, 8           # batch, number of graph nodes
    F_in, F_out = 32, 32  # in_features, out_features

    inputs = jax.random.normal(k_x, (B, N, F_in), dtype=jnp.float32)
    # Positive adjacency so row/column sums are nonzero (matches typical digcn
    # usage where adj rows include self-loops / nonzero entries).
    adj = jax.random.uniform(k_adj, (B, N, N), dtype=jnp.float32,
                             minval=0.1, maxval=1.0)

    w1 = _xavier_uniform(k_w1, F_in, F_out)
    w2 = _xavier_uniform(k_w2, F_in, F_out)

    out = directed_graph_convolution(inputs, adj, w1, w2)
    out = jax.block_until_ready(out)

    ref = _reference(inputs, adj, w1, w2)
    assert out.shape == (B, N, F_out)
    # Reciprocal-multiply vs. true divide, exact-f32 VPU contraction vs. the
    # reference's MXU contraction, and reordering give small differences;
    # 1e-4 is comfortably tight for these magnitudes.
    assert jnp.allclose(out, ref, atol=1e-4, rtol=1e-4), "mismatch vs reference"

    print("KERNEL_OK")
</pallas_src>

<mosaic_0001>
module attributes {stable_mosaic.version = 11 : i64} {
  func.func @dgc_kernel(%arg0: i32, %arg1: memref<256x2xf32, #tpu.memory_space<vmem>>, %arg2: memref<8x8x2xf32, #tpu.memory_space<vmem>>, %arg3: memref<8x8x2xf32, #tpu.memory_space<vmem>>, %arg4: memref<512x256xf32, #tpu.memory_space<vmem>>, %arg5: memref<8x32x2xf32, #tpu.memory_space<vmem>>) attributes {dimension_semantics = [#tpu.dimension_semantics<parallel>], iteration_bounds = array<i64: 1>, scalar_prefetch = 0 : i64, scratch_operands = 0 : i64, tpu.core_type = #tpu.core_type<tc>, window_params = [{transform_indices = @transform_0, window_bounds = array<i64: 256, 2>}, {transform_indices = @transform_1, window_bounds = array<i64: 8, 8, 2>}, {transform_indices = @transform_2, window_bounds = array<i64: 8, 8, 2>}, {pipeline_mode = #tpu.pipeline_mode<synchronous>, transform_indices = @transform_3, window_bounds = array<i64: 512, 256>}, {transform_indices = @transform_4, window_bounds = array<i64: 8, 32, 2>}]} {
    %c0 = arith.constant 0 : index
    %c0_0 = arith.constant 0 : index
    %c0_1 = arith.constant 0 : index
    %0 = vector.load %arg2[%c0, %c0_0, %c0_1] : memref<8x8x2xf32, #tpu.memory_space<vmem>>, vector<8x8x2xf32>
    %c0_2 = arith.constant 0 : index
    %c0_3 = arith.constant 0 : index
    %c0_4 = arith.constant 0 : index
    %1 = vector.load %arg3[%c0_2, %c0_3, %c0_4] : memref<8x8x2xf32, #tpu.memory_space<vmem>>, vector<8x8x2xf32>
    %c0_5 = arith.constant 0 : index
    %c0_6 = arith.constant 0 : index
    %2 = vector.load %arg4[%c0_5, %c0_6] : memref<512x256xf32, #tpu.memory_space<vmem>>, vector<512x256xf32>
    %c0_7 = arith.constant 0 : index
    %c0_8 = arith.constant 0 : index
    %3 = vector.load %arg1[%c0_7, %c0_8] : memref<256x2xf32, #tpu.memory_space<vmem>>, vector<256x2xf32>
    %cst = arith.constant dense<0.000000e+00> : vector<512x2xf32>
    %4 = tpu.matmul %2, %3, %cst {dimension_numbers = #tpu.dot_dimension_numbers<[1], [0], [0], [1], [0, 0, 1, 1], [], []>} : vector<512x256xf32>, vector<256x2xf32>, vector<512x2xf32> -> vector<512x2xf32>
    %5 = vector.shape_cast %4 : vector<512x2xf32> to vector<8x64x2xf32>
    %cst_9 = arith.constant dense<0.000000e+00> : vector<8x2xf32>
    %6 = vector.multi_reduction <add>, %1, %cst_9 [0] : vector<8x8x2xf32> to vector<8x2xf32>
    %7 = tpu.reciprocal %6 : vector<8x2xf32> -> vector<8x2xf32>
    %cst_10 = arith.constant dense<0.000000e+00> : vector<8x2xf32>
    %8 = vector.multi_reduction <add>, %0, %cst_10 [0] : vector<8x8x2xf32> to vector<8x2xf32>
    %9 = tpu.reciprocal %8 : vector<8x2xf32> -> vector<8x2xf32>
    %cst_11 = arith.constant 0.000000e+00 : f32
    %10 = vector.broadcast %cst_11 : f32 to vector<8x32x2xf32>
    %cst_12 = arith.constant 0.000000e+00 : f32
    %11 = vector.broadcast %cst_12 : f32 to vector<8x32x2xf32>
    %12 = vector.extract_strided_slice %5 {offsets = [0, 0, 0], sizes = [1, 32, 2], strides = [1, 1, 1]} : vector<8x64x2xf32> to vector<1x32x2xf32>
    %13 = vector.shape_cast %12 : vector<1x32x2xf32> to vector<32x2xf32>
    %14 = vector.extract_strided_slice %5 {offsets = [0, 32, 0], sizes = [1, 32, 2], strides = [1, 1, 1]} : vector<8x64x2xf32> to vector<1x32x2xf32>
    %15 = vector.shape_cast %14 : vector<1x32x2xf32> to vector<32x2xf32>
    %16 = vector.extract_strided_slice %1 {offsets = [0, 0, 0], sizes = [1, 8, 2], strides = [1, 1, 1]} : vector<8x8x2xf32> to vector<1x8x2xf32>
    %17 = vector.shape_cast %16 : vector<1x8x2xf32> to vector<8x2xf32>
    %18 = vector.shape_cast %17 : vector<8x2xf32> to vector<8x1x2xf32>
    %19 = vector.shape_cast %13 : vector<32x2xf32> to vector<1x32x2xf32>
    %20 = vector.broadcast %18 : vector<8x1x2xf32> to vector<8x32x2xf32>
    %21 = vector.broadcast %19 : vector<1x32x2xf32> to vector<8x32x2xf32>
    %22 = arith.mulf %20, %21 : vector<8x32x2xf32>
    %23 = arith.addf %10, %22 : vector<8x32x2xf32>
    %24 = vector.extract_strided_slice %0 {offsets = [0, 0, 0], sizes = [1, 8, 2], strides = [1, 1, 1]} : vector<8x8x2xf32> to vector<1x8x2xf32>
    %25 = vector.shape_cast %24 : vector<1x8x2xf32> to vector<8x2xf32>
    %26 = vector.shape_cast %25 : vector<8x2xf32> to vector<8x1x2xf32>
    %27 = vector.shape_cast %15 : vector<32x2xf32> to vector<1x32x2xf32>
    %28 = vector.broadcast %26 : vector<8x1x2xf32> to vector<8x32x2xf32>
    %29 = vector.broadcast %27 : vector<1x32x2xf32> to vector<8x32x2xf32>
    %30 = arith.mulf %28, %29 : vector<8x32x2xf32>
    %31 = arith.addf %11, %30 : vector<8x32x2xf32>
    %32 = vector.extract_strided_slice %5 {offsets = [1, 0, 0], sizes = [1, 32, 2], strides = [1, 1, 1]} : vector<8x64x2xf32> to vector<1x32x2xf32>
    %33 = vector.shape_cast %32 : vector<1x32x2xf32> to vector<32x2xf32>
    %34 = vector.extract_strided_slice %5 {offsets = [1, 32, 0], sizes = [1, 32, 2], strides = [1, 1, 1]} : vector<8x64x2xf32> to vector<1x32x2xf32>
    %35 = vector.shape_cast %34 : vector<1x32x2xf32> to vector<32x2xf32>
    %36 = vector.extract_strided_slice %1 {offsets = [1, 0, 0], sizes = [1, 8, 2], strides = [1, 1, 1]} : vector<8x8x2xf32> to vector<1x8x2xf32>
    %37 = vector.shape_cast %36 : vector<1x8x2xf32> to vector<8x2xf32>
    %38 = vector.shape_cast %37 : vector<8x2xf32> to vector<8x1x2xf32>
    %39 = vector.shape_cast %33 : vector<32x2xf32> to vector<1x32x2xf32>
    %40 = vector.broadcast %38 : vector<8x1x2xf32> to vector<8x32x2xf32>
    %41 = vector.broadcast %39 : vector<1x32x2xf32> to vector<8x32x2xf32>
    %42 = arith.mulf %40, %41 : vector<8x32x2xf32>
    %43 = arith.addf %23, %42 : vector<8x32x2xf32>
    %44 = vector.extract_strided_slice %0 {offsets = [1, 0, 0], sizes = [1, 8, 2], strides = [1, 1, 1]} : vector<8x8x2xf32> to vector<1x8x2xf32>
    %45 = vector.shape_cast %44 : vector<1x8x2xf32> to vector<8x2xf32>
    %46 = vector.shape_cast %45 : vector<8x2xf32> to vector<8x1x2xf32>
    %47 = vector.shape_cast %35 : vector<32x2xf32> to vector<1x32x2xf32>
    %48 = vector.broadcast %46 : vector<8x1x2xf32> to vector<8x32x2xf32>
    %49 = vector.broadcast %47 : vector<1x32x2xf32> to vector<8x32x2xf32>
    %50 = arith.mulf %48, %49 : vector<8x32x2xf32>
    %51 = arith.addf %31, %50 : vector<8x32x2xf32>
    %52 = vector.extract_strided_slice %5 {offsets = [2, 0, 0], sizes = [1, 32, 2], strides = [1, 1, 1]} : vector<8x64x2xf32> to vector<1x32x2xf32>
    %53 = vector.shape_cast %52 : vector<1x32x2xf32> to vector<32x2xf32>
    %54 = vector.extract_strided_slice %5 {offsets = [2, 32, 0], sizes = [1, 32, 2], strides = [1, 1, 1]} : vector<8x64x2xf32> to vector<1x32x2xf32>
    %55 = vector.shape_cast %54 : vector<1x32x2xf32> to vector<32x2xf32>
    %56 = vector.extract_strided_slice %1 {offsets = [2, 0, 0], sizes = [1, 8, 2], strides = [1, 1, 1]} : vector<8x8x2xf32> to vector<1x8x2xf32>
    %57 = vector.shape_cast %56 : vector<1x8x2xf32> to vector<8x2xf32>
    %58 = vector.shape_cast %57 : vector<8x2xf32> to vector<8x1x2xf32>
    %59 = vector.shape_cast %53 : vector<32x2xf32> to vector<1x32x2xf32>
    %60 = vector.broadcast %58 : vector<8x1x2xf32> to vector<8x32x2xf32>
    %61 = vector.broadcast %59 : vector<1x32x2xf32> to vector<8x32x2xf32>
    %62 = arith.mulf %60, %61 : vector<8x32x2xf32>
    %63 = arith.addf %43, %62 : vector<8x32x2xf32>
    %64 = vector.extract_strided_slice %0 {offsets = [2, 0, 0], sizes = [1, 8, 2], strides = [1, 1, 1]} : vector<8x8x2xf32> to vector<1x8x2xf32>
    %65 = vector.shape_cast %64 : vector<1x8x2xf32> to vector<8x2xf32>
    %66 = vector.shape_cast %65 : vector<8x2xf32> to vector<8x1x2xf32>
    %67 = vector.shape_cast %55 : vector<32x2xf32> to vector<1x32x2xf32>
    %68 = vector.broadcast %66 : vector<8x1x2xf32> to vector<8x32x2xf32>
    %69 = vector.broadcast %67 : vector<1x32x2xf32> to vector<8x32x2xf32>
    %70 = arith.mulf %68, %69 : vector<8x32x2xf32>
    %71 = arith.addf %51, %70 : vector<8x32x2xf32>
    %72 = vector.extract_strided_slice %5 {offsets = [3, 0, 0], sizes = [1, 32, 2], strides = [1, 1, 1]} : vector<8x64x2xf32> to vector<1x32x2xf32>
    %73 = vector.shape_cast %72 : vector<1x32x2xf32> to vector<32x2xf32>
    %74 = vector.extract_strided_slice %5 {offsets = [3, 32, 0], sizes = [1, 32, 2], strides = [1, 1, 1]} : vector<8x64x2xf32> to vector<1x32x2xf32>
    %75 = vector.shape_cast %74 : vector<1x32x2xf32> to vector<32x2xf32>
    %76 = vector.extract_strided_slice %1 {offsets = [3, 0, 0], sizes = [1, 8, 2], strides = [1, 1, 1]} : vector<8x8x2xf32> to vector<1x8x2xf32>
    %77 = vector.shape_cast %76 : vector<1x8x2xf32> to vector<8x2xf32>
    %78 = vector.shape_cast %77 : vector<8x2xf32> to vector<8x1x2xf32>
    %79 = vector.shape_cast %73 : vector<32x2xf32> to vector<1x32x2xf32>
    %80 = vector.broadcast %78 : vector<8x1x2xf32> to vector<8x32x2xf32>
    %81 = vector.broadcast %79 : vector<1x32x2xf32> to vector<8x32x2xf32>
    %82 = arith.mulf %80, %81 : vector<8x32x2xf32>
    %83 = arith.addf %63, %82 : vector<8x32x2xf32>
    %84 = vector.extract_strided_slice %0 {offsets = [3, 0, 0], sizes = [1, 8, 2], strides = [1, 1, 1]} : vector<8x8x2xf32> to vector<1x8x2xf32>
    %85 = vector.shape_cast %84 : vector<1x8x2xf32> to vector<8x2xf32>
    %86 = vector.shape_cast %85 : vector<8x2xf32> to vector<8x1x2xf32>
    %87 = vector.shape_cast %75 : vector<32x2xf32> to vector<1x32x2xf32>
    %88 = vector.broadcast %86 : vector<8x1x2xf32> to vector<8x32x2xf32>
    %89 = vector.broadcast %87 : vector<1x32x2xf32> to vector<8x32x2xf32>
    %90 = arith.mulf %88, %89 : vector<8x32x2xf32>
    %91 = arith.addf %71, %90 : vector<8x32x2xf32>
    %92 = vector.extract_strided_slice %5 {offsets = [4, 0, 0], sizes = [1, 32, 2], strides = [1, 1, 1]} : vector<8x64x2xf32> to vector<1x32x2xf32>
    %93 = vector.shape_cast %92 : vector<1x32x2xf32> to vector<32x2xf32>
    %94 = vector.extract_strided_slice %5 {offsets = [4, 32, 0], sizes = [1, 32, 2], strides = [1, 1, 1]} : vector<8x64x2xf32> to vector<1x32x2xf32>
    %95 = vector.shape_cast %94 : vector<1x32x2xf32> to vector<32x2xf32>
    %96 = vector.extract_strided_slice %1 {offsets = [4, 0, 0], sizes = [1, 8, 2], strides = [1, 1, 1]} : vector<8x8x2xf32> to vector<1x8x2xf32>
    %97 = vector.shape_cast %96 : vector<1x8x2xf32> to vector<8x2xf32>
    %98 = vector.shape_cast %97 : vector<8x2xf32> to vector<8x1x2xf32>
    %99 = vector.shape_cast %93 : vector<32x2xf32> to vector<1x32x2xf32>
    %100 = vector.broadcast %98 : vector<8x1x2xf32> to vector<8x32x2xf32>
    %101 = vector.broadcast %99 : vector<1x32x2xf32> to vector<8x32x2xf32>
    %102 = arith.mulf %100, %101 : vector<8x32x2xf32>
    %103 = arith.addf %83, %102 : vector<8x32x2xf32>
    %104 = vector.extract_strided_slice %0 {offsets = [4, 0, 0], sizes = [1, 8, 2], strides = [1, 1, 1]} : vector<8x8x2xf32> to vector<1x8x2xf32>
    %105 = vector.shape_cast %104 : vector<1x8x2xf32> to vector<8x2xf32>
    %106 = vector.shape_cast %105 : vector<8x2xf32> to vector<8x1x2xf32>
    %107 = vector.shape_cast %95 : vector<32x2xf32> to vector<1x32x2xf32>
    %108 = vector.broadcast %106 : vector<8x1x2xf32> to vector<8x32x2xf32>
    %109 = vector.broadcast %107 : vector<1x32x2xf32> to vector<8x32x2xf32>
    %110 = arith.mulf %108, %109 : vector<8x32x2xf32>
    %111 = arith.addf %91, %110 : vector<8x32x2xf32>
    %112 = vector.extract_strided_slice %5 {offsets = [5, 0, 0], sizes = [1, 32, 2], strides = [1, 1, 1]} : vector<8x64x2xf32> to vector<1x32x2xf32>
    %113 = vector.shape_cast %112 : vector<1x32x2xf32> to vector<32x2xf32>
    %114 = vector.extract_strided_slice %5 {offsets = [5, 32, 0], sizes = [1, 32, 2], strides = [1, 1, 1]} : vector<8x64x2xf32> to vector<1x32x2xf32>
    %115 = vector.shape_cast %114 : vector<1x32x2xf32> to vector<32x2xf32>
    %116 = vector.extract_strided_slice %1 {offsets = [5, 0, 0], sizes = [1, 8, 2], strides = [1, 1, 1]} : vector<8x8x2xf32> to vector<1x8x2xf32>
    %117 = vector.shape_cast %116 : vector<1x8x2xf32> to vector<8x2xf32>
    %118 = vector.shape_cast %117 : vector<8x2xf32> to vector<8x1x2xf32>
    %119 = vector.shape_cast %113 : vector<32x2xf32> to vector<1x32x2xf32>
    %120 = vector.broadcast %118 : vector<8x1x2xf32> to vector<8x32x2xf32>
    %121 = vector.broadcast %119 : vector<1x32x2xf32> to vector<8x32x2xf32>
    %122 = arith.mulf %120, %121 : vector<8x32x2xf32>
    %123 = arith.addf %103, %122 : vector<8x32x2xf32>
    %124 = vector.extract_strided_slice %0 {offsets = [5, 0, 0], sizes = [1, 8, 2], strides = [1, 1, 1]} : vector<8x8x2xf32> to vector<1x8x2xf32>
    %125 = vector.shape_cast %124 : vector<1x8x2xf32> to vector<8x2xf32>
    %126 = vector.shape_cast %125 : vector<8x2xf32> to vector<8x1x2xf32>
    %127 = vector.shape_cast %115 : vector<32x2xf32> to vector<1x32x2xf32>
    %128 = vector.broadcast %126 : vector<8x1x2xf32> to vector<8x32x2xf32>
    %129 = vector.broadcast %127 : vector<1x32x2xf32> to vector<8x32x2xf32>
    %130 = arith.mulf %128, %129 : vector<8x32x2xf32>
    %131 = arith.addf %111, %130 : vector<8x32x2xf32>
    %132 = vector.extract_strided_slice %5 {offsets = [6, 0, 0], sizes = [1, 32, 2], strides = [1, 1, 1]} : vector<8x64x2xf32> to vector<1x32x2xf32>
    %133 = vector.shape_cast %132 : vector<1x32x2xf32> to vector<32x2xf32>
    %134 = vector.extract_strided_slice %5 {offsets = [6, 32, 0], sizes = [1, 32, 2], strides = [1, 1, 1]} : vector<8x64x2xf32> to vector<1x32x2xf32>
    %135 = vector.shape_cast %134 : vector<1x32x2xf32> to vector<32x2xf32>
    %136 = vector.extract_strided_slice %1 {offsets = [6, 0, 0], sizes = [1, 8, 2], strides = [1, 1, 1]} : vector<8x8x2xf32> to vector<1x8x2xf32>
    %137 = vector.shape_cast %136 : vector<1x8x2xf32> to vector<8x2xf32>
    %138 = vector.shape_cast %137 : vector<8x2xf32> to vector<8x1x2xf32>
    %139 = vector.shape_cast %133 : vector<32x2xf32> to vector<1x32x2xf32>
    %140 = vector.broadcast %138 : vector<8x1x2xf32> to vector<8x32x2xf32>
    %141 = vector.broadcast %139 : vector<1x32x2xf32> to vector<8x32x2xf32>
    %142 = arith.mulf %140, %141 : vector<8x32x2xf32>
    %143 = arith.addf %123, %142 : vector<8x32x2xf32>
    %144 = vector.extract_strided_slice %0 {offsets = [6, 0, 0], sizes = [1, 8, 2], strides = [1, 1, 1]} : vector<8x8x2xf32> to vector<1x8x2xf32>
    %145 = vector.shape_cast %144 : vector<1x8x2xf32> to vector<8x2xf32>
    %146 = vector.shape_cast %145 : vector<8x2xf32> to vector<8x1x2xf32>
    %147 = vector.shape_cast %135 : vector<32x2xf32> to vector<1x32x2xf32>
    %148 = vector.broadcast %146 : vector<8x1x2xf32> to vector<8x32x2xf32>
    %149 = vector.broadcast %147 : vector<1x32x2xf32> to vector<8x32x2xf32>
    %150 = arith.mulf %148, %149 : vector<8x32x2xf32>
    %151 = arith.addf %131, %150 : vector<8x32x2xf32>
    %152 = vector.extract_strided_slice %5 {offsets = [7, 0, 0], sizes = [1, 32, 2], strides = [1, 1, 1]} : vector<8x64x2xf32> to vector<1x32x2xf32>
    %153 = vector.shape_cast %152 : vector<1x32x2xf32> to vector<32x2xf32>
    %154 = vector.extract_strided_slice %5 {offsets = [7, 32, 0], sizes = [1, 32, 2], strides = [1, 1, 1]} : vector<8x64x2xf32> to vector<1x32x2xf32>
    %155 = vector.shape_cast %154 : vector<1x32x2xf32> to vector<32x2xf32>
    %156 = vector.extract_strided_slice %1 {offsets = [7, 0, 0], sizes = [1, 8, 2], strides = [1, 1, 1]} : vector<8x8x2xf32> to vector<1x8x2xf32>
    %157 = vector.shape_cast %156 : vector<1x8x2xf32> to vector<8x2xf32>
    %158 = vector.shape_cast %157 : vector<8x2xf32> to vector<8x1x2xf32>
    %159 = vector.shape_cast %153 : vector<32x2xf32> to vector<1x32x2xf32>
    %160 = vector.broadcast %158 : vector<8x1x2xf32> to vector<8x32x2xf32>
    %161 = vector.broadcast %159 : vector<1x32x2xf32> to vector<8x32x2xf32>
    %162 = arith.mulf %160, %161 : vector<8x32x2xf32>
    %163 = arith.addf %143, %162 : vector<8x32x2xf32>
    %164 = vector.extract_strided_slice %0 {offsets = [7, 0, 0], sizes = [1, 8, 2], strides = [1, 1, 1]} : vector<8x8x2xf32> to vector<1x8x2xf32>
    %165 = vector.shape_cast %164 : vector<1x8x2xf32> to vector<8x2xf32>
    %166 = vector.shape_cast %165 : vector<8x2xf32> to vector<8x1x2xf32>
    %167 = vector.shape_cast %155 : vector<32x2xf32> to vector<1x32x2xf32>
    %168 = vector.broadcast %166 : vector<8x1x2xf32> to vector<8x32x2xf32>
    %169 = vector.broadcast %167 : vector<1x32x2xf32> to vector<8x32x2xf32>
    %170 = arith.mulf %168, %169 : vector<8x32x2xf32>
    %171 = arith.addf %151, %170 : vector<8x32x2xf32>
    %172 = vector.shape_cast %7 : vector<8x2xf32> to vector<8x1x2xf32>
    %173 = vector.broadcast %172 : vector<8x1x2xf32> to vector<8x32x2xf32>
    %174 = arith.mulf %163, %173 : vector<8x32x2xf32>
    %cst_13 = arith.constant 0.000000e+00 : f32
    %175 = vector.broadcast %cst_13 : f32 to vector<8x32x2xf32>
    %176 = arith.maximumf %174, %175 : vector<8x32x2xf32>
    %177 = vector.shape_cast %9 : vector<8x2xf32> to vector<8x1x2xf32>
    %178 = vector.broadcast %177 : vector<8x1x2xf32> to vector<8x32x2xf32>
    %179 = arith.mulf %171, %178 : vector<8x32x2xf32>
    %cst_14 = arith.constant 0.000000e+00 : f32
    %180 = vector.broadcast %cst_14 : f32 to vector<8x32x2xf32>
    %181 = arith.maximumf %179, %180 : vector<8x32x2xf32>
    %182 = arith.addf %176, %181 : vector<8x32x2xf32>
    %cst_15 = arith.constant 5.000000e-01 : f32
    %183 = vector.broadcast %cst_15 : f32 to vector<8x32x2xf32>
    %184 = arith.mulf %182, %183 : vector<8x32x2xf32>
    %c0_16 = arith.constant 0 : index
    %c0_17 = arith.constant 0 : index
    %c0_18 = arith.constant 0 : index
    %185 = vector.load %arg5[%c0_16, %c0_17, %c0_18] : memref<8x32x2xf32, #tpu.memory_space<vmem>>, vector<8x32x2xf32>
    tpu.vector_store %arg5[%c0_16, %c0_17, %c0_18], %184 {strides = array<i32>} : memref<8x32x2xf32, #tpu.memory_space<vmem>>, vector<8x32x2xf32>,
    return
  }
  func.func @transform_0(%arg0: i32) -> (i32, i32) {
    %c0_i32 = arith.constant 0 : i32
    %c0_i32_0 = arith.constant 0 : i32
    return %c0_i32, %arg0 : i32, i32
  }
  func.func @transform_1(%arg0: i32) -> (i32, i32, i32) {
    %c0_i32 = arith.constant 0 : i32
    %c0_i32_0 = arith.constant 0 : i32
    %c0_i32_1 = arith.constant 0 : i32
    return %c0_i32, %c0_i32_0, %arg0 : i32, i32, i32
  }
  func.func @transform_2(%arg0: i32) -> (i32, i32, i32) {
    %c0_i32 = arith.constant 0 : i32
    %c0_i32_0 = arith.constant 0 : i32
    %c0_i32_1 = arith.constant 0 : i32
    return %c0_i32, %c0_i32_0, %arg0 : i32, i32, i32
  }
  func.func @transform_3(%arg0: i32) -> (i32, i32) {
    %c0_i32 = arith.constant 0 : i32
    %c0_i32_0 = arith.constant 0 : i32
    %c0_i32_1 = arith.constant 0 : i32
    return %c0_i32, %c0_i32_0 : i32, i32
  }
  func.func @transform_4(%arg0: i32) -> (i32, i32, i32) {
    %c0_i32 = arith.constant 0 : i32
    %c0_i32_0 = arith.constant 0 : i32
    %c0_i32_1 = arith.constant 0 : i32
    return %c0_i32, %c0_i32_0, %arg0 : i32, i32, i32
  }
}

</mosaic_0001>

<bundles_post_ra>
// kernel: tpu_custom_call.1
= control target key start
LH: loop header
LB: loop body
LE: loop exit
PB: predicated region body
PF: predicated region fallthrough
CT: control target
= control target key end

     0   :  { %9 = vsyncpa [#allocation3], 0  ;;  %s2446_s18 = smov [#allocation2]   ;;  %s2447_s20 = smov 256   ;;  %s5458_s0 = inlined_call_operand.vmem [shape: f32[256,2], index: 0, kind: input, shape index: {}]   ;;  %s5459_s1 = inlined_call_operand.vmem [shape: f32[8,8,2], index: 1, kind: input, shape index: {}]   ;;  %s5460_s2 = inlined_call_operand.vmem [shape: f32[8,8,2], index: 2, kind: input, shape index: {}]   ;;  %s5461_s3 = inlined_call_operand.hbm [shape: f32[512,256], index: 3, kind: input, shape index: {}]   ;;  %s5462_s4 = inlined_call_operand.vmem [shape: f32[8,32,2], index: 4, kind: output, shape index: {}]  }
   0x1   :  { %s20_s17 = sshll.u32 %s5461_s3, 4  ;;  %s22_s19 = sshll.u32 %s2446_s18, 4  ;;  %s21_s17 = int_to_ptr.hbm [resolvable:$true] %s20_s17  ;;  %s23_s19 = int_to_ptr.vmem [resolvable:$true] %s22_s19 }
   0x2   :  { %s2448_s21 = smov 16  }
   0x3   :  { %28 = dma.hbm_to_vmem [thread:$0]  %s21_s17, 16384, %s23_s19, [#allocation3], %s2447_s20, %s2447_s20, %s2448_s21  }
   0x4   :  { %2444 = dma.done.wait [#allocation3], 16384  }
   0x5   :  { %2445 = vsyncadd [#allocation3], 4294950912  ;;  %v192_v0 = vld [vmem:[%s5458_s0 + $0x78] sm:$0xff]  ;;  %v191_v2 = vld [vmem:[%s5458_s0 + $0x70] sm:$0xff]  ;;  %vm627_vm0 = vcmask 15360  }
   0x6   :  { %v208_v1 = vld [vmem:[%s5458_s0 + $0xf8] sm:$0xff]  ;;  %209 = vmatpush.msra.mxu0 %v192_v0  ;;  %v207_v3 = vld [vmem:[%s5458_s0 + $0xf0] sm:$0xff]  ;;  %2371 = vmatpush.msra.mxu2 %v192_v0  ;;  %v190_v4 = vld [vmem:[%s5458_s0 + $0x68] sm:$0xff] }
   0x7   :  { %418 = vmatpush.msra.mxu1 %v208_v1  ;;  %2387 = vmatpush.msra.mxu3 %v208_v1  ;;  %v206_v5 = vld [vmem:[%s5458_s0 + $0xe8] sm:$0xff]  ;;  %v189_v6 = vld [vmem:[%s5458_s0 + $0x60] sm:$0xff]  ;;  %v188_v8 = vld [vmem:[%s5458_s0 + $0x58] sm:$0xff] }
   0x8   :  { %210 = vmatpush.msra.mxu0 %v191_v2  ;;  %2372 = vmatpush.msra.mxu2 %v191_v2  ;;  %v205_v7 = vld [vmem:[%s5458_s0 + $0xe0] sm:$0xff]  ;;  %v204_v9 = vld [vmem:[%s5458_s0 + $0xd8] sm:$0xff]  ;;  %v187_v10 = vld [vmem:[%s5458_s0 + $0x50] sm:$0xff] }
   0x9   :  { %419 = vmatpush.msra.mxu1 %v207_v3  ;;  %2388 = vmatpush.msra.mxu3 %v207_v3  ;;  %v203_v11 = vld [vmem:[%s5458_s0 + $0xd0] sm:$0xff]  ;;  %v186_v12 = vld [vmem:[%s5458_s0 + $0x48] sm:$0xff]  ;;  %v185_v14 = vld [vmem:[%s5458_s0 + $0x40] sm:$0xff] }
   0xa   :  { %211 = vmatpush.msra.mxu0 %v190_v4  ;;  %2373 = vmatpush.msra.mxu2 %v190_v4  ;;  %v202_v13 = vld [vmem:[%s5458_s0 + $0xc8] sm:$0xff]  ;;  %v201_v15 = vld [vmem:[%s5458_s0 + $0xc0] sm:$0xff]  ;;  %v184_v16 = vld [vmem:[%s5458_s0 + $0x38] sm:$0xff] }
   0xb   :  { %420 = vmatpush.msra.mxu1 %v206_v5  ;;  %2389 = vmatpush.msra.mxu3 %v206_v5  ;;  %v200_v17 = vld [vmem:[%s5458_s0 + $0xb8] sm:$0xff]  ;;  %v183_v18 = vld [vmem:[%s5458_s0 + $0x30] sm:$0xff]  ;;  %v182_v20 = vld [vmem:[%s5458_s0 + $0x28] sm:$0xff] }
   0xc   :  { %212 = vmatpush.msra.mxu0 %v189_v6  ;;  %2374 = vmatpush.msra.mxu2 %v189_v6  ;;  %v199_v19 = vld [vmem:[%s5458_s0 + $0xb0] sm:$0xff]  ;;  %v198_v21 = vld [vmem:[%s5458_s0 + $0xa8] sm:$0xff]  ;;  %v181_v22 = vld [vmem:[%s5458_s0 + $0x20] sm:$0xff] }
   0xd   :  { %421 = vmatpush.msra.mxu1 %v205_v7  ;;  %2390 = vmatpush.msra.mxu3 %v205_v7  ;;  %v197_v23 = vld [vmem:[%s5458_s0 + $0xa0] sm:$0xff]  ;;  %v180_v24 = vld [vmem:[%s5458_s0 + $0x18] sm:$0xff]  ;;  %v179_v26 = vld [vmem:[%s5458_s0 + $0x10] sm:$0xff] }
   0xe   :  { %213 = vmatpush.msra.mxu0 %v188_v8  ;;  %2375 = vmatpush.msra.mxu2 %v188_v8  ;;  %v196_v25 = vld [vmem:[%s5458_s0 + $0x98] sm:$0xff]  ;;  %v195_v27 = vld [vmem:[%s5458_s0 + $0x90] sm:$0xff]  ;;  %v178_v28 = vld [vmem:[%s5458_s0 + $0x8] sm:$0xff] }
   0xf   :  { %422 = vmatpush.msra.mxu1 %v204_v9  ;;  %2391 = vmatpush.msra.mxu3 %v204_v9  ;;  %v194_v29 = vld [vmem:[%s5458_s0 + $0x88] sm:$0xff]  ;;  %v177_v30 = vld [vmem:[%s5458_s0] sm:$0xff]  ;;  %v51_v36 = vld [vmem:[#allocation2 + $0x10] sm:$0xff] }
  0x10   :  { %214 = vmatpush.msra.mxu0 %v187_v10  ;;  %2376 = vmatpush.msra.mxu2 %v187_v10  ;;  %v193_v31 = vld [vmem:[%s5458_s0 + $0x80] sm:$0xff]  ;;  %v50_v33 = vld [vmem:[#allocation2 + $0x8] sm:$0xff]  ;;  %v52_v37 = vld [vmem:[#allocation2 + $0x18] sm:$0xff] }
  0x11   :  { %423 = vmatpush.msra.mxu1 %v203_v11  ;;  %2392 = vmatpush.msra.mxu3 %v203_v11  ;;  %v49_v32 = vld [vmem:[#allocation2] sm:$0xff]  ;;  %v114_v35 = vld [vmem:[#allocation2 + $0x208] sm:$0xff]  ;;  %v115_v38 = vld [vmem:[#allocation2 + $0x210] sm:$0xff] }
  0x12   :  { %215 = vmatpush.msra.mxu0 %v186_v12  ;;  %2377 = vmatpush.msra.mxu2 %v186_v12  ;;  %v113_v34 = vld [vmem:[#allocation2 + $0x200] sm:$0xff]  ;;  %v116_v39 = vld [vmem:[#allocation2 + $0x218] sm:$0xff]  ;;  %v54_v41 = vld [vmem:[#allocation2 + $0x28] sm:$0xff] }
  0x13   :  { %424 = vmatpush.msra.mxu1 %v202_v13  ;;  %2393 = vmatpush.msra.mxu3 %v202_v13  ;;  %v53_v40 = vld [vmem:[#allocation2 + $0x20] sm:$0xff]  ;;  %v118_v43 = vld [vmem:[#allocation2 + $0x228] sm:$0xff]  ;;  %v55_v44 = vld [vmem:[#allocation2 + $0x30] sm:$0xff] }
  0x14   :  { %216 = vmatpush.msra.mxu0 %v185_v14  ;;  %2378 = vmatpush.msra.mxu2 %v185_v14  ;;  %v117_v42 = vld [vmem:[#allocation2 + $0x220] sm:$0xff]  ;;  %v56_v45 = vld [vmem:[#allocation2 + $0x38] sm:$0xff]  ;;  %v119_v46 = vld [vmem:[#allocation2 + $0x230] sm:$0xff] }
  0x15   :  { %425 = vmatpush.msra.mxu1 %v201_v15  ;;  %2394 = vmatpush.msra.mxu3 %v201_v15  ;;  %v120_v47 = vld [vmem:[#allocation2 + $0x238] sm:$0xff]  ;;  %v57_v48 = vld [vmem:[#allocation2 + $0x40] sm:$0xff]  ;;  %v58_v49 = vld [vmem:[#allocation2 + $0x48] sm:$0xff] }
  0x16   :  { %217 = vmatpush.msra.mxu0 %v184_v16  ;;  %2379 = vmatpush.msra.mxu2 %v184_v16  ;;  %v121_v50 = vld [vmem:[#allocation2 + $0x240] sm:$0xff]  ;;  %v122_v51 = vld [vmem:[#allocation2 + $0x248] sm:$0xff]  ;;  %v59_v52 = vld [vmem:[#allocation2 + $0x50] sm:$0xff] }
  0x17   :  { %426 = vmatpush.msra.mxu1 %v200_v17  ;;  %2395 = vmatpush.msra.mxu3 %v200_v17  ;;  %v60_v53 = vld [vmem:[#allocation2 + $0x58] sm:$0xff]  ;;  %v123_v54 = vld [vmem:[#allocation2 + $0x250] sm:$0xff]  ;;  %v61_v56 = vld [vmem:[#allocation2 + $0x60] sm:$0xff] }
  0x18   :  { %218 = vmatpush.msra.mxu0 %v183_v18  ;;  %2380 = vmatpush.msra.mxu2 %v183_v18  ;;  %v124_v55 = vld [vmem:[#allocation2 + $0x258] sm:$0xff]  ;;  %v62_v57 = vld [vmem:[#allocation2 + $0x68] sm:$0xff]  ;;  %v125_v58 = vld [vmem:[#allocation2 + $0x260] sm:$0xff] }
  0x19   :  { %427 = vmatpush.msra.mxu1 %v199_v19  ;;  %2396 = vmatpush.msra.mxu3 %v199_v19  ;;  %v126_v59 = vld [vmem:[#allocation2 + $0x268] sm:$0xff]  ;;  %v63_v60 = vld [vmem:[#allocation2 + $0x70] sm:$0xff]  ;;  %v64_v61 = vld [vmem:[#allocation2 + $0x78] sm:$0xff] }
  0x1a   :  { %219 = vmatpush.msra.mxu0 %v182_v20  ;;  %2381 = vmatpush.msra.mxu2 %v182_v20  ;;  %v127_v62 = vld [vmem:[#allocation2 + $0x270] sm:$0xff]  ;;  %v128_v63 = vld [vmem:[#allocation2 + $0x278] sm:$0xff]  ;;  %v65_v0 = vld [vmem:[#allocation2 + $0x80] sm:$0xff] }
  0x1b   :  { %428 = vmatpush.msra.mxu1 %v198_v21  ;;  %2397 = vmatpush.msra.mxu3 %v198_v21  ;;  %v66_v1 = vld [vmem:[#allocation2 + $0x88] sm:$0xff]  ;;  %v129_v2 = vld [vmem:[#allocation2 + $0x280] sm:$0xff]  ;;  %v67_v4 = vld [vmem:[#allocation2 + $0x90] sm:$0xff] }
  0x1c   :  { %220 = vmatpush.msra.mxu0 %v181_v22  ;;  %2382 = vmatpush.msra.mxu2 %v181_v22  ;;  %v130_v3 = vld [vmem:[#allocation2 + $0x288] sm:$0xff]  ;;  %v68_v5 = vld [vmem:[#allocation2 + $0x98] sm:$0xff]  ;;  %v131_v6 = vld [vmem:[#allocation2 + $0x290] sm:$0xff] }
  0x1d   :  { %429 = vmatpush.msra.mxu1 %v197_v23  ;;  %2398 = vmatpush.msra.mxu3 %v197_v23  ;;  %v132_v7 = vld [vmem:[#allocation2 + $0x298] sm:$0xff]  ;;  %v69_v8 = vld [vmem:[#allocation2 + $0xa0] sm:$0xff]  ;;  %v70_v9 = vld [vmem:[#allocation2 + $0xa8] sm:$0xff] }
  0x1e   :  { %221 = vmatpush.msra.mxu0 %v180_v24  ;;  %2383 = vmatpush.msra.mxu2 %v180_v24  ;;  %v133_v10 = vld [vmem:[#allocation2 + $0x2a0] sm:$0xff]  ;;  %v134_v11 = vld [vmem:[#allocation2 + $0x2a8] sm:$0xff]  ;;  %v71_v12 = vld [vmem:[#allocation2 + $0xb0] sm:$0xff] }
  0x1f   :  { %430 = vmatpush.msra.mxu1 %v196_v25  ;;  %2399 = vmatpush.msra.mxu3 %v196_v25  ;;  %v72_v13 = vld [vmem:[#allocation2 + $0xb8] sm:$0xff]  ;;  %v135_v14 = vld [vmem:[#allocation2 + $0x2b0] sm:$0xff]  ;;  %v73_v16 = vld [vmem:[#allocation2 + $0xc0] sm:$0xff] }
  0x20   :  { %222 = vmatpush.msra.mxu0 %v179_v26  ;;  %2384 = vmatpush.msra.mxu2 %v179_v26  ;;  %v136_v15 = vld [vmem:[#allocation2 + $0x2b8] sm:$0xff]  ;;  %v74_v17 = vld [vmem:[#allocation2 + $0xc8] sm:$0xff]  ;;  %v137_v18 = vld [vmem:[#allocation2 + $0x2c0] sm:$0xff] }
  0x21   :  { %431 = vmatpush.msra.mxu1 %v195_v27  ;;  %2400 = vmatpush.msra.mxu3 %v195_v27  ;;  %v138_v19 = vld [vmem:[#allocation2 + $0x2c8] sm:$0xff]  ;;  %v75_v20 = vld [vmem:[#allocation2 + $0xd0] sm:$0xff]  ;;  %v76_v21 = vld [vmem:[#allocation2 + $0xd8] sm:$0xff] }
  0x22   :  { %223 = vmatpush.msra.mxu0 %v178_v28  ;;  %2385 = vmatpush.msra.mxu2 %v178_v28  ;;  %v139_v22 = vld [vmem:[#allocation2 + $0x2d0] sm:$0xff]  ;;  %v140_v23 = vld [vmem:[#allocation2 + $0x2d8] sm:$0xff]  ;;  %v77_v24 = vld [vmem:[#allocation2 + $0xe0] sm:$0xff] }
  0x23   :  { %432 = vmatpush.msra.mxu1 %v194_v29  ;;  %2401 = vmatpush.msra.mxu3 %v194_v29  ;;  %v78_v25 = vld [vmem:[#allocation2 + $0xe8] sm:$0xff]  ;;  %v141_v26 = vld [vmem:[#allocation2 + $0x2e0] sm:$0xff]  ;;  %v79_v28 = vld [vmem:[#allocation2 + $0xf0] sm:$0xff] }
  0x24   :  { %224 = vmatpush.msra.mxu0 %v177_v30  ;;  %2386 = vmatpush.msra.mxu2 %v177_v30  ;;  %v142_v27 = vld [vmem:[#allocation2 + $0x2e8] sm:$0xff]  ;;  %v80_v29 = vld [vmem:[#allocation2 + $0xf8] sm:$0xff]  ;;  %v143_v30 = vld [vmem:[#allocation2 + $0x2f0] sm:$0xff] }
  0x25   :  { %433 = vmatpush.msra.mxu1 %v193_v31  ;;  %225 = vmatmul.f32.vlgmr.msra.gmra.mxu0 %v49_v32 }
  0x26   :  { %434 = vmatmul.f32.vlgmr.msra.gmra.mxu1 %v50_v33  ;;  %2402 = vmatpush.msra.mxu3 %v193_v31  ;;  %v144_v31 = vld [vmem:[#allocation2 + $0x2f8] sm:$0xff] }
  0x27   :  { %321 = vmatmul.f32.vlgmr.msra.gmra.mxu2 %v113_v34  ;;  %530 = vmatmul.f32.vlgmr.msra.gmra.mxu3 %v114_v35  ;;  %v81_v34 = vld [vmem:[#allocation2 + $0x100] sm:$0xff]  ;;  %v82_v35 = vld [vmem:[#allocation2 + $0x108] sm:$0xff] }
  0x2d   :  { %228 = vmatmul.f32.gmra.mxu0 %v51_v36  ;;  %v145_v36 = vld [vmem:[#allocation2 + $0x300] sm:$0xff] }
  0x2e   :  { %437 = vmatmul.f32.gmra.mxu1 %v52_v37  ;;  %v146_v37 = vld [vmem:[#allocation2 + $0x308] sm:$0xff] }
  0x2f   :  { %324 = vmatmul.f32.gmra.mxu2 %v115_v38  ;;  %533 = vmatmul.f32.gmra.mxu3 %v116_v39  ;;  %v41_v38 = vld [vmem:[%s5460_s2] sm:$0xff] }
  0x35   :  { %231 = vmatmul.f32.gmra.mxu0 %v53_v40 }
  0x36   :  { %440 = vmatmul.f32.gmra.mxu1 %v54_v41  ;;  %v83_v41 = vld [vmem:[#allocation2 + $0x110] sm:$0xff] }
  0x37   :  { %327 = vmatmul.f32.gmra.mxu2 %v117_v42  ;;  %536 = vmatmul.f32.gmra.mxu3 %v118_v43  ;;  %v45_v43 = vld [vmem:[%s5460_s2 + $0x20] sm:$0xff] }
  0x3d   :  { %234 = vmatmul.f32.gmra.mxu0 %v55_v44 }
  0x3e   :  { %443 = vmatmul.f32.gmra.mxu1 %v56_v45  ;;  %v84_v45 = vld [vmem:[#allocation2 + $0x118] sm:$0xff] }
  0x3f   :  { %330 = vmatmul.f32.gmra.mxu2 %v119_v46  ;;  %539 = vmatmul.f32.gmra.mxu3 %v120_v47  ;;  %v687_v46 = vrot.slane %v41_v38, 1  ;;  %v688_v47 = vrot.slane %v41_v38, 2 }
  0x45   :  { %237 = vmatmul.f32.gmra.mxu0 %v57_v48 }
  0x46   :  { %446 = vmatmul.f32.gmra.mxu1 %v58_v49  ;;  %v147_v49 = vld [vmem:[#allocation2 + $0x310] sm:$0xff] }
  0x47   :  { %333 = vmatmul.f32.gmra.mxu2 %v121_v50  ;;  %542 = vmatmul.f32.gmra.mxu3 %v122_v51  ;;  %v689_v50 = vrot.slane %v41_v38, 3  ;;  %v690_v51 = vrot.slane %v41_v38, 4 }
  0x4d   :  { %240 = vmatmul.f32.gmra.mxu0 %v59_v52  ;;  %v691_v52 = vrot.slane %v41_v38, 5 }
  0x4e   :  { %449 = vmatmul.f32.gmra.mxu1 %v60_v53  ;;  %v148_v53 = vld [vmem:[#allocation2 + $0x318] sm:$0xff] }
  0x4f   :  { %336 = vmatmul.f32.gmra.mxu2 %v123_v54  ;;  %545 = vmatmul.f32.gmra.mxu3 %v124_v55  ;;  %v692_v54 = vrot.slane %v41_v38, 6  ;;  %v693_v55 = vrot.slane %v41_v38, 7 }
  0x55   :  { %243 = vmatmul.f32.gmra.mxu0 %v61_v56  ;;  %v2585_v56 = vperm.slane %v41_v38, 0 }
  0x56   :  { %452 = vmatmul.f32.gmra.mxu1 %v62_v57  ;;  %v1391_v57 = vrot.slane %v45_v43, 1 }
  0x57   :  { %339 = vmatmul.f32.gmra.mxu2 %v125_v58  ;;  %548 = vmatmul.f32.gmra.mxu3 %v126_v59  ;;  %v1392_v58 = vrot.slane %v45_v43, 2  ;;  %v1393_v59 = vrot.slane %v45_v43, 3 }
  0x5d   :  { %246 = vmatmul.f32.gmra.mxu0 %v63_v60  ;;  %v1394_v60 = vrot.slane %v45_v43, 4 }
  0x5e   :  { %455 = vmatmul.f32.gmra.mxu1 %v64_v61  ;;  %v1395_v61 = vrot.slane %v45_v43, 5 }
  0x5f   :  { %342 = vmatmul.f32.gmra.mxu2 %v127_v62  ;;  %551 = vmatmul.f32.gmra.mxu3 %v128_v63  ;;  %v2587_v62 = vperm.slane %v687_v46, 0  ;;  %v2589_v63 = vperm.slane %v688_v47, 0 }
  0x65   :  { %249 = vmatmul.f32.gmra.mxu0 %v65_v0  ;;  %v1396_v0 = vrot.slane %v45_v43, 6 }
  0x66   :  { %458 = vmatmul.f32.gmra.mxu1 %v66_v1  ;;  %v1397_v1 = vrot.slane %v45_v43, 7 }
  0x67   :  { %345 = vmatmul.f32.gmra.mxu2 %v129_v2  ;;  %554 = vmatmul.f32.gmra.mxu3 %v130_v3  ;;  %v2591_v3 = vperm.slane %v689_v50, 0 }
  0x6d   :  { %252 = vmatmul.f32.gmra.mxu0 %v67_v4  ;;  %v2593_v4 = vperm.slane %v690_v51, 0  ;;  %v87_v51 = vld [vmem:[#allocation2 + $0x130] sm:$0xff] }
  0x6e   :  { %461 = vmatmul.f32.gmra.mxu1 %v68_v5  ;;  %v2595_v5 = vperm.slane %v691_v52, 0 }
  0x6f   :  { %348 = vmatmul.f32.gmra.mxu2 %v131_v6  ;;  %557 = vmatmul.f32.gmra.mxu3 %v132_v7  ;;  %v33_v6 = vld [vmem:[%s5459_s1] sm:$0xff]  ;;  %v2600_v7 = vperm.slane %v692_v54, 0 }
  0x75   :  { %255 = vmatmul.f32.gmra.mxu0 %v69_v8  ;;  %v2602_v8 = vperm.slane %v693_v55, 0 }
  0x76   :  { %464 = vmatmul.f32.gmra.mxu1 %v70_v9  ;;  %v2604_v9 = vperm.slane %v45_v43, 0 }
  0x77   :  { %351 = vmatmul.f32.gmra.mxu2 %v133_v10  ;;  %560 = vmatmul.f32.gmra.mxu3 %v134_v11  ;;  %v2606_v10 = vperm.slane %v1391_v57, 0 }
  0x7d   :  { %258 = vmatmul.f32.gmra.mxu0 %v71_v12 }
  0x7e   :  { %467 = vmatmul.f32.gmra.mxu1 %v72_v13  ;;  %v85_v13 = vld [vmem:[#allocation2 + $0x120] sm:$0xff] }
  0x7f   :  { %354 = vmatmul.f32.gmra.mxu2 %v135_v14  ;;  %563 = vmatmul.f32.gmra.mxu3 %v136_v15  ;;  %v2610_v14 = vperm.slane %v1392_v58, 0  ;;  %v2612_v15 = vperm.slane %v1393_v59, 0 }
  0x85   :  { %261 = vmatmul.f32.gmra.mxu0 %v73_v16  ;;  %v2614_v16 = vperm.slane %v1394_v60, 0  ;;  %v88_v60 = vld [vmem:[#allocation2 + $0x138] sm:$0xff] }
  0x86   :  { %470 = vmatmul.f32.gmra.mxu1 %v74_v17  ;;  %v2616_v17 = vperm.slane %v1395_v61, 0 }
  0x87   :  { %357 = vmatmul.f32.gmra.mxu2 %v137_v18  ;;  %566 = vmatmul.f32.gmra.mxu3 %v138_v19 }
  0x8d   :  { %264 = vmatmul.f32.gmra.mxu0 %v75_v20  ;;  %v86_v20 = vld [vmem:[#allocation2 + $0x128] sm:$0xff] }
  0x8e   :  { %473 = vmatmul.f32.gmra.mxu1 %v76_v21  ;;  %v2620_v21 = vperm.slane %v1396_v0, 0 }
  0x8f   :  { %360 = vmatmul.f32.gmra.mxu2 %v139_v22  ;;  %569 = vmatmul.f32.gmra.mxu3 %v140_v23  ;;  %v2622_v22 = vperm.slane %v1397_v1, 0 }
  0x95   :  { %267 = vmatmul.f32.gmra.mxu0 %v77_v24  ;;  %v149_v24 = vld [vmem:[#allocation2 + $0x320] sm:$0xff] }
  0x96   :  { %476 = vmatmul.f32.gmra.mxu1 %v78_v25  ;;  %v775_v25 = vrot.slane %v33_v6, 1 }
  0x97   :  { %363 = vmatmul.f32.gmra.mxu2 %v141_v26  ;;  %572 = vmatmul.f32.gmra.mxu3 %v142_v27  ;;  %v150_v27 = vld [vmem:[#allocation2 + $0x328] sm:$0xff] }
  0x98   :  { %v2657_v46 = vperm.slane %v775_v25, 0 }
  0x9d   :  { %270 = vmatmul.f32.gmra.mxu0 %v79_v28  ;;  %v776_v28 = vrot.slane %v33_v6, 2 }
  0x9e   :  { %479 = vmatmul.f32.gmra.mxu1 %v80_v29  ;;  %v777_v29 = vrot.slane %v33_v6, 3 }
  0x9f   :  { %366 = vmatmul.f32.gmra.mxu2 %v143_v30  ;;  %575 = vmatmul.f32.gmra.mxu3 %v144_v31  ;;  %v778_v30 = vrot.slane %v33_v6, 4 }
  0xa1   :  { %v2663_v47 = vperm.slane %v778_v30, 0 }
  0xa2   :  { %v226_v32 = vpop.f32.mrf.mxu0 }
  0xa3   :  { %v435_v33 = vpop.f32.mrf.mxu1 }
  0xa4   :  { %v436_v2 = vadd.f32 %v435_v33, %v226_v32  ;;  %v779_v32 = vrot.slane %v33_v6, 5  ;;  %v780_v33 = vrot.slane %v33_v6, 6 }
  0xa5   :  { %273 = vmatmul.f32.gmra.mxu0 %v81_v34  ;;  %v781_v34 = vrot.slane %v33_v6, 7 }
  0xa6   :  { %482 = vmatmul.f32.gmra.mxu1 %v82_v35  ;;  %v2627_v26 = vmul.f32 %v2585_v56, %v436_v2  ;;  %v2630_v31 = vmul.f32 %v2587_v62, %v436_v2  ;;  %v2633_v35 = vmul.f32 %v2589_v63, %v436_v2  ;;  %v2650_v43 = vmul.f32 %v2600_v7, %v436_v2 }
  0xa7   :  { %369 = vmatmul.f32.gmra.mxu2 %v145_v36  ;;  %578 = vmatmul.f32.gmra.mxu3 %v146_v37  ;;  %v2636_v36 = vmul.f32 %v2591_v3, %v436_v2  ;;  %v2639_v37 = vmul.f32 %v2593_v4, %v436_v2  ;;  %v2665_v52 = vperm.slane %v779_v32, 0  ;;  %v2669_v54 = vperm.slane %v781_v34, 0 }
  0xaa   :  { %v2576_v39 = vpop.f32.mrf.mxu0  ;;  %v322_v40 = vpop.f32.mrf.mxu2 }
  0xab   :  { %v2578_v42 = vpop.f32.mrf.mxu1  ;;  %v531_v44 = vpop.f32.mrf.mxu3 }
  0xac   :  { %v2583_v48 = vadd.f32 %v531_v44, %v322_v40  ;;  %v439_v38 = vadd.f32 %v2578_v42, %v2576_v39  ;;  %v37_v40 = vld [vmem:[%s5459_s1 + $0x20] sm:$0xff]  ;;  %v2653_v44 = vmul.f32 %v2602_v8, %v436_v2  ;;  %v2659_v39 = vperm.slane %v776_v28, 0  ;;  %v152_v28 = vld [vmem:[#allocation2 + $0x338] sm:$0xff] }
  0xad   :  { %276 = vmatmul.f32.gmra.mxu0 %v83_v41  ;;  %v2647_v41 = vmul.f32 %v2595_v5, %v436_v2  ;;  %v2661_v42 = vperm.slane %v777_v29, 0  ;;  %v1479_v55 = vrot.slane %v37_v40, 1  ;;  %v1480_v61 = vrot.slane %v37_v40, 2 }
  0xae   :  { %485 = vmatmul.f32.gmra.mxu1 %v84_v45  ;;  %v2655_v45 = vperm.slane %v33_v6, 0  ;;  %v2672_v57 = vmul.f32 %v2585_v56, %v439_v38  ;;  %v1481_v0 = vrot.slane %v37_v40, 3  ;;  %v1482_v1 = vrot.slane %v37_v40, 4 }
  0xaf   :  { %372 = vmatmul.f32.gmra.mxu2 %v147_v49  ;;  %581 = vmatmul.f32.gmra.mxu3 %v148_v53  ;;  %v2667_v53 = vperm.slane %v780_v33, 0  ;;  %v2675_v2 = vmul.f32 %v2587_v62, %v439_v38  ;;  %v2678_v6 = vmul.f32 %v2589_v63, %v439_v38  ;;  %v2692_v25 = vmul.f32 %v2600_v7, %v439_v38 }
  0xb0   :  { %v2699_v29 = vmul.f32 %v2604_v9, %v2583_v48  ;;  %v1483_v30 = vrot.slane %v37_v40, 5  ;;  %v1484_v32 = vrot.slane %v37_v40, 6  ;;  %v1485_v33 = vrot.slane %v37_v40, 7 }
  0xb1   :  { %5518 = vst [vmem:[#allocation6_spill] sm:$0xff] %v2692_v25  ;;  %v2703_v34 = vmul.f32 %v2606_v10, %v2583_v48 }
  0xb2   :  { %v2608_v11 = vpop.f32.mrf.mxu0  ;;  %v325_v12 = vpop.f32.mrf.mxu2  ;;  %5520 = vst [vmem:[#allocation8_spill] sm:$0xff] %v2699_v29  ;;  %v2741_v25 = vperm.slane %v1483_v30, 0 }
  0xb3   :  { %v2618_v18 = vpop.f32.mrf.mxu1  ;;  %v534_v19 = vpop.f32.mrf.mxu3  ;;  %5521 = vst [vmem:[#allocation9_spill] sm:$0xff] %v2703_v34  ;;  %v2725_v34 = vmul.f32 %v2620_v21, %v2583_v48 }
  0xb4   :  { %v2624_v23 = vadd.f32 %v534_v19, %v325_v12  ;;  %v2681_v12 = vmul.f32 %v2591_v3, %v439_v38  ;;  %v151_v19 = vld [vmem:[#allocation2 + $0x330] sm:$0xff] }
  0xb5   :  { %279 = vmatmul.f32.gmra.mxu0 %v85_v13  ;;  %5526 = vst [vmem:[#allocation14_spill] sm:$0xff] %v2725_v34  ;;  %v2743_v34 = vperm.slane %v1484_v32, 0 }
  0xb6   :  { %488 = vmatmul.f32.gmra.mxu1 %v86_v20  ;;  %v2686_v20 = vmul.f32 %v2593_v4, %v439_v38 }
  0xb7   :  { %375 = vmatmul.f32.gmra.mxu2 %v149_v24  ;;  %584 = vmatmul.f32.gmra.mxu3 %v150_v27  ;;  %v2689_v24 = vmul.f32 %v2595_v5, %v439_v38  ;;  %v2695_v27 = vmul.f32 %v2602_v8, %v439_v38  ;;  %v2711_v38 = vmul.f32 %v2612_v15, %v2583_v48 }
  0xb9   :  { %5517 = vst [vmem:[#allocation5_spill] sm:$0xff] %v2689_v24  ;;  %v153_v24 = vld [vmem:[#allocation2 + $0x340] sm:$0xff] }
  0xba   :  { %v235_v49 = vpop.f32.mrf.mxu0  ;;  %v328_v50 = vpop.f32.mrf.mxu2  ;;  %5519 = vst [vmem:[#allocation7_spill] sm:$0xff] %v2695_v27  ;;  %v2739_v27 = vperm.slane %v1482_v1, 0  ;;  %v90_v1 = vld [vmem:[#allocation2 + $0x148] sm:$0xff] }
  0xbb   :  { %v444_v58 = vpop.f32.mrf.mxu1  ;;  %v537_v59 = vpop.f32.mrf.mxu3  ;;  %5523 = vst [vmem:[#allocation11_spill] sm:$0xff] %v2711_v38  ;;  %v2731_v38 = vperm.slane %v37_v40, 0 }
  0xbc   :  { %v2683_v13 = vadd.f32 %v537_v59, %v328_v50  ;;  %v2707_v50 = vmul.f32 %v2610_v14, %v2583_v48  ;;  %v2717_v59 = vmul.f32 %v2614_v16, %v2583_v48 }
  0xbd   :  { %282 = vmatmul.f32.gmra.mxu0 %v87_v51  ;;  %v442_v51 = vadd.f32 %v2618_v18, %v2608_v11  ;;  %v2733_v11 = vperm.slane %v1479_v55, 0  ;;  %v2735_v18 = vperm.slane %v1480_v61, 0 }
  0xbe   :  { %491 = vmatmul.f32.gmra.mxu1 %v88_v60  ;;  %5522 = vst [vmem:[#allocation10_spill] sm:$0xff] %v2707_v50  ;;  %v2721_v60 = vmul.f32 %v2616_v17, %v2583_v48  ;;  %v2729_v50 = vmul.f32 %v2622_v22, %v2583_v48  ;;  %v2745_v48 = vperm.slane %v1485_v33, 0 }
  0xbf   :  { %378 = vmatmul.f32.gmra.mxu2 %v151_v19  ;;  %5524 = vst [vmem:[#allocation12_spill] sm:$0xff] %v2717_v59  ;;  %587 = vmatmul.f32.gmra.mxu3 %v152_v28  ;;  %v2737_v19 = vperm.slane %v1481_v0, 0  ;;  %v2748_v40 = vmul.f32 %v2585_v56, %v442_v51  ;;  %v2751_v55 = vmul.f32 %v2587_v62, %v442_v51 }
  0xc0   :  { %5525 = vst [vmem:[#allocation13_spill] sm:$0xff] %v2721_v60  ;;  %v89_v60 = vld [vmem:[#allocation2 + $0x140] sm:$0xff]  ;;  %v2754_v61 = vmul.f32 %v2589_v63, %v442_v51  ;;  %v445_v0 = vadd.f32 %v444_v58, %v235_v49  ;;  %v2757_v30 = vmul.f32 %v2591_v3, %v442_v51  ;;  %v2760_v32 = vmul.f32 %v2593_v4, %v442_v51 }
  0xc1   :  { %5527 = vst [vmem:[#allocation15_spill] sm:$0xff] %v2729_v50  ;;  %v2763_v33 = vmul.f32 %v2595_v5, %v442_v51  ;;  %v2771_v49 = vmul.f32 %v2602_v8, %v442_v51  ;;  %v2775_v58 = vmul.f32 %v2604_v9, %v2624_v23 }
  0xc2   :  { %v238_v59 = vpop.f32.mrf.mxu0  ;;  %v331_v29 = vpop.f32.mrf.mxu2  ;;  %5528 = vst [vmem:[#allocation16_spill] sm:$0xff] %v2748_v40 }
  0xc3   :  { %5529 = vst [vmem:[#allocation17_spill] sm:$0xff] %v2751_v55  ;;  %v447_v28 = vpop.f32.mrf.mxu1  ;;  %v540_v50 = vpop.f32.mrf.mxu3  ;;  %v2768_v55 = vmul.f32 %v2600_v7, %v442_v51  ;;  %v2791_v51 = vmul.f32 %v2614_v16, %v2624_v23 }
  0xc4   :  { %5530 = vst [vmem:[#allocation18_spill] sm:$0xff] %v2757_v30  ;;  %v2765_v40 = vadd.f32 %v540_v50, %v331_v29  ;;  %v2779_v30 = vmul.f32 %v2606_v10, %v2624_v23  ;;  %v2783_v29 = vmul.f32 %v2610_v14, %v2624_v23  ;;  %v2787_v50 = vmul.f32 %v2612_v15, %v2624_v23 }
  0xc5   :  { %5531 = vst [vmem:[#allocation19_spill] sm:$0xff] %v2760_v32  ;;  %285 = vmatmul.f32.gmra.mxu0 %v89_v60  ;;  %v154_v32 = vld [vmem:[#allocation2 + $0x348] sm:$0xff]  ;;  %v2799_v60 = vmul.f32 %v2620_v21, %v2624_v23 }
  0xc6   :  { %5532 = vst [vmem:[#allocation20_spill] sm:$0xff] %v2763_v33  ;;  %494 = vmatmul.f32.gmra.mxu1 %v90_v1  ;;  %v2815_v1 = vmul.f32 %v2591_v3, %v445_v0  ;;  %v2834_v3 = vmul.f32 %v2604_v9, %v2683_v13 }
  0xc7   :  { %5533 = vst [vmem:[#allocation21_spill] sm:$0xff] %v2768_v55  ;;  %381 = vmatmul.f32.gmra.mxu2 %v153_v24  ;;  %590 = vmatmul.f32.gmra.mxu3 %v154_v32  ;;  %v91_v32 = vld [vmem:[#allocation2 + $0x150] sm:$0xff] }
  0xc8   :  { %5534 = vst [vmem:[#allocation22_spill] sm:$0xff] %v2771_v49  ;;  %v159_v55 = vld [vmem:[#allocation2 + $0x370] sm:$0xff] }
  0xc9   :  { %5535 = vst [vmem:[#allocation23_spill] sm:$0xff] %v2775_v58  ;;  %v2795_v58 = vmul.f32 %v2616_v17, %v2624_v23 }
  0xca   :  { %5536 = vst [vmem:[#allocation24_spill] sm:$0xff] %v2779_v30  ;;  %v2806_v30 = vmul.f32 %v2585_v56, %v445_v0  ;;  %v42_v56 = vld [vmem:[%s5460_s2 + $0x8] sm:$0xff]  ;;  %v241_v24 = vpop.f32.mrf.mxu0 }
  0xcb   :  { %5537 = vst [vmem:[#allocation25_spill] sm:$0xff] %v2783_v29  ;;  %v2803_v29 = vmul.f32 %v2622_v22, %v2624_v23  ;;  %v2842_v23 = vmul.f32 %v2610_v14, %v2683_v13 }
  0xcc   :  { %5538 = vst [vmem:[#allocation26_spill] sm:$0xff] %v2787_v50  ;;  %v2809_v50 = vmul.f32 %v2587_v62, %v445_v0  ;;  %v2827_v62 = vmul.f32 %v2600_v7, %v445_v0  ;;  %v2846_v7 = vmul.f32 %v2612_v15, %v2683_v13 }
  0xcd   :  { %5539 = vst [vmem:[#allocation27_spill] sm:$0xff] %v2791_v51  ;;  %v2812_v51 = vmul.f32 %v2589_v63, %v445_v0  ;;  %v2830_v63 = vmul.f32 %v2602_v8, %v445_v0  ;;  %v2850_v8 = vmul.f32 %v2614_v16, %v2683_v13  ;;  %288 = vmatmul.f32.gmra.mxu0 %v91_v32 }
  0xce   :  { %5540 = vst [vmem:[#allocation28_spill] sm:$0xff] %v2795_v58  ;;  %v2818_v58 = vmul.f32 %v2593_v4, %v445_v0  ;;  %v448_v4 = vadd.f32 %v447_v28, %v238_v59  ;;  %v2854_v59 = vmul.f32 %v2616_v17, %v2683_v13  ;;  %v2858_v28 = vmul.f32 %v2620_v21, %v2683_v13 }
  0xcf   :  { %5541 = vst [vmem:[#allocation29_spill] sm:$0xff] %v2799_v60  ;;  %v2821_v60 = vmul.f32 %v2595_v5, %v445_v0  ;;  %v2838_v5 = vmul.f32 %v2606_v10, %v2683_v13  ;;  %v334_v0 = vpop.f32.mrf.mxu2 }
  0xd0   :  { %5542 = vst [vmem:[#allocation30_spill] sm:$0xff] %v2803_v29  ;;  %v863_v29 = vrot.slane %v42_v56, 1  ;;  %v2888_v32 = vmul.f32 %v2669_v54, %v448_v4 }
  0xd1   :  { %5543 = vst [vmem:[#allocation31_spill] sm:$0xff] %v2806_v30 }
  0xd2   :  { %5544 = vst [vmem:[#allocation32_spill] sm:$0xff] %v2809_v50  ;;  %v2882_v50 = vmul.f32 %v2665_v52, %v448_v4 }
  0xd3   :  { %5545 = vst [vmem:[#allocation33_spill] sm:$0xff] %v2812_v51  ;;  %v2873_v51 = vmul.f32 %v2659_v39, %v448_v4 }
  0xd4   :  { %5546 = vst [vmem:[#allocation34_spill] sm:$0xff] %v2815_v1  ;;  %v2870_v1 = vmul.f32 %v2657_v46, %v448_v4 }
  0xd5   :  { %5547 = vst [vmem:[#allocation35_spill] sm:$0xff] %v2818_v58  ;;  %v866_v58 = vrot.slane %v42_v56, 4 }
  0xd6   :  { %5548 = vst [vmem:[#allocation36_spill] sm:$0xff] %v2821_v60  ;;  %v865_v60 = vrot.slane %v42_v56, 3 }
  0xd7   :  { %5549 = vst [vmem:[#allocation37_spill] sm:$0xff] %v2827_v62  ;;  %v864_v62 = vrot.slane %v42_v56, 2 }
  0xd8   :  { %5550 = vst [vmem:[#allocation38_spill] sm:$0xff] %v2830_v63  ;;  %v155_v63 = vld [vmem:[#allocation2 + $0x350] sm:$0xff] }
  0xd9   :  { %5551 = vst [vmem:[#allocation39_spill] sm:$0xff] %v2834_v3  ;;  %v92_v3 = vld [vmem:[#allocation2 + $0x158] sm:$0xff]  ;;  %384 = vmatmul.f32.gmra.mxu2 %v155_v63  ;;  %v2912_v63 = vmul.f32 %v2616_v17, %v2765_v40 }
  0xda   :  { %5552 = vst [vmem:[#allocation40_spill] sm:$0xff] %v2838_v5  ;;  %v543_v5 = vpop.f32.mrf.mxu3  ;;  %497 = vmatmul.f32.gmra.mxu1 %v92_v3  ;;  %v2904_v3 = vmul.f32 %v2612_v15, %v2765_v40  ;;  %v244_v15 = vpop.f32.mrf.mxu0 }
  0xdb   :  { %5553 = vst [vmem:[#allocation41_spill] sm:$0xff] %v2842_v23  ;;  %v2862_v23 = vmul.f32 %v2622_v22, %v2683_v13  ;;  %v867_v13 = vrot.slane %v42_v56, 5 }
  0xdc   :  { %5554 = vst [vmem:[#allocation42_spill] sm:$0xff] %v2846_v7  ;;  %v450_v7 = vpop.f32.mrf.mxu1 }
  0xdd   :  { %5555 = vst [vmem:[#allocation43_spill] sm:$0xff] %v2850_v8  ;;  %v2864_v8 = vadd.f32 %v543_v5, %v334_v0  ;;  %v2876_v5 = vmul.f32 %v2661_v42, %v448_v4  ;;  %v2879_v0 = vmul.f32 %v2663_v47, %v448_v4 }
  0xde   :  { %5556 = vst [vmem:[#allocation44_spill] sm:$0xff] %v2854_v59  ;;  %v2867_v59 = vmul.f32 %v2655_v45, %v448_v4 }
  0xdf   :  { %5557 = vst [vmem:[#allocation45_spill] sm:$0xff] %v2858_v28  ;;  %v156_v28 = vld [vmem:[#allocation2 + $0x358] sm:$0xff] }
  0xe0   :  { %5558 = vst [vmem:[#allocation46_spill] sm:$0xff] %v2862_v23  ;;  %v868_v23 = vrot.slane %v42_v56, 6  ;;  %593 = vmatmul.f32.gmra.mxu3 %v156_v28  ;;  %v2924_v28 = vperm.slane %v863_v29, 0  ;;  %v2941_v29 = vld [vmem:[%s5460_s2 + $0x28] sm:$0xff] }
  0xe1   :  { %5559 = vst [vmem:[#allocation47_spill] sm:$0xff] %v2867_v59  ;;  %v2885_v59 = vmul.f32 %v2667_v53, %v448_v4  ;;  %v451_v4 = vadd.f32 %v450_v7, %v241_v24  ;;  %v93_v7 = vld [vmem:[#allocation2 + $0x160] sm:$0xff]  ;;  %v2922_v24 = vperm.slane %v42_v56, 0 }
  0xe2   :  { %5560 = vst [vmem:[#allocation48_spill] sm:$0xff] %v2870_v1  ;;  %v2892_v1 = vmul.f32 %v2604_v9, %v2765_v40  ;;  %v2908_v9 = vmul.f32 %v2614_v16, %v2765_v40  ;;  %v2926_v16 = vperm.slane %v864_v62, 0  ;;  %291 = vmatmul.f32.gmra.mxu0 %v93_v7  ;;  %v1571_v7 = vrot.slane %v2941_v29, 5 }
  0xe3   :  { %5561 = vst [vmem:[#allocation49_spill] sm:$0xff] %v2873_v51  ;;  %v869_v51 = vrot.slane %v42_v56, 7  ;;  %v2944_v56 = vmul.f32 %v2655_v45, %v451_v4 }
  0xe4   :  { %5562 = vst [vmem:[#allocation50_spill] sm:$0xff] %v2876_v5  ;;  %v2896_v5 = vmul.f32 %v2606_v10, %v2765_v40  ;;  %v2916_v10 = vmul.f32 %v2620_v21, %v2765_v40  ;;  %v453_v17 = vpop.f32.mrf.mxu1  ;;  %v2930_v21 = vperm.slane %v866_v58, 0  ;;  %v2950_v58 = vmul.f32 %v2659_v39, %v451_v4 }
  0xe5   :  { %5563 = vst [vmem:[#allocation51_spill] sm:$0xff] %v2879_v0  ;;  %v96_v0 = vld [vmem:[#allocation2 + $0x178] sm:$0xff] }
  0xe6   :  { %5564 = vst [vmem:[#allocation52_spill] sm:$0xff] %v2882_v50  ;;  %v2900_v50 = vmul.f32 %v2610_v14, %v2765_v40  ;;  %v2920_v14 = vmul.f32 %v2622_v22, %v2765_v40  ;;  %v2934_v22 = vperm.slane %v868_v23, 0  ;;  %v2936_v40 = vperm.slane %v869_v51, 0  ;;  %v157_v23 = vld [vmem:[#allocation2 + $0x360] sm:$0xff] }
  0xe7   :  { %5565 = vst [vmem:[#allocation53_spill] sm:$0xff] %v2885_v59  ;;  %v2955_v51 = vmul.f32 %v2661_v42, %v451_v4  ;;  %387 = vmatmul.f32.gmra.mxu2 %v157_v23  ;;  %v454_v23 = vadd.f32 %v453_v17, %v244_v15  ;;  %v95_v15 = vld [vmem:[#allocation2 + $0x170] sm:$0xff]  ;;  %v3009_v17 = vperm.slane %v2941_v29, 0 }
  0xe8   :  { %5566 = vst [vmem:[#allocation54_spill] sm:$0xff] %v2888_v32 }
  0xe9   :  { %5567 = vst [vmem:[#allocation55_spill] sm:$0xff] %v2892_v1  ;;  %v158_v1 = vld [vmem:[#allocation2 + $0x368] sm:$0xff]  ;;  %v3024_v49 = vmul.f32 %v2655_v45, %v454_v23  ;;  %v3030_v33 = vmul.f32 %v2659_v39, %v454_v23 }
  0xea   :  { %5568 = vst [vmem:[#allocation56_spill] sm:$0xff] %v2896_v5  ;;  %v2964_v5 = vmul.f32 %v2667_v53, %v451_v4  ;;  %596 = vmatmul.f32.gmra.mxu3 %v158_v1  ;;  %v1573_v1 = vrot.slane %v2941_v29, 7  ;;  %294 = vmatmul.f32.gmra.mxu0 %v95_v15 }
  0xeb   :  { %5569 = vst [vmem:[#allocation57_spill] sm:$0xff] %v2900_v50  ;;  %v94_v50 = vld [vmem:[#allocation2 + $0x168] sm:$0xff] }
  0xec   :  { %5570 = vst [vmem:[#allocation58_spill] sm:$0xff] %v2904_v3  ;;  %v337_v3 = vpop.f32.mrf.mxu2  ;;  %500 = vmatmul.f32.gmra.mxu1 %v94_v50  ;;  %v2985_v50 = vmul.f32 %v2735_v18, %v2864_v8 }
  0xed   :  { %5571 = vst [vmem:[#allocation59_spill] sm:$0xff] %v2908_v9  ;;  %v2928_v9 = vperm.slane %v865_v60, 0  ;;  %v2947_v60 = vmul.f32 %v2657_v46, %v451_v4 }
  0xee   :  { %5572 = vst [vmem:[#allocation60_spill] sm:$0xff] %v2912_v63  ;;  %v546_v63 = vpop.f32.mrf.mxu3 }
  0xef   :  { %5573 = vst [vmem:[#allocation61_spill] sm:$0xff] %v2916_v10  ;;  %v2932_v10 = vperm.slane %v867_v13, 0  ;;  %v2952_v62 = vadd.f32 %v546_v63, %v337_v3  ;;  %v2958_v13 = vmul.f32 %v2663_v47, %v451_v4  ;;  %v2971_v3 = vmul.f32 %v2731_v38, %v2864_v8  ;;  %390 = vmatmul.f32.gmra.mxu2 %v159_v55 }
  0xf0   :  { %5574 = vst [vmem:[#allocation62_spill] sm:$0xff] %v2920_v14  ;;  %v2961_v14 = vmul.f32 %v2665_v52, %v451_v4  ;;  %v1567_v63 = vrot.slane %v2941_v29, 1 }
  0xf1   :  { %5575 = vst [vmem:[#allocation63_spill] sm:$0xff] %v2944_v56  ;;  %v247_v56 = vpop.f32.mrf.mxu0  ;;  %v3061_v15 = vmul.f32 %v2737_v19, %v2952_v62 }
  0xf2   :  { %5576 = vst [vmem:[#allocation64_spill] sm:$0xff] %v2947_v60  ;;  %v2967_v60 = vmul.f32 %v2669_v54, %v451_v4  ;;  %v2981_v4 = vmul.f32 %v2733_v11, %v2864_v8 }
  0xf3   :  { %5577 = vst [vmem:[#allocation65_spill] sm:$0xff] %v2950_v58  ;;  %v2997_v58 = vmul.f32 %v2741_v25, %v2864_v8 }
  0xf4   :  { %5578 = vst [vmem:[#allocation66_spill] sm:$0xff] %v2955_v51  ;;  %v1570_v51 = vrot.slane %v2941_v29, 4  ;;  %503 = vmatmul.f32.gmra.mxu1 %v96_v0  ;;  %v3073_v0 = vmul.f32 %v2743_v34, %v2952_v62 }
  0xf5   :  { %5579 = vst [vmem:[#allocation67_spill] sm:$0xff] %v2958_v13  ;;  %v1568_v13 = vrot.slane %v2941_v29, 2 }
  0xf6   :  { %5580 = vst [vmem:[#allocation68_spill] sm:$0xff] %v2961_v14  ;;  %v1569_v14 = vrot.slane %v2941_v29, 3  ;;  %v549_v59 = vpop.f32.mrf.mxu3  ;;  %v3017_v30 = vperm.slane %v1570_v51, 0  ;;  %v3036_v51 = vmul.f32 %v2663_v47, %v454_v23 }
  0xf7   :  { %5581 = vst [vmem:[#allocation69_spill] sm:$0xff] %v2964_v5  ;;  %v1572_v5 = vrot.slane %v2941_v29, 6  ;;  %v3013_v32 = vperm.slane %v1568_v13, 0  ;;  %v3027_v29 = vmul.f32 %v2657_v46, %v454_v23 }
  0xf8   :  { %5582 = vst [vmem:[#allocation70_spill] sm:$0xff] %v2967_v60  ;;  %v2993_v60 = vmul.f32 %v2739_v27, %v2864_v8 }
  0xf9   :  { %5583 = vst [vmem:[#allocation71_spill] sm:$0xff] %v2971_v3  ;;  %v2989_v3 = vmul.f32 %v2737_v19, %v2864_v8 }
  0xfa   :  { %5584 = vst [vmem:[#allocation72_spill] sm:$0xff] %v2981_v4  ;;  %v3001_v4 = vmul.f32 %v2743_v34, %v2864_v8 }
  0xfb   :  { %5585 = vst [vmem:[#allocation73_spill] sm:$0xff] %v2985_v50  ;;  %v3005_v50 = vmul.f32 %v2745_v48, %v2864_v8  ;;  %v3019_v8 = vperm.slane %v1571_v7, 0  ;;  %v160_v7 = vld [vmem:[#allocation2 + $0x378] sm:$0xff] }
  0xfc   :  { %5586 = vst [vmem:[#allocation74_spill] sm:$0xff] %v2989_v3  ;;  %v340_v3 = vpop.f32.mrf.mxu2  ;;  %599 = vmatmul.f32.gmra.mxu3 %v160_v7 }
  0xfd   :  { %5587 = vst [vmem:[#allocation75_spill] sm:$0xff] %v2993_v60  ;;  %v3011_v60 = vperm.slane %v1567_v63, 0  ;;  %v550_v13 = vadd.f32 %v549_v59, %v340_v3  ;;  %v3045_v59 = vmul.f32 %v2669_v54, %v454_v23  ;;  %v3057_v3 = vmul.f32 %v2735_v18, %v2952_v62 }
  0xfe   :  { %5588 = vst [vmem:[#allocation76_spill] sm:$0xff] %v2997_v58  ;;  %v456_v58 = vpop.f32.mrf.mxu1 }
  0xff   :  { %5589 = vst [vmem:[#allocation77_spill] sm:$0xff] %v3001_v4  ;;  %v3015_v4 = vperm.slane %v1569_v14, 0  ;;  %v457_v63 = vadd.f32 %v456_v58, %v247_v56  ;;  %v3033_v14 = vmul.f32 %v2661_v42, %v454_v23  ;;  %v3049_v56 = vmul.f32 %v2731_v38, %v2952_v62 }
 0x100   :  { %5590 = vst [vmem:[#allocation78_spill] sm:$0xff] %v3005_v50  ;;  %v3021_v50 = vperm.slane %v1572_v5, 0  ;;  %v3039_v5 = vmul.f32 %v2665_v52, %v454_v23  ;;  %v3053_v58 = vmul.f32 %v2733_v11, %v2952_v62 }
 0x101   :  { %5591 = vst [vmem:[#allocation79_spill] sm:$0xff] %v3024_v49  ;;  %v3042_v49 = vmul.f32 %v2667_v53, %v454_v23  ;;  %v3065_v23 = vmul.f32 %v2739_v27, %v2952_v62  ;;  %v3091_v55 = vmul.f32 %v2661_v42, %v457_v63  ;;  %v3109_v42 = vmul.f32 %v2733_v11, %v550_v13 }
 0x102   :  { %5592 = vst [vmem:[#allocation80_spill] sm:$0xff] %v3036_v51 }
 0x103   :  { %5593 = vst [vmem:[#allocation81_spill] sm:$0xff] %v3039_v5 }
 0x104   :  { %5594 = vst [vmem:[#allocation82_spill] sm:$0xff] %v3042_v49  ;;  %v343_v7 = vpop.f32.mrf.mxu2 }
 0x105   :  { %5595 = vst [vmem:[#allocation83_spill] sm:$0xff] %v3045_v59 }
 0x106   :  { %5596 = vst [vmem:[#allocation84_spill] sm:$0xff] %v3049_v56  ;;  %v3069_v56 = vmul.f32 %v2741_v25, %v2952_v62 }
 0x107   :  { %5597 = vst [vmem:[#allocation85_spill] sm:$0xff] %v3053_v58  ;;  %v3080_v58 = vmul.f32 %v2655_v45, %v457_v63  ;;  %v3100_v45 = vmul.f32 %v2667_v53, %v457_v63  ;;  %v3118_v53 = vmul.f32 %v2739_v27, %v550_v13 }
 0x108   :  { %5598 = vst [vmem:[#allocation86_spill] sm:$0xff] %v3057_v3  ;;  %v3077_v3 = vmul.f32 %v2745_v48, %v2952_v62  ;;  %v3097_v62 = vmul.f32 %v2665_v52, %v457_v63  ;;  %v3115_v52 = vmul.f32 %v2737_v19, %v550_v13 }
 0x109   :  { %5599 = vst [vmem:[#allocation87_spill] sm:$0xff] %v3061_v15  ;;  %v3082_v15 = vperm.slane %v1573_v1, 0  ;;  %v3103_v1 = vmul.f32 %v2669_v54, %v457_v63  ;;  %v459_v54 = vpop.f32.mrf.mxu1 }
 0x10a   :  { %5600 = vst [vmem:[#allocation88_spill] sm:$0xff] %v3065_v23  ;;  %v3085_v23 = vmul.f32 %v2657_v46, %v457_v63  ;;  %v3106_v46 = vmul.f32 %v2731_v38, %v550_v13 }
 0x10b   :  { %5601 = vst [vmem:[#allocation89_spill] sm:$0xff] %v3069_v56  ;;  %v3088_v56 = vmul.f32 %v2659_v39, %v457_v63  ;;  %v250_v39 = vpop.f32.mrf.mxu0 }
 0x10c   :  { %5602 = vst [vmem:[#allocation90_spill] sm:$0xff] %v3073_v0  ;;  %v3094_v0 = vmul.f32 %v2663_v47, %v457_v63  ;;  %v3112_v47 = vmul.f32 %v2735_v18, %v550_v13  ;;  %v552_v63 = vpop.f32.mrf.mxu3 }
 0x10d   :  { %5603 = vst [vmem:[#allocation91_spill] sm:$0xff] %v3077_v3  ;;  %v97_v3 = vld [vmem:[#allocation2 + $0x180] sm:$0xff] }
 0x10e   :  { %5604 = vst [vmem:[#allocation92_spill] sm:$0xff] %v3080_v58  ;;  %297 = vmatmul.f32.gmra.mxu0 %v97_v3 }
 0x10f   :  { %5605 = vst [vmem:[#allocation93_spill] sm:$0xff] %v3085_v23 }
 0x110   :  { %5606 = vst [vmem:[#allocation94_spill] sm:$0xff] %v3088_v56 }
 0x111   :  { %5607 = vst [vmem:[#allocation95_spill] sm:$0xff] %v3091_v55 }
 0x112   :  { %5608 = vst [vmem:[#allocation96_spill] sm:$0xff] %v3094_v0  ;;  %v3132_v0 = vmul.f32 %v2745_v48, %v550_v13 }
 0x113   :  { %5609 = vst [vmem:[#allocation97_spill] sm:$0xff] %v3097_v62  ;;  %v553_v62 = vadd.f32 %v552_v63, %v343_v7 }
 0x114   :  { %5610 = vst [vmem:[#allocation98_spill] sm:$0xff] %v3100_v45  ;;  %v3126_v45 = vmul.f32 %v2741_v25, %v550_v13 }
 0x115   :  { %5611 = vst [vmem:[#allocation99_spill] sm:$0xff] %v3103_v1  ;;  %v98_v1 = vld [vmem:[#allocation2 + $0x188] sm:$0xff] }
 0x116   :  { %5612 = vst [vmem:[#allocation100_spill] sm:$0xff] %v3106_v46  ;;  %v3123_v46 = vld [vmem:[%s5459_s1 + $0x8] sm:$0xff]  ;;  %506 = vmatmul.f32.gmra.mxu1 %v98_v1 }
 0x117   :  { %5613 = vst [vmem:[#allocation101_spill] sm:$0xff] %v3109_v42  ;;  %v3129_v42 = vmul.f32 %v2743_v34, %v550_v13  ;;  %v951_v55 = vrot.slane %v3123_v46, 1  ;;  %v952_v56 = vrot.slane %v3123_v46, 2  ;;  %v953_v23 = vrot.slane %v3123_v46, 3 }
 0x118   :  { %5614 = vst [vmem:[#allocation102_spill] sm:$0xff] %v3112_v47  ;;  %v460_v47 = vadd.f32 %v459_v54, %v250_v39 }
 0x119   :  { %5615 = vst [vmem:[#allocation103_spill] sm:$0xff] %v3115_v52  ;;  %v161_v52 = vld [vmem:[#allocation2 + $0x380] sm:$0xff]  ;;  %v3200_v49 = vperm.slane %v951_v55, 0  ;;  %v3215_v59 = vperm.slane %v953_v23, 0 }
 0x11a   :  { %5616 = vst [vmem:[#allocation104_spill] sm:$0xff] %v3118_v53  ;;  %v162_v53 = vld [vmem:[#allocation2 + $0x388] sm:$0xff]  ;;  %v886_v58 = vmul.f32 %v2922_v24, %v460_v47  ;;  %v898_v39 = vmul.f32 %v2928_v9, %v460_v47  ;;  %v902_v13 = vmul.f32 %v2930_v21, %v460_v47  ;;  %v906_v3 = vmul.f32 %v2932_v10, %v460_v47 }
 0x11b   :  { %5617 = vst [vmem:[#allocation105_spill] sm:$0xff] %v3126_v45  ;;  %v890_v45 = vmul.f32 %v2924_v28, %v460_v47  ;;  %v910_v7 = vmul.f32 %v2934_v22, %v460_v47  ;;  %v914_v54 = vmul.f32 %v2936_v40, %v460_v47  ;;  %393 = vmatmul.f32.gmra.mxu2 %v161_v52 }
 0x11c   :  { %5618 = vst [vmem:[#allocation106_spill] sm:$0xff] %v3129_v42  ;;  %v894_v42 = vmul.f32 %v2926_v16, %v460_v47  ;;  %v3146_v63 = vadd.f32 %v886_v58, %v2627_v26  ;;  %602 = vmatmul.f32.gmra.mxu3 %v162_v53  ;;  %v3158_v51 = vadd.f32 %v898_v39, %v2636_v36  ;;  %v555_v53 = vpop.f32.mrf.mxu3  ;;  %v100_v39 = vld [vmem:[#allocation2 + $0x198] sm:$0xff] }
 0x11d   :  { %5619 = vst [vmem:[#allocation107_spill] sm:$0xff] %v3132_v0  ;;  %v954_v0 = vrot.slane %v3123_v46, 4  ;;  %v3152_v1 = vadd.f32 %v890_v45, %v2630_v31  ;;  %v3161_v47 = vadd.f32 %v902_v13, %v2639_v37  ;;  %v3164_v26 = vadd.f32 %v906_v3, %v2647_v41  ;;  %v346_v45 = vpop.f32.mrf.mxu2 }
 0x11e   :  { %v3155_v5 = vadd.f32 %v894_v42, %v2633_v35  ;;  %v3167_v58 = vadd.f32 %v910_v7, %v2650_v43  ;;  %v3170_v52 = vadd.f32 %v914_v54, %v2653_v44  ;;  %v3173_v31 = vmul.f32 %v2731_v38, %v553_v62  ;;  %v253_v35 = vpop.f32.mrf.mxu0  ;;  %v99_v42 = vld [vmem:[#allocation2 + $0x190] sm:$0xff]  ;;  %v462_v44 = vpop.f32.mrf.mxu1  ;;  %509 = vmatmul.f32.gmra.mxu1 %v100_v39 }
 0x11f   :  { %v3176_v36 = vmul.f32 %v2733_v11, %v553_v62  ;;  %v3179_v37 = vmul.f32 %v2735_v18, %v553_v62  ;;  %v3182_v41 = vmul.f32 %v2737_v19, %v553_v62  ;;  %v3185_v43 = vmul.f32 %v2739_v27, %v553_v62  ;;  %v163_v7 = vld [vmem:[#allocation2 + $0x390] sm:$0xff]  ;;  %300 = vmatmul.f32.gmra.mxu0 %v99_v42  ;;  %v164_v19 = vld [vmem:[#allocation2 + $0x398] sm:$0xff] }
 0x120   :  { %5620 = vst [vmem:[#allocation108_spill] sm:$0xff] %v3173_v31  ;;  %v3188_v38 = vmul.f32 %v2741_v25, %v553_v62  ;;  %v3191_v13 = vmul.f32 %v2743_v34, %v553_v62  ;;  %v463_v11 = vadd.f32 %v462_v44, %v253_v35  ;;  %v556_v3 = vadd.f32 %v555_v53, %v346_v45 }
 0x121   :  { %5621 = vst [vmem:[#allocation109_spill] sm:$0xff] %v3176_v36  ;;  %v3194_v18 = vmul.f32 %v2745_v48, %v553_v62  ;;  %v957_v27 = vrot.slane %v3123_v46, 7  ;;  %v3198_v54 = vperm.slane %v3123_v46, 0  ;;  %v3213_v53 = vperm.slane %v952_v56, 0  ;;  %v5630_v56 = vld [vmem:[#allocation6_spill] sm:$0xff] }
 0x122   :  { %5622 = vst [vmem:[#allocation110_spill] sm:$0xff] %v3179_v37  ;;  %v887_v25 = vmul.f32 %v2922_v24, %v463_v11  ;;  %v891_v34 = vmul.f32 %v2924_v28, %v463_v11  ;;  %v895_v35 = vmul.f32 %v2926_v16, %v463_v11  ;;  %v899_v45 = vmul.f32 %v2928_v9, %v463_v11  ;;  %v166_v37 = vld [vmem:[#allocation2 + $0x3a8] sm:$0xff] }
 0x123   :  { %5623 = vst [vmem:[#allocation111_spill] sm:$0xff] %v3182_v41  ;;  %v903_v48 = vmul.f32 %v2930_v21, %v463_v11  ;;  %v907_v62 = vmul.f32 %v2932_v10, %v463_v11  ;;  %v911_v42 = vmul.f32 %v2934_v22, %v463_v11  ;;  %v915_v44 = vmul.f32 %v2936_v40, %v463_v11 }
 0x124   :  { %5624 = vst [vmem:[#allocation112_spill] sm:$0xff] %v3185_v43  ;;  %396 = vmatmul.f32.gmra.mxu2 %v163_v7  ;;  %v3211_v55 = vadd.f32 %v887_v25, %v2672_v57  ;;  %605 = vmatmul.f32.gmra.mxu3 %v164_v19  ;;  %v3220_v39 = vadd.f32 %v891_v34, %v2675_v2  ;;  %v5628_v57 = vld [vmem:[#allocation5_spill] sm:$0xff]  ;;  %v5642_v36 = vrot.slane %v3123_v46, 5 }
 0x125   :  { %5625 = vst [vmem:[#allocation113_spill] sm:$0xff] %v3188_v38  ;;  %v3226_v38 = vadd.f32 %v899_v45, %v2681_v12  ;;  %v3229_v11 = vadd.f32 %v903_v48, %v2686_v20  ;;  %v3232_v7 = vadd.f32 %v907_v62, %v5628_v57  ;;  %v3235_v23 = vadd.f32 %v911_v42, %v5630_v56  ;;  %v349_v25 = vpop.f32.mrf.mxu2  ;;  %v101_v34 = vld [vmem:[#allocation2 + $0x1a0] sm:$0xff]  ;;  %v558_v62 = vpop.f32.mrf.mxu3  ;;  %v102_v42 = vld [vmem:[#allocation2 + $0x1a8] sm:$0xff] }
 0x126   :  { %5626 = vst [vmem:[#allocation114_spill] sm:$0xff] %v3191_v13  ;;  %v3223_v13 = vadd.f32 %v895_v35, %v2678_v6  ;;  %v3241_v2 = vmul.f32 %v3009_v17, %v556_v3  ;;  %v256_v6 = vpop.f32.mrf.mxu0  ;;  %v3244_v12 = vmul.f32 %v3011_v60, %v556_v3  ;;  %v3247_v20 = vmul.f32 %v3013_v32, %v556_v3  ;;  %v465_v48 = vpop.f32.mrf.mxu1  ;;  %v165_v43 = vld [vmem:[#allocation2 + $0x3a0] sm:$0xff] }
 0x127   :  { %5627 = vst [vmem:[#allocation115_spill] sm:$0xff] %v3194_v18  ;;  %v3217_v18 = vperm.slane %v954_v0, 0  ;;  %v5632_v0 = vld [vmem:[#allocation7_spill] sm:$0xff]  ;;  %v3250_v35 = vmul.f32 %v3015_v4, %v556_v3  ;;  %v3253_v45 = vmul.f32 %v3017_v30, %v556_v3  ;;  %v3259_v57 = vmul.f32 %v3021_v50, %v556_v3  ;;  %303 = vmatmul.f32.gmra.mxu0 %v101_v34 }
 0x128   :  { %5629 = vst [vmem:[#allocation5_spill] sm:$0xff] %v3232_v7  ;;  %v3238_v19 = vadd.f32 %v915_v44, %v5632_v0  ;;  %v3256_v44 = vmul.f32 %v3019_v8, %v556_v3  ;;  %v466_v56 = vadd.f32 %v465_v48, %v256_v6  ;;  %v559_v0 = vadd.f32 %v558_v62, %v349_v25  ;;  %v3277_v6 = vld [vmem:[%s5459_s1 + $0x28] sm:$0xff]  ;;  %v5644_v62 = vld [vmem:[#allocation16_spill] sm:$0xff] }
 0x129   :  { %5631 = vst [vmem:[#allocation6_spill] sm:$0xff] %v3235_v23  ;;  %v3262_v41 = vmul.f32 %v3082_v15, %v556_v3  ;;  %v3266_v31 = vperm.slane %v5642_v36, 0  ;;  %512 = vmatmul.f32.gmra.mxu1 %v102_v42  ;;  %v5646_v42 = vld [vmem:[#allocation17_spill] sm:$0xff]  ;;  %v5648_v23 = vld [vmem:[#allocation18_spill] sm:$0xff] }
 0x12a   :  { %5633 = vst [vmem:[#allocation7_spill] sm:$0xff] %v3238_v19  ;;  %v888_v3 = vmul.f32 %v2922_v24, %v466_v56  ;;  %v892_v25 = vmul.f32 %v2924_v28, %v466_v56  ;;  %v896_v34 = vmul.f32 %v2926_v16, %v466_v56  ;;  %v900_v36 = vmul.f32 %v2928_v9, %v466_v56 }
 0x12b   :  { %5634 = vst [vmem:[#allocation116_spill] sm:$0xff] %v3241_v2  ;;  %v916_v48 = vmul.f32 %v2936_v40, %v466_v56 }
 0x12c   :  { %5635 = vst [vmem:[#allocation117_spill] sm:$0xff] %v3244_v12  ;;  %399 = vmatmul.f32.gmra.mxu2 %v165_v43  ;;  %608 = vmatmul.f32.gmra.mxu3 %v166_v37  ;;  %v3294_v2 = vadd.f32 %v892_v25, %v5646_v42  ;;  %v3297_v19 = vadd.f32 %v896_v34, %v2754_v61  ;;  %v5650_v43 = vld [vmem:[#allocation19_spill] sm:$0xff] }
 0x12d   :  { %5636 = vst [vmem:[#allocation118_spill] sm:$0xff] %v3247_v20  ;;  %v3300_v7 = vadd.f32 %v900_v36, %v5648_v23  ;;  %v5656_v20 = vld [vmem:[#allocation22_spill] sm:$0xff]  ;;  %v3315_v25 = vmul.f32 %v3009_v17, %v559_v0  ;;  %v352_v34 = vpop.f32.mrf.mxu2  ;;  %v103_v42 = vld [vmem:[#allocation2 + $0x1b0] sm:$0xff]  ;;  %v3318_v23 = vmul.f32 %v3011_v60, %v559_v0  ;;  %v3321_v36 = vmul.f32 %v3013_v32, %v559_v0 }
 0x12e   :  { %5637 = vst [vmem:[#allocation119_spill] sm:$0xff] %v3250_v35  ;;  %v3312_v12 = vadd.f32 %v916_v48, %v5656_v20  ;;  %v259_v61 = vpop.f32.mrf.mxu0  ;;  %v468_v20 = vpop.f32.mrf.mxu1  ;;  %v104_v48 = vld [vmem:[#allocation2 + $0x1b8] sm:$0xff] }
 0x12f   :  { %5638 = vst [vmem:[#allocation120_spill] sm:$0xff] %v3253_v45  ;;  %v5643_v45 = vrot.slane %v3123_v46, 6  ;;  %v904_v46 = vmul.f32 %v2930_v21, %v466_v56  ;;  %306 = vmatmul.f32.gmra.mxu0 %v103_v42 }
 0x130   :  { %5639 = vst [vmem:[#allocation121_spill] sm:$0xff] %v3256_v44  ;;  %v3272_v44 = vperm.slane %v957_v27, 0  ;;  %v912_v27 = vmul.f32 %v2934_v22, %v466_v56 }
 0x131   :  { %5640 = vst [vmem:[#allocation122_spill] sm:$0xff] %v3259_v57  ;;  %v3270_v35 = vperm.slane %v5643_v45, 0  ;;  %v908_v45 = vmul.f32 %v2932_v10, %v466_v56  ;;  %v1655_v57 = vrot.slane %v3277_v6, 1  ;;  %v3303_v56 = vadd.f32 %v904_v46, %v5650_v43  ;;  %515 = vmatmul.f32.gmra.mxu1 %v104_v48 }
 0x132   :  { %5641 = vst [vmem:[#allocation123_spill] sm:$0xff] %v3262_v41  ;;  %v3288_v41 = vadd.f32 %v888_v3, %v5644_v62  ;;  %v5652_v3 = vld [vmem:[#allocation20_spill] sm:$0xff]  ;;  %v5654_v62 = vld [vmem:[#allocation21_spill] sm:$0xff]  ;;  %v3324_v46 = vmul.f32 %v3015_v4, %v559_v0  ;;  %v3330_v43 = vmul.f32 %v3019_v8, %v559_v0 }
 0x133   :  { %5647 = vst [vmem:[#allocation17_spill] sm:$0xff] %v3297_v19  ;;  %v3306_v37 = vadd.f32 %v908_v45, %v5652_v3  ;;  %v3327_v45 = vmul.f32 %v3017_v30, %v559_v0  ;;  %v3333_v3 = vmul.f32 %v3021_v50, %v559_v0 }
 0x134   :  { %5645 = vst [vmem:[#allocation16_spill] sm:$0xff] %v3288_v41  ;;  %v3309_v41 = vadd.f32 %v912_v27, %v5654_v62  ;;  %v561_v27 = vpop.f32.mrf.mxu3  ;;  %v469_v62 = vadd.f32 %v468_v20, %v259_v61 }
 0x135   :  { %5649 = vst [vmem:[#allocation18_spill] sm:$0xff] %v3300_v7  ;;  %v5695_v7 = vld [vmem:[#allocation50_spill] sm:$0xff] }
 0x136   :  { %5651 = vst [vmem:[#allocation19_spill] sm:$0xff] %v3303_v56  ;;  %v901_v61 = vmul.f32 %v2928_v9, %v469_v62  ;;  %v913_v42 = vmul.f32 %v2934_v22, %v469_v62  ;;  %v917_v20 = vmul.f32 %v2936_v40, %v469_v62  ;;  %v3356_v9 = vperm.slane %v1655_v57, 0  ;;  %v5672_v22 = vld [vmem:[#allocation34_spill] sm:$0xff] }
 0x137   :  { %5653 = vst [vmem:[#allocation20_spill] sm:$0xff] %v3306_v37  ;;  %v889_v37 = vmul.f32 %v2922_v24, %v469_v62  ;;  %v1661_v24 = vrot.slane %v3277_v6, 7  ;;  %v5680_v57 = vld [vmem:[#allocation38_spill] sm:$0xff] }
 0x138   :  { %5655 = vst [vmem:[#allocation21_spill] sm:$0xff] %v3309_v41  ;;  %v1660_v41 = vrot.slane %v3277_v6, 6  ;;  %v3365_v40 = vadd.f32 %v901_v61, %v5672_v22  ;;  %v3377_v56 = vadd.f32 %v917_v20, %v5680_v57  ;;  %v471_v20 = vpop.f32.mrf.mxu1 }
 0x139   :  { %5657 = vst [vmem:[#allocation22_spill] sm:$0xff] %v3312_v12  ;;  %v1658_v12 = vrot.slane %v3277_v6, 4 }
 0x13a   :  { %5658 = vst [vmem:[#allocation124_spill] sm:$0xff] %v3315_v25  ;;  %v167_v25 = vld [vmem:[#allocation2 + $0x3b0] sm:$0xff] }
 0x13b   :  { %5659 = vst [vmem:[#allocation125_spill] sm:$0xff] %v3318_v23  ;;  %v562_v23 = vadd.f32 %v561_v27, %v352_v34  ;;  %v909_v34 = vmul.f32 %v2932_v10, %v469_v62  ;;  %402 = vmatmul.f32.gmra.mxu2 %v167_v25  ;;  %v5666_v27 = vld [vmem:[#allocation31_spill] sm:$0xff]  ;;  %v5670_v10 = vld [vmem:[#allocation33_spill] sm:$0xff] }
 0x13c   :  { %5660 = vst [vmem:[#allocation126_spill] sm:$0xff] %v3321_v36  ;;  %v3336_v36 = vmul.f32 %v3082_v15, %v559_v0  ;;  %v905_v0 = vmul.f32 %v2930_v21, %v469_v62  ;;  %v5674_v25 = vld [vmem:[#allocation35_spill] sm:$0xff]  ;;  %v564_v22 = vpop.f32.mrf.mxu3 }
 0x13d   :  { %5661 = vst [vmem:[#allocation127_spill] sm:$0xff] %v3324_v46  ;;  %v168_v46 = vld [vmem:[#allocation2 + $0x3b8] sm:$0xff]  ;;  %v3383_v61 = vmul.f32 %v3011_v60, %v562_v23 }
 0x13e   :  { %5662 = vst [vmem:[#allocation128_spill] sm:$0xff] %v3327_v45  ;;  %v1659_v45 = vrot.slane %v3277_v6, 5  ;;  %611 = vmatmul.f32.gmra.mxu3 %v168_v46  ;;  %v5676_v46 = vld [vmem:[#allocation36_spill] sm:$0xff] }
 0x13f   :  { %5663 = vst [vmem:[#allocation129_spill] sm:$0xff] %v3330_v43  ;;  %v893_v43 = vmul.f32 %v2924_v28, %v469_v62  ;;  %v3354_v28 = vperm.slane %v3277_v6, 0 }
 0x140   :  { %5664 = vst [vmem:[#allocation130_spill] sm:$0xff] %v3333_v3  ;;  %v897_v3 = vmul.f32 %v2926_v16, %v469_v62  ;;  %v5668_v16 = vld [vmem:[#allocation32_spill] sm:$0xff]  ;;  %v3371_v62 = vadd.f32 %v909_v34, %v5676_v46  ;;  %v3389_v34 = vmul.f32 %v3015_v4, %v562_v23  ;;  %v3395_v46 = vmul.f32 %v3019_v8, %v562_v23 }
 0x141   :  { %5665 = vst [vmem:[#allocation131_spill] sm:$0xff] %v3336_v36  ;;  %v3350_v36 = vadd.f32 %v889_v37, %v5666_v27  ;;  %v3359_v21 = vadd.f32 %v893_v43, %v5668_v16  ;;  %v3368_v37 = vadd.f32 %v905_v0, %v5674_v25  ;;  %v5678_v27 = vld [vmem:[#allocation37_spill] sm:$0xff]  ;;  %v3380_v43 = vmul.f32 %v3009_v17, %v562_v23  ;;  %v355_v16 = vpop.f32.mrf.mxu2  ;;  %v106_v25 = vld [vmem:[#allocation2 + $0x1c8] sm:$0xff] }
 0x142   :  { %v3362_v48 = vadd.f32 %v897_v3, %v5670_v10  ;;  %5673 = vst [vmem:[#allocation34_spill] sm:$0xff] %v3365_v40  ;;  %v262_v3 = vpop.f32.mrf.mxu0  ;;  %v105_v10 = vld [vmem:[#allocation2 + $0x1c0] sm:$0xff]  ;;  %v3386_v0 = vmul.f32 %v3013_v32, %v562_v23  ;;  %518 = vmatmul.f32.gmra.mxu1 %v106_v25  ;;  %v5693_v25 = vld [vmem:[#allocation48_spill] sm:$0xff] }
 0x143   :  { %5667 = vst [vmem:[#allocation31_spill] sm:$0xff] %v3350_v36  ;;  %v3374_v36 = vadd.f32 %v913_v42, %v5678_v27  ;;  %v3392_v42 = vmul.f32 %v3017_v30, %v562_v23  ;;  %v3398_v27 = vmul.f32 %v3021_v50, %v562_v23  ;;  %v472_v57 = vadd.f32 %v471_v20, %v262_v3 }
 0x144   :  { %5669 = vst [vmem:[#allocation32_spill] sm:$0xff] %v3359_v21  ;;  %309 = vmatmul.f32.gmra.mxu0 %v105_v10 }
 0x145   :  { %5671 = vst [vmem:[#allocation33_spill] sm:$0xff] %v3362_v48  ;;  %v978_v3 = vmul.f32 %v3200_v49, %v472_v57  ;;  %v990_v10 = vmul.f32 %v3217_v18, %v472_v57  ;;  %v998_v20 = vmul.f32 %v3270_v35, %v472_v57  ;;  %v5694_v48 = vld [vmem:[#allocation49_spill] sm:$0xff] }
 0x146   :  { %5675 = vst [vmem:[#allocation35_spill] sm:$0xff] %v3368_v37  ;;  %v3428_v37 = vperm.slane %v1661_v24, 0  ;;  %v5702_v24 = vld [vmem:[#allocation54_spill] sm:$0xff] }
 0x147   :  { %5677 = vst [vmem:[#allocation36_spill] sm:$0xff] %v3371_v62  ;;  %v3431_v40 = vadd.f32 %v978_v3, %v5693_v25  ;;  %v107_v25 = vld [vmem:[#allocation2 + $0x1d0] sm:$0xff] }
 0x148   :  { %5679 = vst [vmem:[#allocation37_spill] sm:$0xff] %v3374_v36  ;;  %v5691_v36 = vrot.slane %v3277_v6, 3 }
 0x149   :  { %5681 = vst [vmem:[#allocation38_spill] sm:$0xff] %v3377_v56  ;;  %v5690_v56 = vrot.slane %v3277_v6, 2  ;;  %v1002_v6 = vmul.f32 %v3272_v44, %v472_v57 }
 0x14a   :  { %5682 = vst [vmem:[#allocation132_spill] sm:$0xff] %v3380_v43  ;;  %v169_v43 = vld [vmem:[#allocation2 + $0x3c0] sm:$0xff]  ;;  %v3409_v62 = vperm.slane %v5691_v36, 0 }
 0x14b   :  { %5683 = vst [vmem:[#allocation133_spill] sm:$0xff] %v3383_v61  ;;  %v565_v61 = vadd.f32 %v564_v22, %v355_v16  ;;  %v982_v16 = vmul.f32 %v3213_v53, %v472_v57  ;;  %405 = vmatmul.f32.gmra.mxu2 %v169_v43  ;;  %v3424_v22 = vperm.slane %v1659_v45, 0  ;;  %v5696_v43 = vld [vmem:[#allocation51_spill] sm:$0xff]  ;;  %v5700_v45 = vld [vmem:[#allocation53_spill] sm:$0xff] }
 0x14c   :  { %5684 = vst [vmem:[#allocation134_spill] sm:$0xff] %v3386_v0  ;;  %v3401_v0 = vmul.f32 %v3082_v15, %v562_v23  ;;  %v986_v23 = vmul.f32 %v3215_v59, %v472_v57  ;;  %312 = vmatmul.f32.gmra.mxu0 %v107_v25 }
 0x14d   :  { %5685 = vst [vmem:[#allocation135_spill] sm:$0xff] %v3389_v34  ;;  %v170_v34 = vld [vmem:[#allocation2 + $0x3c8] sm:$0xff]  ;;  %v3434_v21 = vadd.f32 %v982_v16, %v5694_v48  ;;  %v3452_v3 = vmul.f32 %v3009_v17, %v565_v61  ;;  %v265_v48 = vpop.f32.mrf.mxu0  ;;  %v358_v16 = vpop.f32.mrf.mxu2  ;;  %v3469_v17 = vmul.f32 %v3017_v30, %v565_v61 }
 0x14e   :  { %5686 = vst [vmem:[#allocation136_spill] sm:$0xff] %v3392_v42  ;;  %v3405_v42 = vperm.slane %v5690_v56, 0  ;;  %v994_v56 = vmul.f32 %v3266_v31, %v472_v57  ;;  %614 = vmatmul.f32.gmra.mxu3 %v170_v34  ;;  %v3437_v19 = vadd.f32 %v986_v23, %v5695_v7  ;;  %v3457_v7 = vld [vmem:[%s5460_s2 + $0x10] sm:$0xff]  ;;  %v3460_v23 = vmul.f32 %v3011_v60, %v565_v61 }
 0x14f   :  { %5687 = vst [vmem:[#allocation137_spill] sm:$0xff] %v3395_v46  ;;  %v3411_v46 = vperm.slane %v1658_v12, 0  ;;  %v5692_v12 = vld [vmem:[#allocation47_spill] sm:$0xff]  ;;  %v1039_v30 = vrot.slane %v3457_v7, 1 }
 0x150   :  { %5688 = vst [vmem:[#allocation138_spill] sm:$0xff] %v3398_v27  ;;  %v974_v27 = vmul.f32 %v3198_v54, %v472_v57  ;;  %v3440_v57 = vadd.f32 %v990_v10, %v5696_v43  ;;  %v3463_v10 = vmul.f32 %v3013_v32, %v565_v61  ;;  %v108_v43 = vld [vmem:[#allocation2 + $0x1d8] sm:$0xff]  ;;  %v3478_v32 = vmul.f32 %v3082_v15, %v565_v61 }
 0x151   :  { %5689 = vst [vmem:[#allocation139_spill] sm:$0xff] %v3401_v0  ;;  %v3426_v0 = vperm.slane %v1660_v41, 0  ;;  %v3446_v41 = vadd.f32 %v998_v20, %v5700_v45  ;;  %v474_v20 = vpop.f32.mrf.mxu1  ;;  %v3475_v45 = vmul.f32 %v3021_v50, %v565_v61  ;;  %521 = vmatmul.f32.gmra.mxu1 %v108_v43  ;;  %v5715_v43 = vld [vmem:[#allocation64_spill] sm:$0xff] }
 0x152   :  { %v3422_v36 = vadd.f32 %v974_v27, %v5692_v12  ;;  %5697 = vst [vmem:[#allocation47_spill] sm:$0xff] %v3440_v57  ;;  %v5698_v27 = vld [vmem:[#allocation52_spill] sm:$0xff]  ;;  %v3449_v12 = vadd.f32 %v1002_v6, %v5702_v24  ;;  %v567_v6 = vpop.f32.mrf.mxu3  ;;  %v475_v60 = vadd.f32 %v474_v20, %v265_v48  ;;  %v5713_v20 = vld [vmem:[#allocation63_spill] sm:$0xff] }
 0x153   :  { %v3443_v34 = vadd.f32 %v994_v56, %v5698_v27  ;;  %5701 = vst [vmem:[#allocation49_spill] sm:$0xff] %v3446_v41  ;;  %v3466_v56 = vmul.f32 %v3015_v4, %v565_v61  ;;  %v3472_v27 = vmul.f32 %v3019_v8, %v565_v61  ;;  %v568_v24 = vadd.f32 %v567_v6, %v358_v16  ;;  %v172_v4 = vld [vmem:[#allocation2 + $0x3d8] sm:$0xff] }
 0x154   :  { %5703 = vst [vmem:[#allocation50_spill] sm:$0xff] %v3449_v12  ;;  %v975_v8 = vmul.f32 %v3198_v54, %v475_v60  ;;  %v983_v50 = vmul.f32 %v3213_v53, %v475_v60  ;;  %v987_v48 = vmul.f32 %v3215_v59, %v475_v60  ;;  %v991_v15 = vmul.f32 %v3217_v18, %v475_v60  ;;  %v5717_v12 = vld [vmem:[#allocation65_spill] sm:$0xff] }
 0x155   :  { %5699 = vst [vmem:[#allocation48_spill] sm:$0xff] %v3443_v34  ;;  %v995_v61 = vmul.f32 %v3266_v31, %v475_v60  ;;  %v999_v16 = vmul.f32 %v3270_v35, %v475_v60  ;;  %v1003_v25 = vmul.f32 %v3272_v44, %v475_v60  ;;  %v5719_v34 = vld [vmem:[#allocation66_spill] sm:$0xff] }
 0x156   :  { %5704 = vst [vmem:[#allocation51_spill] sm:$0xff] %v3452_v3  ;;  %v3492_v6 = vadd.f32 %v975_v8, %v5713_v20  ;;  %617 = vmatmul.f32.gmra.mxu3 %v172_v4  ;;  %v3501_v41 = vadd.f32 %v983_v50, %v5717_v12  ;;  %v3504_v57 = vadd.f32 %v987_v48, %v5719_v34  ;;  %v5723_v8 = vld [vmem:[#allocation68_spill] sm:$0xff]  ;;  %v5725_v20 = vld [vmem:[#allocation69_spill] sm:$0xff]  ;;  %v268_v12 = vpop.f32.mrf.mxu0  ;;  %v361_v50 = vpop.f32.mrf.mxu2 }
 0x157   :  { %5705 = vst [vmem:[#allocation52_spill] sm:$0xff] %v3457_v7  ;;  %v3510_v4 = vadd.f32 %v995_v61, %v5723_v8  ;;  %v3522_v34 = vmul.f32 %v3356_v9, %v568_v24  ;;  %v3525_v48 = vmul.f32 %v3405_v42, %v568_v24  ;;  %v3531_v61 = vmul.f32 %v3411_v46, %v568_v24 }
 0x158   :  { %5706 = vst [vmem:[#allocation53_spill] sm:$0xff] %v3460_v23  ;;  %v171_v23 = vld [vmem:[#allocation2 + $0x3d0] sm:$0xff]  ;;  %v3537_v8 = vmul.f32 %v3426_v0, %v568_v24 }
 0x159   :  { %5707 = vst [vmem:[#allocation54_spill] sm:$0xff] %v3463_v10  ;;  %408 = vmatmul.f32.gmra.mxu2 %v171_v23  ;;  %v5721_v23 = vld [vmem:[#allocation67_spill] sm:$0xff] }
 0x15a   :  { %5708 = vst [vmem:[#allocation140_spill] sm:$0xff] %v3466_v56  ;;  %v1041_v56 = vrot.slane %v3457_v7, 3 }
 0x15b   :  { %5709 = vst [vmem:[#allocation141_spill] sm:$0xff] %v3469_v17  ;;  %v1040_v17 = vrot.slane %v3457_v7, 2 }
 0x15c   :  { %5710 = vst [vmem:[#allocation142_spill] sm:$0xff] %v3472_v27  ;;  %v979_v27 = vmul.f32 %v3200_v49, %v475_v60  ;;  %v3507_v60 = vadd.f32 %v991_v15, %v5721_v23  ;;  %v3528_v15 = vmul.f32 %v3409_v62, %v568_v24  ;;  %v3534_v23 = vmul.f32 %v3424_v22, %v568_v24 }
 0x15d   :  { %5711 = vst [vmem:[#allocation143_spill] sm:$0xff] %v3475_v45  ;;  %v5727_v45 = vld [vmem:[#allocation70_spill] sm:$0xff] }
 0x15e   :  { %5712 = vst [vmem:[#allocation144_spill] sm:$0xff] %v3478_v32  ;;  %v1042_v32 = vrot.slane %v3457_v7, 4  ;;  %v3498_v3 = vadd.f32 %v979_v27, %v5715_v43  ;;  %v3516_v10 = vadd.f32 %v1003_v25, %v5727_v45  ;;  %v3519_v27 = vmul.f32 %v3354_v28, %v568_v24  ;;  %v109_v43 = vld [vmem:[#allocation2 + $0x1e0] sm:$0xff]  ;;  %v477_v45 = vpop.f32.mrf.mxu1  ;;  %v110_v25 = vld [vmem:[#allocation2 + $0x1e8] sm:$0xff] }
 0x15f   :  { %5714 = vst [vmem:[#allocation63_spill] sm:$0xff] %v3492_v6  ;;  %v3513_v6 = vadd.f32 %v999_v16, %v5725_v20  ;;  %v570_v16 = vpop.f32.mrf.mxu3  ;;  %v478_v20 = vadd.f32 %v477_v45, %v268_v12  ;;  %315 = vmatmul.f32.gmra.mxu0 %v109_v43  ;;  %524 = vmatmul.f32.gmra.mxu1 %v110_v25 }
 0x160   :  { %5716 = vst [vmem:[#allocation64_spill] sm:$0xff] %v3498_v3 }
 0x161   :  { %5718 = vst [vmem:[#allocation65_spill] sm:$0xff] %v3501_v41  ;;  %v984_v12 = vmul.f32 %v3213_v53, %v478_v20  ;;  %v996_v43 = vmul.f32 %v3266_v31, %v478_v20  ;;  %v1000_v45 = vmul.f32 %v3270_v35, %v478_v20 }
 0x162   :  { %5720 = vst [vmem:[#allocation66_spill] sm:$0xff] %v3504_v57  ;;  %v3563_v57 = vperm.slane %v1042_v32, 0  ;;  %v5744_v32 = vld [vmem:[#allocation83_spill] sm:$0xff] }
 0x163   :  { %5722 = vst [vmem:[#allocation67_spill] sm:$0xff] %v3507_v60  ;;  %v3561_v60 = vperm.slane %v1041_v56, 0  ;;  %v3569_v41 = vadd.f32 %v984_v12, %v3030_v33  ;;  %v271_v33 = vpop.f32.mrf.mxu0  ;;  %v111_v12 = vld [vmem:[#allocation2 + $0x1f0] sm:$0xff] }
 0x164   :  { %5724 = vst [vmem:[#allocation68_spill] sm:$0xff] %v3510_v4  ;;  %v980_v4 = vmul.f32 %v3200_v49, %v478_v20 }
 0x165   :  { %5726 = vst [vmem:[#allocation69_spill] sm:$0xff] %v3513_v6  ;;  %v3546_v6 = vperm.slane %v1039_v30, 0  ;;  %v5737_v30 = vld [vmem:[#allocation79_spill] sm:$0xff] }
 0x166   :  { %5728 = vst [vmem:[#allocation70_spill] sm:$0xff] %v3516_v10  ;;  %v1045_v10 = vrot.slane %v3457_v7, 7  ;;  %v3566_v25 = vadd.f32 %v980_v4, %v3027_v29  ;;  %v364_v4 = vpop.f32.mrf.mxu2 }
 0x167   :  { %5729 = vst [vmem:[#allocation145_spill] sm:$0xff] %v3519_v27  ;;  %v173_v27 = vld [vmem:[#allocation2 + $0x3e0] sm:$0xff]  ;;  %318 = vmatmul.f32.gmra.mxu0 %v111_v12 }
 0x168   :  { %5730 = vst [vmem:[#allocation146_spill] sm:$0xff] %v3522_v34  ;;  %v571_v34 = vadd.f32 %v570_v16, %v361_v50  ;;  %v988_v50 = vmul.f32 %v3215_v59, %v478_v20  ;;  %v1004_v16 = vmul.f32 %v3272_v44, %v478_v20  ;;  %411 = vmatmul.f32.gmra.mxu2 %v173_v27  ;;  %v5738_v27 = vld [vmem:[#allocation80_spill] sm:$0xff] }
 0x169   :  { %5731 = vst [vmem:[#allocation147_spill] sm:$0xff] %v3525_v48  ;;  %v3540_v48 = vmul.f32 %v3428_v37, %v568_v24  ;;  %v992_v24 = vmul.f32 %v3217_v18, %v478_v20 }
 0x16a   :  { %5732 = vst [vmem:[#allocation148_spill] sm:$0xff] %v3528_v15  ;;  %v174_v15 = vld [vmem:[#allocation2 + $0x3e8] sm:$0xff]  ;;  %v3572_v3 = vadd.f32 %v988_v50, %v3033_v14  ;;  %v3587_v29 = vmul.f32 %v3354_v28, %v571_v34  ;;  %v3590_v14 = vmul.f32 %v3356_v9, %v571_v34  ;;  %v3593_v50 = vmul.f32 %v3405_v42, %v571_v34 }
 0x16b   :  { %5733 = vst [vmem:[#allocation149_spill] sm:$0xff] %v3531_v61  ;;  %v3544_v61 = vperm.slane %v3457_v7, 0  ;;  %620 = vmatmul.f32.gmra.mxu3 %v174_v15 }
 0x16c   :  { %5734 = vst [vmem:[#allocation150_spill] sm:$0xff] %v3534_v23  ;;  %v976_v23 = vmul.f32 %v3198_v54, %v478_v20  ;;  %v3575_v20 = vadd.f32 %v992_v24, %v5738_v27  ;;  %v3596_v24 = vmul.f32 %v3409_v62, %v571_v34  ;;  %v112_v27 = vld [vmem:[#allocation2 + $0x1f8] sm:$0xff] }
 0x16d   :  { %5735 = vst [vmem:[#allocation151_spill] sm:$0xff] %v3537_v8  ;;  %v3559_v8 = vperm.slane %v1040_v17, 0  ;;  %v5742_v17 = vld [vmem:[#allocation82_spill] sm:$0xff]  ;;  %527 = vmatmul.f32.gmra.mxu1 %v112_v27 }
 0x16e   :  { %5736 = vst [vmem:[#allocation152_spill] sm:$0xff] %v3540_v48  ;;  %v3557_v48 = vadd.f32 %v976_v23, %v5737_v30  ;;  %v5740_v23 = vld [vmem:[#allocation81_spill] sm:$0xff]  ;;  %v3581_v56 = vadd.f32 %v1000_v45, %v5742_v17  ;;  %v3584_v30 = vadd.f32 %v1004_v16, %v5744_v32  ;;  %v480_v45 = vpop.f32.mrf.mxu1  ;;  %v573_v16 = vpop.f32.mrf.mxu3  ;;  %v3605_v17 = vmul.f32 %v3426_v0, %v571_v34 }
 0x16f   :  { %5739 = vst [vmem:[#allocation79_spill] sm:$0xff] %v3575_v20  ;;  %v3578_v15 = vadd.f32 %v996_v43, %v5740_v23  ;;  %v3599_v43 = vmul.f32 %v3411_v46, %v571_v34  ;;  %v3602_v23 = vmul.f32 %v3424_v22, %v571_v34  ;;  %v481_v32 = vadd.f32 %v480_v45, %v271_v33  ;;  %v3625_v33 = vld [vmem:[%s5460_s2 + $0x30] sm:$0xff] }
 0x170   :  { %5743 = vst [vmem:[#allocation81_spill] sm:$0xff] %v3581_v56  ;;  %v5755_v56 = vrot.slane %v3457_v7, 6 }
 0x171   :  { %5741 = vst [vmem:[#allocation80_spill] sm:$0xff] %v3578_v15  ;;  %v985_v12 = vmul.f32 %v3213_v53, %v481_v32  ;;  %v993_v45 = vmul.f32 %v3217_v18, %v481_v32  ;;  %v5759_v53 = vld [vmem:[#allocation93_spill] sm:$0xff]  ;;  %v5760_v18 = vld [vmem:[#allocation94_spill] sm:$0xff] }
 0x172   :  { %5745 = vst [vmem:[#allocation82_spill] sm:$0xff] %v3584_v30  ;;  %v3618_v15 = vperm.slane %v5755_v56, 0  ;;  %v997_v56 = vmul.f32 %v3266_v31, %v481_v32 }
 0x173   :  { %5746 = vst [vmem:[#allocation83_spill] sm:$0xff] %v3587_v29  ;;  %v175_v29 = vld [vmem:[#allocation2 + $0x3f0] sm:$0xff]  ;;  %v3645_v31 = vadd.f32 %v985_v12, %v5760_v18  ;;  %v274_v12 = vpop.f32.mrf.mxu0 }
 0x174   :  { %5747 = vst [vmem:[#allocation153_spill] sm:$0xff] %v3590_v14  ;;  %v3607_v14 = vadd.f32 %v573_v16, %v364_v4  ;;  %v981_v4 = vmul.f32 %v3200_v49, %v481_v32  ;;  %v1005_v16 = vmul.f32 %v3272_v44, %v481_v32  ;;  %414 = vmatmul.f32.gmra.mxu2 %v175_v29  ;;  %v1743_v49 = vrot.slane %v3625_v33, 1  ;;  %v5764_v44 = vld [vmem:[#allocation96_spill] sm:$0xff] }
 0x175   :  { %5748 = vst [vmem:[#allocation154_spill] sm:$0xff] %v3593_v50  ;;  %v3610_v50 = vmul.f32 %v3428_v37, %v571_v34  ;;  %v977_v34 = vmul.f32 %v3198_v54, %v481_v32  ;;  %v1744_v54 = vrot.slane %v3625_v33, 2  ;;  %v3651_v29 = vadd.f32 %v993_v45, %v5764_v44 }
 0x176   :  { %5749 = vst [vmem:[#allocation155_spill] sm:$0xff] %v3596_v24  ;;  %v176_v24 = vld [vmem:[#allocation2 + $0x3f8] sm:$0xff]  ;;  %v3642_v27 = vadd.f32 %v981_v4, %v5759_v53  ;;  %v3664_v4 = vmul.f32 %v3354_v28, %v3607_v14  ;;  %v367_v53 = vpop.f32.mrf.mxu2  ;;  %v3672_v45 = vmul.f32 %v3405_v42, %v3607_v14  ;;  %v3684_v18 = vmul.f32 %v3424_v22, %v3607_v14 }
 0x177   :  { %5750 = vst [vmem:[#allocation156_spill] sm:$0xff] %v3599_v43  ;;  %v5754_v43 = vrot.slane %v3457_v7, 5  ;;  %623 = vmatmul.f32.gmra.mxu3 %v176_v24 }
 0x178   :  { %5751 = vst [vmem:[#allocation157_spill] sm:$0xff] %v3602_v23  ;;  %v3620_v23 = vperm.slane %v1045_v10, 0  ;;  %v1001_v10 = vmul.f32 %v3270_v35, %v481_v32  ;;  %v5762_v35 = vld [vmem:[#allocation95_spill] sm:$0xff] }
 0x179   :  { %5752 = vst [vmem:[#allocation158_spill] sm:$0xff] %v3605_v17  ;;  %v3614_v30 = vperm.slane %v5754_v43, 0  ;;  %v989_v43 = vmul.f32 %v3215_v59, %v481_v32  ;;  %v1745_v59 = vrot.slane %v3625_v33, 3  ;;  %v5768_v32 = vld [vmem:[#allocation98_spill] sm:$0xff] }
 0x17a   :  { %5753 = vst [vmem:[#allocation159_spill] sm:$0xff] %v3610_v50  ;;  %v5757_v50 = vld [vmem:[#allocation92_spill] sm:$0xff] }
 0x17b   :  { %5756 = vst [vmem:[#allocation160_spill] sm:$0xff] %v3625_v33  ;;  %v3636_v17 = vadd.f32 %v977_v34, %v5757_v50  ;;  %v3648_v7 = vadd.f32 %v989_v43, %v5762_v35  ;;  %v5766_v50 = vld [vmem:[#allocation97_spill] sm:$0xff]  ;;  %v3657_v34 = vadd.f32 %v1001_v10, %v5768_v32  ;;  %v3668_v43 = vmul.f32 %v3356_v9, %v3607_v14  ;;  %v483_v10 = vpop.f32.mrf.mxu1 }
 0x17c   :  { %5761 = vst [vmem:[#allocation93_spill] sm:$0xff] %v3645_v31  ;;  %v3654_v24 = vadd.f32 %v997_v56, %v5766_v50  ;;  %v3676_v56 = vmul.f32 %v3409_v62, %v3607_v14  ;;  %v3688_v35 = vmul.f32 %v3426_v0, %v3607_v14  ;;  %v484_v44 = vadd.f32 %v483_v10, %v274_v12 }
 0x17d   :  { %5758 = vst [vmem:[#allocation92_spill] sm:$0xff] %v3636_v17  ;;  %v5770_v17 = vld [vmem:[#allocation99_spill] sm:$0xff]  ;;  %v1746_v32 = vrot.slane %v3625_v33, 4 }
 0x17e   :  { %5763 = vst [vmem:[#allocation94_spill] sm:$0xff] %v3648_v7  ;;  %v3660_v20 = vadd.f32 %v1005_v16, %v5770_v17  ;;  %v3680_v17 = vmul.f32 %v3411_v46, %v3607_v14  ;;  %v576_v16 = vpop.f32.mrf.mxu3  ;;  %v1082_v12 = vmul.f32 %v3614_v30, %v484_v44  ;;  %v1090_v10 = vmul.f32 %v3620_v23, %v484_v44 }
 0x17f   :  { %5765 = vst [vmem:[#allocation95_spill] sm:$0xff] %v3651_v29  ;;  %v577_v50 = vadd.f32 %v576_v16, %v367_v53  ;;  %v1086_v53 = vmul.f32 %v3618_v15, %v484_v44 }
 0x180   :  { %5767 = vst [vmem:[#allocation96_spill] sm:$0xff] %v3654_v24  ;;  %v3718_v31 = vadd.f32 %v1082_v12, %v3164_v26  ;;  %v3736_v26 = vperm.slane %v1743_v49, 0  ;;  %v3750_v12 = vperm.slane %v1744_v54, 0  ;;  %v3752_v49 = vperm.slane %v1745_v59, 0 }
 0x181   :  { %5769 = vst [vmem:[#allocation97_spill] sm:$0xff] %v3657_v34 }
 0x182   :  { %5771 = vst [vmem:[#allocation98_spill] sm:$0xff] %v3660_v20  ;;  %v1074_v20 = vmul.f32 %v3561_v60, %v484_v44 }
 0x183   :  { %5772 = vst [vmem:[#allocation99_spill] sm:$0xff] %v3664_v4  ;;  %v1066_v4 = vmul.f32 %v3546_v6, %v484_v44 }
 0x184   :  { %5773 = vst [vmem:[#allocation161_spill] sm:$0xff] %v3668_v43  ;;  %v1062_v43 = vmul.f32 %v3544_v61, %v484_v44  ;;  %v3712_v29 = vadd.f32 %v1074_v20, %v3158_v51  ;;  %v277_v51 = vpop.f32.mrf.mxu0  ;;  %v370_v20 = vpop.f32.mrf.mxu2 }
 0x185   :  { %5774 = vst [vmem:[#allocation162_spill] sm:$0xff] %v3672_v45  ;;  %v1748_v45 = vrot.slane %v3625_v33, 6  ;;  %v3706_v34 = vadd.f32 %v1066_v4, %v3152_v1  ;;  %v3728_v1 = vmul.f32 %v3428_v37, %v3607_v14  ;;  %v3745_v4 = vmul.f32 %v3409_v62, %v577_v50 }
 0x186   :  { %5775 = vst [vmem:[#allocation163_spill] sm:$0xff] %v3676_v56  ;;  %v1747_v56 = vrot.slane %v3625_v33, 5  ;;  %v3703_v16 = vadd.f32 %v1062_v43, %v3146_v63  ;;  %v3724_v63 = vadd.f32 %v1090_v10, %v3170_v52  ;;  %v3742_v52 = vmul.f32 %v3405_v42, %v577_v50  ;;  %v579_v43 = vpop.f32.mrf.mxu3 }
 0x187   :  { %5776 = vst [vmem:[#allocation164_spill] sm:$0xff] %v3680_v17  ;;  %v1749_v17 = vrot.slane %v3625_v33, 7  ;;  %v3748_v14 = vmul.f32 %v3411_v46, %v577_v50  ;;  %v3758_v42 = vperm.slane %v1748_v45, 0 }
 0x188   :  { %5777 = vst [vmem:[#allocation165_spill] sm:$0xff] %v3684_v18  ;;  %v1070_v18 = vmul.f32 %v3559_v8, %v484_v44 }
 0x189   :  { %5778 = vst [vmem:[#allocation166_spill] sm:$0xff] %v3688_v35  ;;  %v1078_v35 = vmul.f32 %v3563_v57, %v484_v44  ;;  %v3721_v44 = vadd.f32 %v1086_v53, %v3167_v58  ;;  %v3739_v58 = vmul.f32 %v3356_v9, %v577_v50  ;;  %v3754_v53 = vperm.slane %v1746_v32, 0 }
 0x18a   :  { %v3709_v24 = vadd.f32 %v1070_v18, %v3155_v5  ;;  %5779 = vst [vmem:[#allocation167_spill] sm:$0xff] %v3728_v1  ;;  %v3731_v5 = vmul.f32 %v3354_v28, %v577_v50  ;;  %v486_v28 = vpop.f32.mrf.mxu1  ;;  %v3756_v9 = vperm.slane %v1747_v56, 0  ;;  %v3760_v10 = vperm.slane %v1749_v17, 0 }
 0x18b   :  { %v3715_v7 = vadd.f32 %v1078_v35, %v3161_v47  ;;  %v3734_v47 = vperm.slane %v3625_v33, 0  ;;  %5781 = vst [vmem:[#allocation169_spill] sm:$0xff] %v3739_v58  ;;  %v487_v18 = vadd.f32 %v486_v28, %v277_v51  ;;  %v580_v35 = vadd.f32 %v579_v43, %v370_v20  ;;  %v5788_v58 = vld [vmem:[#allocation6_spill] sm:$0xff]  ;;  %v5807_v33 = vld [vmem:[#allocation19_spill] sm:$0xff] }
 0x18c   :  { %5780 = vst [vmem:[#allocation168_spill] sm:$0xff] %v3731_v5 }
 0x18d   :  { %5782 = vst [vmem:[#allocation170_spill] sm:$0xff] %v3742_v52  ;;  %v1063_v62 = vmul.f32 %v3544_v61, %v487_v18  ;;  %v1067_v46 = vmul.f32 %v3546_v6, %v487_v18  ;;  %v1075_v51 = vmul.f32 %v3561_v60, %v487_v18  ;;  %v1079_v54 = vmul.f32 %v3563_v57, %v487_v18 }
 0x18e   :  { %5783 = vst [vmem:[#allocation171_spill] sm:$0xff] %v3745_v4  ;;  %v1083_v59 = vmul.f32 %v3614_v30, %v487_v18  ;;  %v1087_v32 = vmul.f32 %v3618_v15, %v487_v18  ;;  %v1091_v56 = vmul.f32 %v3620_v23, %v487_v18  ;;  %v5786_v4 = vld [vmem:[#allocation5_spill] sm:$0xff] }
 0x18f   :  { %5784 = vst [vmem:[#allocation172_spill] sm:$0xff] %v3748_v14  ;;  %v1071_v14 = vmul.f32 %v3559_v8, %v487_v18  ;;  %v3771_v45 = vadd.f32 %v1063_v62, %v3211_v55  ;;  %v3774_v17 = vadd.f32 %v1067_v46, %v3220_v39  ;;  %v3780_v28 = vadd.f32 %v1075_v51, %v3226_v38  ;;  %v5790_v55 = vld [vmem:[#allocation7_spill] sm:$0xff]  ;;  %v582_v51 = vpop.f32.mrf.mxu3 }
 0x190   :  { %v3783_v43 = vadd.f32 %v1079_v54, %v3229_v11  ;;  %v3786_v52 = vadd.f32 %v1083_v59, %v5786_v4  ;;  %v3789_v18 = vadd.f32 %v1087_v32, %v5788_v58  ;;  %v3792_v62 = vadd.f32 %v1091_v56, %v5790_v55  ;;  %v280_v4 = vpop.f32.mrf.mxu0  ;;  %v3809_v58 = vld [vmem:[%s5459_s1 + $0x10] sm:$0xff] }
 0x191   :  { %v3777_v20 = vadd.f32 %v1071_v14, %v3223_v13  ;;  %v3795_v39 = vmul.f32 %v3424_v22, %v577_v50  ;;  %v3798_v13 = vmul.f32 %v3426_v0, %v577_v50  ;;  %v3801_v38 = vmul.f32 %v3428_v37, %v577_v50  ;;  %v373_v14 = vpop.f32.mrf.mxu2 }
 0x192   :  { %5785 = vst [vmem:[#allocation173_spill] sm:$0xff] %v3783_v43  ;;  %v3804_v11 = vmul.f32 %v3734_v47, %v580_v35  ;;  %v3812_v46 = vmul.f32 %v3736_v26, %v580_v35  ;;  %v3815_v22 = vmul.f32 %v3750_v12, %v580_v35  ;;  %v3818_v0 = vmul.f32 %v3752_v49, %v580_v35  ;;  %v489_v50 = vpop.f32.mrf.mxu1  ;;  %v5811_v43 = vld [vmem:[#allocation21_spill] sm:$0xff] }
 0x193   :  { %5787 = vst [vmem:[#allocation5_spill] sm:$0xff] %v3786_v52  ;;  %v3821_v37 = vmul.f32 %v3754_v53, %v580_v35  ;;  %v3824_v54 = vmul.f32 %v3756_v9, %v580_v35  ;;  %v3827_v59 = vmul.f32 %v3758_v42, %v580_v35  ;;  %v490_v32 = vadd.f32 %v489_v50, %v280_v4 }
 0x194   :  { %5789 = vst [vmem:[#allocation6_spill] sm:$0xff] %v3789_v18  ;;  %v583_v56 = vadd.f32 %v582_v51, %v373_v14  ;;  %v3830_v55 = vmul.f32 %v3760_v10, %v580_v35  ;;  %v5803_v51 = vld [vmem:[#allocation16_spill] sm:$0xff] }
 0x195   :  { %5791 = vst [vmem:[#allocation7_spill] sm:$0xff] %v3792_v62  ;;  %v1064_v5 = vmul.f32 %v3544_v61, %v490_v32  ;;  %v1068_v1 = vmul.f32 %v3546_v6, %v490_v32  ;;  %v1080_v4 = vmul.f32 %v3563_v57, %v490_v32  ;;  %v1084_v14 = vmul.f32 %v3614_v30, %v490_v32  ;;  %v5809_v18 = vld [vmem:[#allocation20_spill] sm:$0xff] }
 0x196   :  { %5792 = vst [vmem:[#allocation174_spill] sm:$0xff] %v3795_v39  ;;  %v1129_v39 = vrot.slane %v3809_v58, 3  ;;  %v1088_v35 = vmul.f32 %v3618_v15, %v490_v32  ;;  %v1092_v50 = vmul.f32 %v3620_v23, %v490_v32 }
 0x197   :  { %5793 = vst [vmem:[#allocation175_spill] sm:$0xff] %v3798_v13  ;;  %v1128_v13 = vrot.slane %v3809_v58, 2  ;;  %v3856_v62 = vadd.f32 %v1080_v4, %v5807_v33  ;;  %v3859_v52 = vadd.f32 %v1084_v14, %v5809_v18  ;;  %v1132_v33 = vrot.slane %v3809_v58, 6 }
 0x198   :  { %5794 = vst [vmem:[#allocation176_spill] sm:$0xff] %v3801_v38  ;;  %v1127_v38 = vrot.slane %v3809_v58, 1  ;;  %v3874_v18 = vmul.f32 %v3736_v26, %v583_v56  ;;  %v3883_v4 = vmul.f32 %v3754_v53, %v583_v56 }
 0x199   :  { %5795 = vst [vmem:[#allocation177_spill] sm:$0xff] %v3804_v11 }
 0x19a   :  { %5796 = vst [vmem:[#allocation178_spill] sm:$0xff] %v3812_v46  ;;  %v5805_v46 = vld [vmem:[#allocation18_spill] sm:$0xff]  ;;  %v492_v14 = vpop.f32.mrf.mxu1 }
 0x19b   :  { %5797 = vst [vmem:[#allocation179_spill] sm:$0xff] %v3815_v22 }
 0x19c   :  { %5798 = vst [vmem:[#allocation180_spill] sm:$0xff] %v3818_v0  ;;  %v5804_v0 = vld [vmem:[#allocation17_spill] sm:$0xff] }
 0x19d   :  { %5799 = vst [vmem:[#allocation181_spill] sm:$0xff] %v3821_v37  ;;  %v1076_v37 = vmul.f32 %v3561_v60, %v490_v32 }
 0x19e   :  { %5800 = vst [vmem:[#allocation182_spill] sm:$0xff] %v3824_v54  ;;  %v1072_v54 = vmul.f32 %v3559_v8, %v490_v32  ;;  %v3862_v32 = vadd.f32 %v1088_v35, %v5811_v43  ;;  %v3877_v43 = vmul.f32 %v3750_v12, %v583_v56  ;;  %v585_v35 = vpop.f32.mrf.mxu3 }
 0x19f   :  { %5801 = vst [vmem:[#allocation183_spill] sm:$0xff] %v3827_v59  ;;  %v3847_v59 = vadd.f32 %v1068_v1, %v3294_v2  ;;  %v3853_v11 = vadd.f32 %v1076_v37, %v5805_v46  ;;  %v3868_v2 = vmul.f32 %v3734_v47, %v583_v56  ;;  %v283_v1 = vpop.f32.mrf.mxu0  ;;  %v1130_v46 = vrot.slane %v3809_v58, 4 }
 0x1a0   :  { %5802 = vst [vmem:[#allocation184_spill] sm:$0xff] %v3830_v55  ;;  %v3844_v55 = vadd.f32 %v1064_v5, %v5803_v51  ;;  %v3850_v22 = vadd.f32 %v1072_v54, %v5804_v0  ;;  %v5813_v5 = vld [vmem:[#allocation22_spill] sm:$0xff]  ;;  %v376_v0 = vpop.f32.mrf.mxu2  ;;  %v1131_v37 = vrot.slane %v3809_v58, 5  ;;  %v3880_v54 = vmul.f32 %v3752_v49, %v583_v56 }
 0x1a1   :  { %5806 = vst [vmem:[#allocation16_spill] sm:$0xff] %v3853_v11  ;;  %v3865_v51 = vadd.f32 %v1092_v50, %v5813_v5  ;;  %v3886_v50 = vmul.f32 %v3756_v9, %v583_v56  ;;  %v3889_v5 = vmul.f32 %v3758_v42, %v583_v56 }
 0x1a2   :  { %5808 = vst [vmem:[#allocation17_spill] sm:$0xff] %v3856_v62 }
 0x1a3   :  { %5810 = vst [vmem:[#allocation18_spill] sm:$0xff] %v3859_v52 }
 0x1a4   :  { %5812 = vst [vmem:[#allocation19_spill] sm:$0xff] %v3862_v32  ;;  %v3898_v32 = vperm.slane %v1127_v38, 0  ;;  %v5825_v38 = vld [vmem:[#allocation32_spill] sm:$0xff] }
 0x1a5   :  { %5814 = vst [vmem:[#allocation20_spill] sm:$0xff] %v3865_v51  ;;  %v586_v51 = vadd.f32 %v585_v35, %v376_v0 }
 0x1a6   :  { %5815 = vst [vmem:[#allocation21_spill] sm:$0xff] %v3868_v2  ;;  %v493_v2 = vadd.f32 %v492_v14, %v283_v1 }
 0x1a7   :  { %5816 = vst [vmem:[#allocation22_spill] sm:$0xff] %v3874_v18  ;;  %v3892_v18 = vmul.f32 %v3760_v10, %v583_v56 }
 0x1a8   :  { %5817 = vst [vmem:[#allocation185_spill] sm:$0xff] %v3877_v43  ;;  %v1133_v43 = vrot.slane %v3809_v58, 7  ;;  %v1069_v52 = vmul.f32 %v3546_v6, %v493_v2  ;;  %v1081_v1 = vmul.f32 %v3563_v57, %v493_v2  ;;  %v1085_v56 = vmul.f32 %v3614_v30, %v493_v2  ;;  %v5833_v30 = vld [vmem:[#allocation36_spill] sm:$0xff] }
 0x1a9   :  { %5818 = vst [vmem:[#allocation186_spill] sm:$0xff] %v3880_v54  ;;  %v3896_v54 = vperm.slane %v3809_v58, 0  ;;  %v1089_v0 = vmul.f32 %v3618_v15, %v493_v2  ;;  %v1093_v14 = vmul.f32 %v3620_v23, %v493_v2  ;;  %v5823_v58 = vld [vmem:[#allocation31_spill] sm:$0xff]  ;;  %v5835_v15 = vld [vmem:[#allocation37_spill] sm:$0xff] }
 0x1aa   :  { %5819 = vst [vmem:[#allocation187_spill] sm:$0xff] %v3883_v4  ;;  %v1065_v4 = vmul.f32 %v3544_v61, %v493_v2  ;;  %v5827_v61 = vld [vmem:[#allocation33_spill] sm:$0xff]  ;;  %v3924_v11 = vadd.f32 %v1085_v56, %v5833_v30  ;;  %v3942_v56 = vmul.f32 %v3736_v26, %v586_v51  ;;  %v3953_v30 = vperm.slane %v1131_v37, 0 }
 0x1ab   :  { %5820 = vst [vmem:[#allocation188_spill] sm:$0xff] %v3886_v50  ;;  %v1073_v50 = vmul.f32 %v3559_v8, %v493_v2  ;;  %v5829_v8 = vld [vmem:[#allocation34_spill] sm:$0xff]  ;;  %v3927_v23 = vadd.f32 %v1089_v0, %v5835_v15  ;;  %v3945_v0 = vmul.f32 %v3750_v12, %v586_v51  ;;  %v3960_v15 = vmul.f32 %v3756_v9, %v586_v51 }
 0x1ac   :  { %5821 = vst [vmem:[#allocation189_spill] sm:$0xff] %v3889_v5  ;;  %v1077_v5 = vmul.f32 %v3561_v60, %v493_v2  ;;  %v3909_v35 = vadd.f32 %v1065_v4, %v5823_v58  ;;  %v5831_v60 = vld [vmem:[#allocation35_spill] sm:$0xff]  ;;  %v5837_v2 = vld [vmem:[#allocation38_spill] sm:$0xff]  ;;  %v379_v58 = vpop.f32.mrf.mxu2 }
 0x1ad   :  { %5822 = vst [vmem:[#allocation190_spill] sm:$0xff] %v3892_v18  ;;  %v3912_v18 = vadd.f32 %v1069_v52, %v5825_v38  ;;  %v3915_v6 = vadd.f32 %v1073_v50, %v5827_v61  ;;  %v3921_v57 = vadd.f32 %v1081_v1, %v5831_v60  ;;  %v3930_v4 = vadd.f32 %v1093_v14, %v5837_v2  ;;  %v286_v50 = vpop.f32.mrf.mxu0  ;;  %v588_v60 = vpop.f32.mrf.mxu3 }
 0x1ae   :  { %5824 = vst [vmem:[#allocation31_spill] sm:$0xff] %v3909_v35  ;;  %v3918_v62 = vadd.f32 %v1077_v5, %v5829_v8  ;;  %v3933_v52 = vmul.f32 %v3734_v47, %v586_v51  ;;  %v3935_v38 = vperm.slane %v1128_v13, 0  ;;  %v3937_v5 = vperm.slane %v1129_v39, 0  ;;  %v495_v8 = vpop.f32.mrf.mxu1 }
 0x1af   :  { %5826 = vst [vmem:[#allocation32_spill] sm:$0xff] %v3912_v18  ;;  %v3939_v1 = vperm.slane %v1130_v46, 0  ;;  %v3948_v14 = vmul.f32 %v3752_v49, %v586_v51  ;;  %v3951_v61 = vmul.f32 %v3754_v53, %v586_v51  ;;  %v496_v13 = vadd.f32 %v495_v8, %v286_v50  ;;  %v39_v50 = vld [vmem:[%s5459_s1 + $0x30] sm:$0xff] }
 0x1b0   :  { %5828 = vst [vmem:[#allocation33_spill] sm:$0xff] %v3915_v6  ;;  %v3955_v39 = vperm.slane %v1132_v33, 0  ;;  %v3957_v46 = vperm.slane %v1133_v43, 0  ;;  %v3963_v2 = vmul.f32 %v3758_v42, %v586_v51  ;;  %v5993_v18 = vld [vmem:[#allocation19_spill] sm:$0xff] }
 0x1b1   :  { %5830 = vst [vmem:[#allocation34_spill] sm:$0xff] %v3918_v62  ;;  %v1150_v37 = vmul.f32 %v3896_v54, %v496_v13  ;;  %v1154_v33 = vmul.f32 %v3898_v32, %v496_v13  ;;  %v1158_v43 = vmul.f32 %v3935_v38, %v496_v13  ;;  %v1162_v8 = vmul.f32 %v3937_v5, %v496_v13  ;;  %v5853_v62 = vld [vmem:[#allocation48_spill] sm:$0xff] }
 0x1b2   :  { %5832 = vst [vmem:[#allocation35_spill] sm:$0xff] %v3921_v57 }
 0x1b3   :  { %5834 = vst [vmem:[#allocation36_spill] sm:$0xff] %v3924_v11  ;;  %v5851_v11 = vld [vmem:[#allocation47_spill] sm:$0xff] }
 0x1b4   :  { %5836 = vst [vmem:[#allocation37_spill] sm:$0xff] %v3927_v23  ;;  %v3989_v23 = vadd.f32 %v1162_v8, %v3437_v19 }
 0x1b5   :  { %5838 = vst [vmem:[#allocation38_spill] sm:$0xff] %v3930_v4  ;;  %v3986_v4 = vadd.f32 %v1158_v43, %v3434_v21  ;;  %v289_v21 = vpop.f32.mrf.mxu0  ;;  %v591_v43 = vpop.f32.mrf.mxu3 }
 0x1b6   :  { %5839 = vst [vmem:[#allocation191_spill] sm:$0xff] %v3933_v52  ;;  %v3983_v52 = vadd.f32 %v1154_v33, %v3431_v40  ;;  %v382_v33 = vpop.f32.mrf.mxu2 }
 0x1b7   :  { %5840 = vst [vmem:[#allocation192_spill] sm:$0xff] %v3942_v56  ;;  %v1833_v56 = vrot.slane %v39_v50, 3 }
 0x1b8   :  { %5841 = vst [vmem:[#allocation193_spill] sm:$0xff] %v3945_v0  ;;  %v589_v0 = vadd.f32 %v588_v60, %v379_v58  ;;  %v1178_v58 = vmul.f32 %v3957_v46, %v496_v13  ;;  %v3980_v60 = vadd.f32 %v1150_v37, %v3422_v36  ;;  %v5855_v36 = vld [vmem:[#allocation49_spill] sm:$0xff] }
 0x1b9   :  { %5842 = vst [vmem:[#allocation194_spill] sm:$0xff] %v3948_v14  ;;  %v3966_v14 = vmul.f32 %v3760_v10, %v586_v51  ;;  %v1174_v51 = vmul.f32 %v3955_v39, %v496_v13 }
 0x1ba   :  { %5843 = vst [vmem:[#allocation195_spill] sm:$0xff] %v3951_v61  ;;  %v1832_v61 = vrot.slane %v39_v50, 2  ;;  %v4004_v40 = vmul.f32 %v3734_v47, %v589_v0  ;;  %v4007_v19 = vmul.f32 %v3736_v26, %v589_v0  ;;  %v4019_v8 = vmul.f32 %v3756_v9, %v589_v0 }
 0x1bb   :  { %5844 = vst [vmem:[#allocation196_spill] sm:$0xff] %v3960_v15  ;;  %v1166_v15 = vmul.f32 %v3939_v1, %v496_v13  ;;  %v3998_v37 = vadd.f32 %v1174_v51, %v5855_v36  ;;  %v4022_v47 = vmul.f32 %v3758_v42, %v589_v0  ;;  %v4025_v26 = vmul.f32 %v3760_v10, %v589_v0 }
 0x1bc   :  { %5845 = vst [vmem:[#allocation197_spill] sm:$0xff] %v3963_v2  ;;  %v1170_v2 = vmul.f32 %v3953_v30, %v496_v13 }
 0x1bd   :  { %5846 = vst [vmem:[#allocation198_spill] sm:$0xff] %v3966_v14  ;;  %v1831_v14 = vrot.slane %v39_v50, 1  ;;  %v3992_v57 = vadd.f32 %v1166_v15, %v5851_v11  ;;  %v4010_v11 = vmul.f32 %v3750_v12, %v589_v0  ;;  %v4016_v15 = vmul.f32 %v3754_v53, %v589_v0 }
 0x1be   :  { %5847 = vst [vmem:[#allocation199_spill] sm:$0xff] %v3980_v60  ;;  %v3995_v13 = vadd.f32 %v1170_v2, %v5853_v62  ;;  %v5857_v60 = vld [vmem:[#allocation50_spill] sm:$0xff]  ;;  %v4013_v62 = vmul.f32 %v3752_v49, %v589_v0  ;;  %v498_v2 = vpop.f32.mrf.mxu1  ;;  %v592_v12 = vadd.f32 %v591_v43, %v382_v33  ;;  %v1836_v49 = vrot.slane %v39_v50, 6  ;;  %v5867_v33 = vld [vmem:[#allocation63_spill] sm:$0xff] }
 0x1bf   :  { %5848 = vst [vmem:[#allocation200_spill] sm:$0xff] %v3983_v52  ;;  %v4001_v6 = vadd.f32 %v1178_v58, %v5857_v60  ;;  %v499_v51 = vadd.f32 %v498_v2, %v289_v21  ;;  %v1834_v58 = vrot.slane %v39_v50, 4  ;;  %v1835_v60 = vrot.slane %v39_v50, 5 }
 0x1c0   :  { %5849 = vst [vmem:[#allocation201_spill] sm:$0xff] %v3986_v4  ;;  %v1837_v0 = vrot.slane %v39_v50, 7  ;;  %v4038_v43 = vperm.slane %v39_v50, 0  ;;  %v5984_v4 = vld [vmem:[#allocation124_spill] sm:$0xff] }
 0x1c1   :  { %5850 = vst [vmem:[#allocation202_spill] sm:$0xff] %v3989_v23  ;;  %v1151_v36 = vmul.f32 %v3896_v54, %v499_v51  ;;  %v1155_v53 = vmul.f32 %v3898_v32, %v499_v51  ;;  %v1163_v9 = vmul.f32 %v3937_v5, %v499_v51  ;;  %v1171_v42 = vmul.f32 %v3953_v30, %v499_v51 }
 0x1c2   :  { %5852 = vst [vmem:[#allocation47_spill] sm:$0xff] %v3992_v57  ;;  %v1175_v10 = vmul.f32 %v3955_v39, %v499_v51  ;;  %v1179_v21 = vmul.f32 %v3957_v46, %v499_v51  ;;  %v4058_v50 = vperm.slane %v1834_v58, 0  ;;  %v4076_v58 = vmul.f32 %v4038_v43, %v592_v12  ;;  %v5974_v57 = vld [vmem:[#allocation178_spill] sm:$0xff] }
 0x1c3   :  { %5854 = vst [vmem:[#allocation48_spill] sm:$0xff] %v3995_v13  ;;  %v4036_v2 = vadd.f32 %v1151_v36, %v5867_v33  ;;  %v4056_v36 = vperm.slane %v1833_v56, 0  ;;  %v292_v33 = vpop.f32.mrf.mxu0  ;;  %v5881_v56 = vld [vmem:[#allocation70_spill] sm:$0xff] }
 0x1c4   :  { %5856 = vst [vmem:[#allocation49_spill] sm:$0xff] %v3998_v37  ;;  %v5875_v37 = vld [vmem:[#allocation67_spill] sm:$0xff] }
 0x1c5   :  { %5858 = vst [vmem:[#allocation50_spill] sm:$0xff] %v4001_v6 }
 0x1c6   :  { %5859 = vst [vmem:[#allocation203_spill] sm:$0xff] %v4004_v40  ;;  %v5873_v40 = vld [vmem:[#allocation66_spill] sm:$0xff] }
 0x1c7   :  { %5860 = vst [vmem:[#allocation204_spill] sm:$0xff] %v4007_v19  ;;  %v4049_v6 = vadd.f32 %v1163_v9, %v5873_v40  ;;  %v4068_v40 = vperm.slane %v1836_v49, 0  ;;  %v4073_v9 = vadd.f32 %v1179_v21, %v5881_v56  ;;  %v4088_v49 = vmul.f32 %v4058_v50, %v592_v12 }
 0x1c8   :  { %5861 = vst [vmem:[#allocation205_spill] sm:$0xff] %v4010_v11  ;;  %v5871_v11 = vld [vmem:[#allocation65_spill] sm:$0xff] }
 0x1c9   :  { %5862 = vst [vmem:[#allocation206_spill] sm:$0xff] %v4013_v62 }
 0x1ca   :  { %5863 = vst [vmem:[#allocation207_spill] sm:$0xff] %v4016_v15  ;;  %v1159_v15 = vmul.f32 %v3935_v38, %v499_v51 }
 0x1cb   :  { %5864 = vst [vmem:[#allocation208_spill] sm:$0xff] %v4019_v8  ;;  %v1167_v8 = vmul.f32 %v3939_v1, %v499_v51  ;;  %v4054_v51 = vperm.slane %v1832_v61, 0  ;;  %v501_v61 = vpop.f32.mrf.mxu1 }
 0x1cc   :  { %5865 = vst [vmem:[#allocation209_spill] sm:$0xff] %v4022_v47  ;;  %v5869_v47 = vld [vmem:[#allocation64_spill] sm:$0xff]  ;;  %v4046_v19 = vadd.f32 %v1159_v15, %v5871_v11  ;;  %v5879_v11 = vld [vmem:[#allocation69_spill] sm:$0xff]  ;;  %v502_v21 = vadd.f32 %v501_v61, %v292_v33 }
 0x1cd   :  { %5866 = vst [vmem:[#allocation210_spill] sm:$0xff] %v4025_v26  ;;  %v4040_v26 = vperm.slane %v1831_v14, 0  ;;  %v4043_v62 = vadd.f32 %v1155_v53, %v5869_v47  ;;  %v4052_v13 = vadd.f32 %v1167_v8, %v5875_v37  ;;  %v4060_v14 = vperm.slane %v1835_v60, 0  ;;  %v385_v47 = vpop.f32.mrf.mxu2  ;;  %v5877_v53 = vld [vmem:[#allocation68_spill] sm:$0xff]  ;;  %v594_v8 = vpop.f32.mrf.mxu3 }
 0x1ce   :  { %5868 = vst [vmem:[#allocation63_spill] sm:$0xff] %v4036_v2  ;;  %v4066_v15 = vadd.f32 %v1175_v10, %v5879_v11  ;;  %v4070_v37 = vperm.slane %v1837_v0, 0  ;;  %v4085_v10 = vmul.f32 %v4056_v36, %v592_v12  ;;  %v4099_v11 = vmul.f32 %v4068_v40, %v592_v12 }
 0x1cf   :  { %5870 = vst [vmem:[#allocation64_spill] sm:$0xff] %v4043_v62  ;;  %v4063_v62 = vadd.f32 %v1171_v42, %v5877_v53  ;;  %v4079_v60 = vmul.f32 %v4040_v26, %v592_v12  ;;  %v4082_v42 = vmul.f32 %v4054_v51, %v592_v12  ;;  %v4091_v0 = vmul.f32 %v4060_v14, %v592_v12  ;;  %v4096_v53 = vld [vmem:[%s5460_s2 + $0x18] sm:$0xff] }
 0x1d0   :  { %5872 = vst [vmem:[#allocation65_spill] sm:$0xff] %v4046_v19  ;;  %v4102_v56 = vmul.f32 %v4070_v37, %v592_v12  ;;  %v1160_v33 = vmul.f32 %v3935_v38, %v502_v21  ;;  %v1164_v61 = vmul.f32 %v3937_v5, %v502_v21  ;;  %v1180_v12 = vmul.f32 %v3957_v46, %v502_v21  ;;  %v5899_v19 = vld [vmem:[#allocation81_spill] sm:$0xff] }
 0x1d1   :  { %5874 = vst [vmem:[#allocation66_spill] sm:$0xff] %v4049_v6 }
 0x1d2   :  { %5876 = vst [vmem:[#allocation67_spill] sm:$0xff] %v4052_v13  ;;  %v5897_v13 = vld [vmem:[#allocation80_spill] sm:$0xff] }
 0x1d3   :  { %5878 = vst [vmem:[#allocation68_spill] sm:$0xff] %v4063_v62 }
 0x1d4   :  { %5880 = vst [vmem:[#allocation69_spill] sm:$0xff] %v4066_v15  ;;  %v5895_v15 = vld [vmem:[#allocation79_spill] sm:$0xff] }
 0x1d5   :  { %5882 = vst [vmem:[#allocation70_spill] sm:$0xff] %v4073_v9  ;;  %v4123_v9 = vadd.f32 %v1164_v61, %v3572_v3  ;;  %v597_v3 = vpop.f32.mrf.mxu3  ;;  %v1216_v61 = vrot.slane %v4096_v53, 2 }
 0x1d6   :  { %5883 = vst [vmem:[#allocation211_spill] sm:$0xff] %v4076_v58  ;;  %v1172_v58 = vmul.f32 %v3953_v30, %v502_v21 }
 0x1d7   :  { %5884 = vst [vmem:[#allocation212_spill] sm:$0xff] %v4079_v60  ;;  %v1156_v60 = vmul.f32 %v3898_v32, %v502_v21 }
 0x1d8   :  { %5885 = vst [vmem:[#allocation213_spill] sm:$0xff] %v4082_v42  ;;  %v595_v42 = vadd.f32 %v594_v8, %v385_v47  ;;  %v4129_v6 = vadd.f32 %v1172_v58, %v5897_v13  ;;  %v1218_v13 = vrot.slane %v4096_v53, 4 }
 0x1d9   :  { %5886 = vst [vmem:[#allocation214_spill] sm:$0xff] %v4085_v10  ;;  %v1215_v10 = vrot.slane %v4096_v53, 1  ;;  %v4117_v8 = vadd.f32 %v1156_v60, %v3566_v25  ;;  %v295_v25 = vpop.f32.mrf.mxu0  ;;  %v388_v60 = vpop.f32.mrf.mxu2 }
 0x1da   :  { %5887 = vst [vmem:[#allocation215_spill] sm:$0xff] %v4088_v49  ;;  %v1152_v49 = vmul.f32 %v3896_v54, %v502_v21  ;;  %v4144_v58 = vmul.f32 %v4040_v26, %v595_v42 }
 0x1db   :  { %5888 = vst [vmem:[#allocation216_spill] sm:$0xff] %v4091_v0  ;;  %v1168_v0 = vmul.f32 %v3939_v1, %v502_v21 }
 0x1dc   :  { %5889 = vst [vmem:[#allocation217_spill] sm:$0xff] %v4099_v11  ;;  %v1176_v11 = vmul.f32 %v3955_v39, %v502_v21  ;;  %v4114_v47 = vadd.f32 %v1152_v49, %v3557_v48  ;;  %v5901_v48 = vld [vmem:[#allocation82_spill] sm:$0xff] }
 0x1dd   :  { %5890 = vst [vmem:[#allocation218_spill] sm:$0xff] %v4102_v56  ;;  %v4120_v56 = vadd.f32 %v1160_v33, %v3569_v41  ;;  %v4126_v62 = vadd.f32 %v1168_v0, %v5895_v15  ;;  %v4135_v49 = vadd.f32 %v1180_v12, %v5901_v48  ;;  %v4138_v41 = vmul.f32 %v4038_v43, %v595_v42  ;;  %v504_v33 = vpop.f32.mrf.mxu1 }
 0x1de   :  { %5891 = vst [vmem:[#allocation219_spill] sm:$0xff] %v4114_v47  ;;  %v4132_v21 = vadd.f32 %v1176_v11, %v5899_v19  ;;  %v1217_v15 = vrot.slane %v4096_v53, 3  ;;  %v4147_v19 = vmul.f32 %v4054_v51, %v595_v42  ;;  %v4150_v0 = vmul.f32 %v4056_v36, %v595_v42 }
 0x1df   :  { %5892 = vst [vmem:[#allocation220_spill] sm:$0xff] %v4117_v8  ;;  %v4153_v11 = vmul.f32 %v4058_v50, %v595_v42  ;;  %v4156_v12 = vmul.f32 %v4060_v14, %v595_v42  ;;  %v4159_v48 = vmul.f32 %v4068_v40, %v595_v42  ;;  %v5972_v8 = vld [vmem:[#allocation123_spill] sm:$0xff] }
 0x1e0   :  { %5893 = vst [vmem:[#allocation221_spill] sm:$0xff] %v4120_v56 }
 0x1e1   :  { %5894 = vst [vmem:[#allocation222_spill] sm:$0xff] %v4123_v9 }
 0x1e2   :  { %5896 = vst [vmem:[#allocation79_spill] sm:$0xff] %v4126_v62 }
 0x1e3   :  { %5898 = vst [vmem:[#allocation80_spill] sm:$0xff] %v4129_v6 }
 0x1e4   :  { %5900 = vst [vmem:[#allocation81_spill] sm:$0xff] %v4132_v21  ;;  %v1220_v21 = vrot.slane %v4096_v53, 6 }
 0x1e5   :  { %5902 = vst [vmem:[#allocation82_spill] sm:$0xff] %v4135_v49  ;;  %v4161_v49 = vadd.f32 %v597_v3, %v388_v60  ;;  %v5911_v3 = vld [vmem:[#allocation92_spill] sm:$0xff] }
 0x1e6   :  { %5903 = vst [vmem:[#allocation223_spill] sm:$0xff] %v4138_v41  ;;  %v505_v41 = vadd.f32 %v504_v33, %v295_v25 }
 0x1e7   :  { %5904 = vst [vmem:[#allocation224_spill] sm:$0xff] %v4144_v58  ;;  %v4164_v58 = vmul.f32 %v4070_v37, %v595_v42 }
 0x1e8   :  { %5905 = vst [vmem:[#allocation225_spill] sm:$0xff] %v4147_v19  ;;  %v1219_v19 = vrot.slane %v4096_v53, 5  ;;  %v1157_v6 = vmul.f32 %v3898_v32, %v505_v41  ;;  %v1169_v25 = vmul.f32 %v3939_v1, %v505_v41  ;;  %v1173_v60 = vmul.f32 %v3953_v30, %v505_v41  ;;  %v5920_v30 = vld [vmem:[#allocation96_spill] sm:$0xff] }
 0x1e9   :  { %5906 = vst [vmem:[#allocation226_spill] sm:$0xff] %v4150_v0  ;;  %v1221_v0 = vrot.slane %v4096_v53, 7  ;;  %v1177_v42 = vmul.f32 %v3955_v39, %v505_v41  ;;  %v1181_v33 = vmul.f32 %v3957_v46, %v505_v41  ;;  %v5922_v39 = vld [vmem:[#allocation97_spill] sm:$0xff] }
 0x1ea   :  { %5907 = vst [vmem:[#allocation227_spill] sm:$0xff] %v4153_v11  ;;  %v1153_v11 = vmul.f32 %v3896_v54, %v505_v41  ;;  %v4181_v62 = vadd.f32 %v1157_v6, %v3642_v27  ;;  %v5914_v54 = vld [vmem:[#allocation93_spill] sm:$0xff]  ;;  %v4193_v56 = vadd.f32 %v1173_v60, %v5920_v30  ;;  %v298_v27 = vpop.f32.mrf.mxu0  ;;  %v391_v6 = vpop.f32.mrf.mxu2  ;;  %v4210_v60 = vperm.slane %v1216_v61, 0 }
 0x1eb   :  { %5908 = vst [vmem:[#allocation228_spill] sm:$0xff] %v4156_v12  ;;  %v1161_v12 = vmul.f32 %v3935_v38, %v505_v41  ;;  %v5916_v38 = vld [vmem:[#allocation94_spill] sm:$0xff]  ;;  %v4196_v46 = vadd.f32 %v1177_v42, %v5922_v39  ;;  %v4214_v42 = vmul.f32 %v4040_v26, %v4161_v49  ;;  %v4228_v61 = vperm.slane %v1217_v15, 0 }
 0x1ec   :  { %5909 = vst [vmem:[#allocation229_spill] sm:$0xff] %v4159_v48  ;;  %v1165_v48 = vmul.f32 %v3937_v5, %v505_v41  ;;  %v5918_v5 = vld [vmem:[#allocation95_spill] sm:$0xff]  ;;  %v5924_v41 = vld [vmem:[#allocation98_spill] sm:$0xff]  ;;  %v4230_v30 = vperm.slane %v1218_v13, 0  ;;  %v4232_v39 = vperm.slane %v1219_v19, 0 }
 0x1ed   :  { %5910 = vst [vmem:[#allocation230_spill] sm:$0xff] %v4164_v58  ;;  %v4178_v58 = vadd.f32 %v1153_v11, %v5911_v3  ;;  %v4184_v32 = vadd.f32 %v1161_v12, %v5914_v54  ;;  %v4190_v1 = vadd.f32 %v1169_v25, %v5918_v5  ;;  %v4199_v11 = vadd.f32 %v1181_v33, %v5924_v41  ;;  %v600_v54 = vpop.f32.mrf.mxu3 }
 0x1ee   :  { %5913 = vst [vmem:[#allocation231_spill] sm:$0xff] %v4181_v62  ;;  %v4187_v9 = vadd.f32 %v1165_v48, %v5916_v38  ;;  %v4203_v12 = vmul.f32 %v4038_v43, %v4161_v49  ;;  %v507_v48 = vpop.f32.mrf.mxu1  ;;  %v4206_v3 = vperm.slane %v4096_v53, 0  ;;  %v4208_v25 = vperm.slane %v1215_v10, 0  ;;  %v5936_v62 = vld [vmem:[#allocation9_spill] sm:$0xff] }
 0x1ef   :  { %5912 = vst [vmem:[#allocation92_spill] sm:$0xff] %v4178_v58  ;;  %v4218_v33 = vmul.f32 %v4054_v51, %v4161_v49  ;;  %v4222_v38 = vmul.f32 %v4056_v36, %v4161_v49  ;;  %v4226_v5 = vmul.f32 %v4058_v50, %v4161_v49  ;;  %v508_v10 = vadd.f32 %v507_v48, %v298_v27  ;;  %v5937_v58 = vld [vmem:[#allocation10_spill] sm:$0xff] }
 0x1f0   :  { %5915 = vst [vmem:[#allocation93_spill] sm:$0xff] %v4184_v32  ;;  %v4234_v41 = vperm.slane %v1220_v21, 0 }
 0x1f1   :  { %5917 = vst [vmem:[#allocation94_spill] sm:$0xff] %v4187_v9  ;;  %v1250_v15 = vmul.f32 %v4228_v61, %v508_v10  ;;  %v1254_v13 = vmul.f32 %v4230_v30, %v508_v10  ;;  %v1258_v19 = vmul.f32 %v4232_v39, %v508_v10  ;;  %v5935_v9 = vld [vmem:[#allocation8_spill] sm:$0xff] }
 0x1f2   :  { %5919 = vst [vmem:[#allocation95_spill] sm:$0xff] %v4190_v1  ;;  %v1262_v21 = vmul.f32 %v4234_v41, %v508_v10 }
 0x1f3   :  { %5921 = vst [vmem:[#allocation96_spill] sm:$0xff] %v4193_v56 }
 0x1f4   :  { %5923 = vst [vmem:[#allocation97_spill] sm:$0xff] %v4196_v46  ;;  %v1290_v46 = vadd.f32 %v1258_v19, %v3718_v31  ;;  %v1294_v56 = vadd.f32 %v1262_v21, %v3721_v44  ;;  %v5942_v19 = vld [vmem:[#allocation15_spill] sm:$0xff] }
 0x1f5   :  { %5925 = vst [vmem:[#allocation98_spill] sm:$0xff] %v4199_v11  ;;  %v1286_v11 = vadd.f32 %v1254_v13, %v3715_v7  ;;  %v5941_v13 = vld [vmem:[#allocation14_spill] sm:$0xff] }
 0x1f6   :  { %5926 = vst [vmem:[#allocation232_spill] sm:$0xff] %v4203_v12  ;;  %v1242_v12 = vmul.f32 %v4208_v25, %v508_v10  ;;  %v1470_v31 = vadd.f32 %v5941_v13, %v1294_v56  ;;  %v510_v21 = vpop.f32.mrf.mxu1 }
 0x1f7   :  { %5927 = vst [vmem:[#allocation233_spill] sm:$0xff] %v4214_v42  ;;  %v4236_v42 = vperm.slane %v1221_v0, 0 }
 0x1f8   :  { %5928 = vst [vmem:[#allocation234_spill] sm:$0xff] %v4218_v33  ;;  %v4238_v33 = vadd.f32 %v600_v54, %v391_v6  ;;  %v1274_v6 = vadd.f32 %v1242_v12, %v3706_v34  ;;  %v1282_v54 = vadd.f32 %v1250_v15, %v3712_v29  ;;  %v301_v12 = vpop.f32.mrf.mxu0  ;;  %v5940_v15 = vld [vmem:[#allocation13_spill] sm:$0xff] }
 0x1f9   :  { %5929 = vst [vmem:[#allocation235_spill] sm:$0xff] %v4222_v38  ;;  %v1238_v38 = vmul.f32 %v4206_v3, %v508_v10  ;;  %v1266_v0 = vmul.f32 %v4236_v42, %v508_v10  ;;  %v1466_v7 = vadd.f32 %v5940_v15, %v1290_v46 }
 0x1fa   :  { %5930 = vst [vmem:[#allocation236_spill] sm:$0xff] %v4226_v5  ;;  %v1246_v5 = vmul.f32 %v4210_v60, %v508_v10  ;;  %v1450_v10 = vadd.f32 %v5936_v62, %v1274_v6  ;;  %v4270_v62 = vmul.f32 %v4068_v40, %v4161_v49  ;;  %v4278_v46 = vmul.f32 %v4038_v43, %v4238_v33 }
 0x1fb   :  { %5931 = vst [vmem:[#allocation237_spill] sm:$0xff] %v4230_v30  ;;  %v1270_v27 = vadd.f32 %v1238_v38, %v3703_v16  ;;  %v1298_v1 = vadd.f32 %v1266_v0, %v3724_v63  ;;  %v5938_v38 = vld [vmem:[#allocation11_spill] sm:$0xff]  ;;  %v603_v63 = vpop.f32.mrf.mxu3  ;;  %v4282_v56 = vmul.f32 %v4040_v26, %v4238_v33  ;;  %v511_v0 = vadd.f32 %v510_v21, %v301_v12  ;;  %v2410_v26 = vld [vmem:[%s5460_s2] sm:$0xff] }
 0x1fc   :  { %5932 = vst [vmem:[#allocation238_spill] sm:$0xff] %v4232_v39  ;;  %v1278_v48 = vadd.f32 %v1246_v5, %v3709_v24  ;;  %v1458_v34 = vadd.f32 %v5938_v38, %v1282_v54  ;;  %v394_v24 = vpop.f32.mrf.mxu2  ;;  %v5939_v5 = vld [vmem:[#allocation12_spill] sm:$0xff]  ;;  %v628_v43 = vsel %vm627_vm0, %v2410_v26, 0.0  ;;  %v633_v54 = vsel %vm627_vm0, %v4096_v53, 0.0  ;;  %v2412_v38 = vld [vmem:[%s5460_s2 + $0x20] sm:$0xff] }
 0x1fd   :  { %5933 = vst [vmem:[#allocation239_spill] sm:$0xff] %v4234_v41  ;;  %v1446_v32 = vadd.f32 %v5935_v9, %v1270_v27  ;;  %v1462_v29 = vadd.f32 %v5939_v5, %v1286_v11  ;;  %v1474_v44 = vadd.f32 %v5942_v19, %v1298_v1  ;;  %v4266_v9 = vmul.f32 %v4060_v14, %v4161_v49 }
 0x1fe   :  { %5934 = vst [vmem:[#allocation240_spill] sm:$0xff] %v4236_v42  ;;  %v1454_v16 = vadd.f32 %v5937_v58, %v1278_v48  ;;  %v4274_v58 = vmul.f32 %v4070_v37, %v4161_v49  ;;  %v4286_v1 = vmul.f32 %v4054_v51, %v4238_v33  ;;  %v4290_v11 = vmul.f32 %v4056_v36, %v4238_v33  ;;  %v2411_v51 = vld [vmem:[%s5460_s2 + $0x8] sm:$0xff]  ;;  %v5951_v48 = vld [vmem:[#allocation52_spill] sm:$0xff] }
 0x1ff   :  { %5943 = vst [vmem:[#allocation8_spill] sm:$0xff] %v4266_v9  ;;  %v4294_v49 = vmul.f32 %v4058_v50, %v4238_v33  ;;  %v4296_v27 = vadd.f32 %v603_v63, %v394_v24  ;;  %v629_v36 = vsel %vm627_vm0, %v2411_v51, 0.0  ;;  %v631_v50 = vsel %vm627_vm0, %v5951_v48, 0.0  ;;  %v5952_v48 = vld [vmem:[#allocation173_spill] sm:$0xff]  ;;  %v5971_v9 = vld [vmem:[#allocation122_spill] sm:$0xff] }
 0x200   :  { %5944 = vst [vmem:[#allocation9_spill] sm:$0xff] %v4270_v62  ;;  %v630_v6 = vadd.f32 %v629_v36, %v628_v43  ;;  %v635_v12 = vsel %vm627_vm0, %v2412_v38, 0.0  ;;  %v1239_v24 = vmul.f32 %v4206_v3, %v511_v0  ;;  %v1243_v5 = vmul.f32 %v4208_v25, %v511_v0  ;;  %v5956_v62 = vld [vmem:[#allocation23_spill] sm:$0xff] }
 0x201   :  { %5945 = vst [vmem:[#allocation10_spill] sm:$0xff] %v4274_v58  ;;  %v1247_v15 = vmul.f32 %v4210_v60, %v511_v0  ;;  %v1251_v13 = vmul.f32 %v4228_v61, %v511_v0  ;;  %v1255_v19 = vmul.f32 %v4230_v30, %v511_v0  ;;  %v1259_v21 = vmul.f32 %v4232_v39, %v511_v0 }
 0x202   :  { %5946 = vst [vmem:[#allocation11_spill] sm:$0xff] %v4278_v46  ;;  %v1263_v53 = vmul.f32 %v4234_v41, %v511_v0  ;;  %v1267_v63 = vmul.f32 %v4236_v42, %v511_v0  ;;  %v1271_v26 = vadd.f32 %v1239_v24, %v3771_v45  ;;  %v1275_v43 = vadd.f32 %v1243_v5, %v3774_v17  ;;  %v5955_v46 = vld [vmem:[#allocation7_spill] sm:$0xff]  ;;  %v48_v0 = vld [vmem:[%s5460_s2 + $0x38] sm:$0xff]  ;;  %v5959_v5 = vld [vmem:[#allocation26_spill] sm:$0xff] }
 0x203   :  { %5947 = vst [vmem:[#allocation12_spill] sm:$0xff] %v4282_v56  ;;  %v1279_v51 = vadd.f32 %v1247_v15, %v3777_v20  ;;  %v1283_v36 = vadd.f32 %v1251_v13, %v3780_v28  ;;  %v1287_v38 = vadd.f32 %v1255_v19, %v5952_v48  ;;  %v5957_v17 = vld [vmem:[#allocation24_spill] sm:$0xff]  ;;  %v5958_v20 = vld [vmem:[#allocation25_spill] sm:$0xff]  ;;  %v641_v48 = vsel %vm627_vm0, %v48_v0, 0.0 }
 0x204   :  { %5948 = vst [vmem:[#allocation13_spill] sm:$0xff] %v4286_v1  ;;  %v5954_v1 = vld [vmem:[#allocation6_spill] sm:$0xff]  ;;  %v1299_v58 = vadd.f32 %v1267_v63, %v5955_v46  ;;  %v4334_v45 = vadd.f32 %v5956_v62, %v1271_v26  ;;  %v4337_v24 = vadd.f32 %v5957_v17, %v1275_v43  ;;  %v5961_v46 = vld [vmem:[#allocation28_spill] sm:$0xff]  ;;  %v5962_v19 = vld [vmem:[#allocation29_spill] sm:$0xff]  ;;  %v632_v63 = vadd.f32 %v631_v50, %v630_v6 }
 0x205   :  { %5949 = vst [vmem:[#allocation14_spill] sm:$0xff] %v4290_v11  ;;  %v1295_v56 = vadd.f32 %v1263_v53, %v5954_v1  ;;  %v4340_v28 = vadd.f32 %v5958_v20, %v1279_v51  ;;  %v4343_v15 = vadd.f32 %v5959_v5, %v1283_v36  ;;  %v5963_v62 = vld [vmem:[#allocation30_spill] sm:$0xff]  ;;  %v5964_v51 = vld [vmem:[#allocation160_spill] sm:$0xff]  ;;  %v5966_v17 = vld [vmem:[#allocation117_spill] sm:$0xff]  ;;  %v1650_v47 = vadd.f32 %v5972_v8, %v1474_v44 }
 0x206   :  { %5950 = vst [vmem:[#allocation15_spill] sm:$0xff] %v4294_v49  ;;  %v5953_v49 = vld [vmem:[#allocation5_spill] sm:$0xff]  ;;  %v4355_v53 = vadd.f32 %v5963_v62, %v1299_v58  ;;  %v2413_v26 = vld [vmem:[%s5460_s2 + $0x28] sm:$0xff]  ;;  %v639_v36 = vsel %vm627_vm0, %v5964_v51, 0.0  ;;  %v5968_v58 = vld [vmem:[#allocation119_spill] sm:$0xff]  ;;  %v634_v6 = vadd.f32 %v633_v54, %v632_v63  ;;  %v1919_v8 = vrot.slane %v48_v0, 1 }
 0x207   :  { %v1291_v11 = vadd.f32 %v1259_v21, %v5953_v49  ;;  %v5960_v49 = vld [vmem:[#allocation27_spill] sm:$0xff]  ;;  %v4352_v21 = vadd.f32 %v5962_v19, %v1295_v56  ;;  %v637_v43 = vsel %vm627_vm0, %v2413_v26, 0.0  ;;  %v1626_v56 = vadd.f32 %v5966_v17, %v1450_v10  ;;  %v5967_v20 = vld [vmem:[#allocation118_spill] sm:$0xff]  ;;  %v5969_v50 = vld [vmem:[#allocation120_spill] sm:$0xff] }
 0x208   :  { %v4346_v1 = vadd.f32 %v5960_v49, %v1287_v38  ;;  %v1630_v5 = vadd.f32 %v5967_v20, %v1454_v16  ;;  %v1634_v49 = vadd.f32 %v5968_v58, %v1458_v34  ;;  %v5970_v19 = vld [vmem:[#allocation121_spill] sm:$0xff]  ;;  %v1646_v26 = vadd.f32 %v5971_v9, %v1470_v31  ;;  %v5976_v17 = vld [vmem:[#allocation180_spill] sm:$0xff]  ;;  %v5978_v54 = vld [vmem:[#allocation182_spill] sm:$0xff] }
 0x209   :  { %v4349_v13 = vadd.f32 %v5961_v46, %v1291_v11  ;;  %v5965_v11 = vld [vmem:[#allocation116_spill] sm:$0xff]  ;;  %v1638_v46 = vadd.f32 %v5969_v50, %v1462_v29  ;;  %v1642_v62 = vadd.f32 %v5970_v19, %v1466_v7  ;;  %v5973_v51 = vld [vmem:[#allocation177_spill] sm:$0xff]  ;;  %v1802_v23 = vadd.f32 %v5974_v57, %v1626_v56  ;;  %v5979_v29 = vld [vmem:[#allocation183_spill] sm:$0xff] }
 0x20a   :  { %v1622_v38 = vadd.f32 %v5965_v11, %v1446_v32  ;;  %v5975_v32 = vld [vmem:[#allocation179_spill] sm:$0xff]  ;;  %v636_v10 = vadd.f32 %v635_v12, %v634_v6  ;;  %v1810_v16 = vadd.f32 %v5976_v17, %v1634_v49  ;;  %v5977_v20 = vld [vmem:[#allocation181_spill] sm:$0xff]  ;;  %v4379_v58 = vadd.f32 %v5979_v29, %v1646_v26  ;;  %v5980_v7 = vld [vmem:[#allocation184_spill] sm:$0xff]  ;;  %v304_v29 = vpop.f32.mrf.mxu0 }
 0x20b   :  { %v1806_v11 = vadd.f32 %v5975_v32, %v1630_v5  ;;  %v1814_v34 = vadd.f32 %v5977_v20, %v1638_v46  ;;  %v1818_v63 = vadd.f32 %v5978_v54, %v1642_v62  ;;  %v4382_v31 = vadd.f32 %v5980_v7, %v1650_v47  ;;  %v397_v7 = vpop.f32.mrf.mxu2 }
 0x20c   :  { %v1798_v2 = vadd.f32 %v5973_v51, %v1622_v38  ;;  %v1920_v44 = vrot.slane %v48_v0, 2  ;;  %v638_v9 = vadd.f32 %v637_v43, %v636_v10  ;;  %v1921_v38 = vrot.slane %v48_v0, 3 }
 0x20d   :  { %v1922_v57 = vrot.slane %v48_v0, 4  ;;  %v1923_v56 = vrot.slane %v48_v0, 5  ;;  %v1924_v5 = vrot.slane %v48_v0, 6  ;;  %v1925_v12 = vrot.slane %v48_v0, 7 }
 0x20e   :  { %v4384_v6 = vperm.slane %v48_v0, 0  ;;  %v4386_v49 = vperm.slane %v1919_v8, 0  ;;  %v640_v50 = vadd.f32 %v639_v36, %v638_v9  ;;  %v4388_v46 = vperm.slane %v1920_v44, 0  ;;  %v606_v9 = vpop.f32.mrf.mxu3 }
 0x20f   :  { %v4390_v19 = vperm.slane %v1921_v38, 0  ;;  %v4392_v62 = vperm.slane %v1922_v57, 0  ;;  %v4394_v47 = vperm.slane %v1923_v56, 0  ;;  %v4396_v26 = vperm.slane %v1924_v5, 0 }
 0x210   :  { %v4398_v43 = vperm.slane %v1925_v12, 0  ;;  %v1942_v51 = vmul.f32 %v4384_v6, %v4296_v27  ;;  %v642_v0 = vadd.f32 %v641_v48, %v640_v50  ;;  %v1946_v32 = vmul.f32 %v4386_v49, %v4296_v27 }
 0x211   :  { %v1950_v36 = vmul.f32 %v4388_v46, %v4296_v27  ;;  %v1954_v10 = vmul.f32 %v4390_v19, %v4296_v27  ;;  %v4410_v17 = vmul.f32 %v4060_v14, %v4238_v33  ;;  %v4414_v20 = vmul.f32 %v4068_v40, %v4238_v33  ;;  %v513_v40 = vpop.f32.mrf.mxu1 }
 0x212   :  { %v1958_v48 = vmul.f32 %v4392_v62, %v4296_v27  ;;  %v1962_v54 = vmul.f32 %v4394_v47, %v4296_v27  ;;  %v4422_v8 = vmul.f32 %v4070_v37, %v4238_v33  ;;  %2406 = vrcp.f32 %v642_v0 }
 0x213   :  { %5981 = vst [vmem:[#allocation52_spill] sm:$0xff] %v4410_v17  ;;  %v654_v44 = vand.u32 2147483648, %v642_v0  ;;  %v4426_v14 = vmul.f32 %v4396_v26, %v4296_v27  ;;  %vm648_vm1 = vweird.f32 %v642_v0  ;;  %v652_v38 = vand.u32 2147483647, %v642_v0 }
 0x214   :  { %5982 = vst [vmem:[#allocation173_spill] sm:$0xff] %v4414_v20  ;;  %v1970_v57 = vmul.f32 %v4398_v43, %v4296_v27  ;;  %v4430_v56 = vadd.f32 %v1942_v51, %v1798_v2  ;;  %v4432_v12 = vadd.f32 %v1946_v32, %v1802_v23  ;;  %v4434_v37 = vadd.f32 %v1950_v36, %v1806_v11  ;;  %v5985_v2 = vld [vmem:[#allocation125_spill] sm:$0xff]  ;;  %v5986_v23 = vld [vmem:[#allocation126_spill] sm:$0xff]  ;;  %v5987_v11 = vld [vmem:[#allocation127_spill] sm:$0xff] }
 0x215   :  { %5983 = vst [vmem:[#allocation5_spill] sm:$0xff] %v4422_v8  ;;  %v655_v5 = vor.u32 1.1754944e-38, %v654_v44  ;;  %v4436_v33 = vadd.f32 %v1954_v10, %v1810_v16  ;;  %v4438_v50 = vadd.f32 %v1958_v48, %v1814_v34  ;;  %v4440_v8 = vadd.f32 %v1962_v54, %v1818_v63  ;;  %v5990_v44 = vld [vmem:[#allocation16_spill] sm:$0xff] }
 0x216   :  { %v514_v20 = vadd.f32 %v513_v40, %v304_v29  ;;  %v4442_v17 = vadd.f32 %v606_v9, %v397_v7  ;;  %v1623_v52 = vadd.f32 %v5984_v4, %v4334_v45  ;;  %v1627_v27 = vadd.f32 %v5985_v2, %v4337_v24  ;;  %v5991_v9 = vld [vmem:[#allocation17_spill] sm:$0xff]  ;;  %v5992_v2 = vld [vmem:[#allocation18_spill] sm:$0xff] }
 0x217   :  { %v1631_v51 = vadd.f32 %v5986_v23, %v4340_v28  ;;  %v1635_v16 = vadd.f32 %v5987_v11, %v4343_v15  ;;  %vm4452_vm2 = vcmp.eq.f32.partialorder %v652_v38, 8.507059e+37 }
 0x218   :  { %v1240_v63 = vmul.f32 %v4206_v3, %v514_v20  ;;  %v1244_v32 = vmul.f32 %v4208_v25, %v514_v20  ;;  %v1248_v36 = vmul.f32 %v4210_v60, %v514_v20  ;;  %v1252_v4 = vmul.f32 %v4228_v61, %v514_v20  ;;  %v2407_v45 = vpop.eup %2406 }
 0x219   :  { %v1256_v24 = vmul.f32 %v4230_v30, %v514_v20  ;;  %v1260_v28 = vmul.f32 %v4232_v39, %v514_v20  ;;  %v1264_v10 = vmul.f32 %v4234_v41, %v514_v20  ;;  %v1268_v15 = vmul.f32 %v4236_v42, %v514_v20  ;;  %v5994_v41 = vld [vmem:[#allocation20_spill] sm:$0xff]  ;;  %v5995_v20 = vld [vmem:[#allocation39_spill] sm:$0xff] }
 0x21a   :  { %v644_v48 = vmul.f32 %v2407_v45, %v642_v0  ;;  %vm649_vm3 = vweird.f32 %v2407_v45  ;;  %v1272_v54 = vadd.f32 %v1240_v63, %v3844_v55  ;;  %v1276_v29 = vadd.f32 %v1244_v32, %v3847_v59  ;;  %v5996_v30 = vld [vmem:[#allocation40_spill] sm:$0xff]  ;;  %v5997_v59 = vld [vmem:[#allocation41_spill] sm:$0xff]  ;;  %v6010_v0 = vld [vmem:[#allocation22_spill] sm:$0xff] }
 0x21b   :  { %v1280_v7 = vadd.f32 %v1248_v36, %v3850_v22  ;;  %v1284_v40 = vadd.f32 %v1252_v4, %v5990_v44  ;;  %v1288_v38 = vadd.f32 %v1256_v24, %v5991_v9  ;;  %v1292_v23 = vadd.f32 %v1260_v28, %v5992_v2  ;;  %v5998_v22 = vld [vmem:[#allocation42_spill] sm:$0xff]  ;;  %v5999_v36 = vld [vmem:[#allocation43_spill] sm:$0xff]  ;;  %v6000_v28 = vld [vmem:[#allocation44_spill] sm:$0xff] }
 0x21c   :  { %v645_v11 = vsub.f32 1.0, %v644_v48  ;;  %v1296_v35 = vadd.f32 %v1264_v10, %v5993_v18  ;;  %v1300_v39 = vadd.f32 %v1268_v15, %v5994_v41  ;;  %v4473_v42 = vadd.f32 %v5995_v20, %v1272_v54  ;;  %v6001_v41 = vld [vmem:[#allocation45_spill] sm:$0xff]  ;;  %v6002_v15 = vld [vmem:[#allocation46_spill] sm:$0xff]  ;;  %vm4498_vm4 = vmor %vm648_vm1, %vm649_vm3 }
 0x21d   :  { %v4476_v55 = vadd.f32 %v5996_v30, %v1276_v29  ;;  %v4479_v63 = vadd.f32 %v5997_v59, %v1280_v7  ;;  %v4482_v32 = vadd.f32 %v5998_v22, %v1284_v40  ;;  %v4485_v4 = vadd.f32 %v5999_v36, %v1288_v38  ;;  %v6005_v54 = vld [vmem:[#allocation128_spill] sm:$0xff]  ;;  %v6006_v7 = vld [vmem:[#allocation129_spill] sm:$0xff]  ;;  %v6007_v40 = vld [vmem:[#allocation130_spill] sm:$0xff] }
 0x21e   :  { %v646_v24 = vmul.f32 %v2407_v45, %v645_v11  ;;  %v4488_v18 = vadd.f32 %v6000_v28, %v1292_v23  ;;  %v4491_v10 = vadd.f32 %v6001_v41, %v1296_v35  ;;  %v4494_v48 = vadd.f32 %v6002_v15, %v1300_v39  ;;  %v6008_v35 = vld [vmem:[#allocation131_spill] sm:$0xff]  ;;  %v6009_v2 = vld [vmem:[#allocation21_spill] sm:$0xff]  ;;  %v6012_v22 = vld [vmem:[#allocation186_spill] sm:$0xff] }
 0x21f   :  { %v1639_v29 = vadd.f32 %v6005_v54, %v4346_v1  ;;  %v1643_v44 = vadd.f32 %v6006_v7, %v4349_v13  ;;  %v1647_v9 = vadd.f32 %v6007_v40, %v4352_v21  ;;  %v1651_v38 = vadd.f32 %v6008_v35, %v4355_v53  ;;  %v6011_v20 = vld [vmem:[#allocation185_spill] sm:$0xff]  ;;  %v6013_v28 = vld [vmem:[#allocation187_spill] sm:$0xff]  ;;  %v6014_v41 = vld [vmem:[#allocation188_spill] sm:$0xff] }
 0x220   :  { %v647_v39 = vadd.f32 %v2407_v45, %v646_v24  ;;  %v1799_v23 = vadd.f32 %v6009_v2, %v1623_v52  ;;  %v1803_v11 = vadd.f32 %v6010_v0, %v1627_v27  ;;  %v1807_v59 = vadd.f32 %v6011_v20, %v1631_v51  ;;  %v6015_v13 = vld [vmem:[#allocation189_spill] sm:$0xff]  ;;  %v6016_v24 = vld [vmem:[#allocation190_spill] sm:$0xff] }
 0x221   :  { %v1811_v36 = vadd.f32 %v6012_v22, %v1635_v16  ;;  %v1815_v1 = vadd.f32 %v6013_v28, %v1639_v29  ;;  %v1819_v15 = vadd.f32 %v6014_v41, %v1643_v44  ;;  %v1823_v54 = vadd.f32 %v6015_v13, %v1647_v9 }
 0x222   :  { %v651_v21 = vsel %vm4498_vm4, %v2407_v45, %v647_v39  ;;  %v1998_v53 = vadd.f32 %v4426_v14, %v4379_v58  ;;  %v2002_v52 = vadd.f32 %v1970_v57, %v4382_v31  ;;  %v1827_v27 = vadd.f32 %v6016_v24, %v1651_v38 }
 0x223   :  { %v656_v51 = vsel %vm4452_vm2, %v655_v5, %v651_v21  ;;  %v1943_v16 = vmul.f32 %v4384_v6, %v4442_v17  ;;  %v1947_v29 = vmul.f32 %v4386_v49, %v4442_v17  ;;  %v1951_v30 = vmul.f32 %v4388_v46, %v4442_v17  ;;  %v307_v21 = vpop.f32.mrf.mxu0 }
 0x224   :  { %v2095_v45 = vrot.slane %v656_v51, 1  ;;  %v2096_v7 = vrot.slane %v656_v51, 2  ;;  %v2097_v44 = vrot.slane %v656_v51, 3  ;;  %v2098_v58 = vrot.slane %v656_v51, 4 }
 0x225   :  { %v2099_v14 = vrot.slane %v656_v51, 5  ;;  %v2100_v31 = vrot.slane %v656_v51, 6  ;;  %v2101_v57 = vrot.slane %v656_v51, 7  ;;  %v4531_v40 = vperm.slane %v656_v51, 0 }
 0x226   :  { %v4533_v34 = vperm.slane %v2095_v45, 0  ;;  %v4535_v5 = vperm.slane %v2096_v7, 0  ;;  %v4537_v9 = vperm.slane %v2097_v44, 0  ;;  %v4539_v35 = vperm.slane %v2098_v58, 0 }
 0x227   :  { %v4541_v38 = vperm.slane %v2099_v14, 0  ;;  %v4543_v39 = vperm.slane %v2100_v31, 0  ;;  %v4545_v2 = vperm.slane %v2101_v57, 0  ;;  %v4549_v0 = vmul.f32 %v4531_v40, %v4430_v56 }
 0x228   :  { %v4553_v20 = vmul.f32 %v4533_v34, %v4432_v12  ;;  %v4557_v22 = vmul.f32 %v4535_v5, %v4434_v37  ;;  %v4561_v28 = vmul.f32 %v4537_v9, %v4436_v33  ;;  %v4565_v41 = vmul.f32 %v4539_v35, %v4438_v50 }
 0x229   :  { %6017 = vst [vmem:[#allocation6_spill] sm:$0xff] %v4549_v0  ;;  %v4569_v56 = vmul.f32 %v4541_v38, %v4440_v8  ;;  %v4572_v13 = vmul.f32 %v4543_v39, %v1998_v53  ;;  %v1955_v12 = vmul.f32 %v4390_v19, %v4442_v17  ;;  %v1959_v37 = vmul.f32 %v4392_v62, %v4442_v17 }
 0x22a   :  { %6018 = vst [vmem:[#allocation7_spill] sm:$0xff] %v4553_v20  ;;  %v4579_v33 = vmul.f32 %v4545_v2, %v2002_v52  ;;  %v1963_v45 = vmul.f32 %v4394_v47, %v4442_v17  ;;  %v1967_v7 = vmul.f32 %v4396_v26, %v4442_v17  ;;  %v1971_v52 = vmul.f32 %v4398_v43, %v4442_v17  ;;  %v6085_v20 = vld [vmem:[#allocation71_spill] sm:$0xff] }
 0x22b   :  { %6019 = vst [vmem:[#allocation23_spill] sm:$0xff] %v4557_v22  ;;  %v1975_v44 = vadd.f32 %v1943_v16, %v1799_v23  ;;  %v1979_v58 = vadd.f32 %v1947_v29, %v1803_v11  ;;  %v1983_v14 = vadd.f32 %v1951_v30, %v1807_v59  ;;  %v1987_v31 = vadd.f32 %v1955_v12, %v1811_v36  ;;  %v516_v59 = vpop.f32.mrf.mxu1  ;;  %v609_v36 = vpop.f32.mrf.mxu3  ;;  %v6042_v29 = vld [vmem:[#allocation32_spill] sm:$0xff]  ;;  %v6044_v16 = vld [vmem:[#allocation34_spill] sm:$0xff] }
 0x22c   :  { %6020 = vst [vmem:[#allocation24_spill] sm:$0xff] %v4561_v28  ;;  %v1991_v57 = vadd.f32 %v1959_v37, %v1815_v1  ;;  %v1995_v24 = vadd.f32 %v1963_v45, %v1819_v15  ;;  %v1999_v8 = vadd.f32 %v1967_v7, %v1823_v54  ;;  %v2003_v50 = vadd.f32 %v1971_v52, %v1827_v27  ;;  %v6045_v15 = vld [vmem:[#allocation35_spill] sm:$0xff]  ;;  %v6046_v1 = vld [vmem:[#allocation36_spill] sm:$0xff] }
 0x22d   :  { %6021 = vst [vmem:[#allocation25_spill] sm:$0xff] %v4565_v41  ;;  %v4594_v53 = vmul.f32 %v4531_v40, %v1975_v44  ;;  %v4597_v51 = vmul.f32 %v4533_v34, %v1979_v58  ;;  %v4600_v41 = vmul.f32 %v4535_v5, %v1983_v14  ;;  %v4603_v17 = vmul.f32 %v4537_v9, %v1987_v31  ;;  %v6035_v58 = vld [vmem:[#allocation134_spill] sm:$0xff]  ;;  %v6036_v31 = vld [vmem:[#allocation135_spill] sm:$0xff] }
 0x22e   :  { %6022 = vst [vmem:[#allocation26_spill] sm:$0xff] %v4569_v56  ;;  %v400_v56 = vpop.f32.mrf.mxu2  ;;  %v4606_v23 = vmul.f32 %v4539_v35, %v1991_v57  ;;  %v4609_v11 = vmul.f32 %v4541_v38, %v1995_v24  ;;  %v4614_v54 = vmul.f32 %v4543_v39, %v1999_v8  ;;  %v4617_v27 = vmul.f32 %v4545_v2, %v2003_v50  ;;  %v6033_v8 = vld [vmem:[#allocation132_spill] sm:$0xff]  ;;  %v6034_v50 = vld [vmem:[#allocation133_spill] sm:$0xff] }
 0x22f   :  { %6023 = vst [vmem:[#allocation27_spill] sm:$0xff] %v4572_v13  ;;  %v517_v45 = vadd.f32 %v516_v59, %v307_v21  ;;  %v610_v7 = vadd.f32 %v609_v36, %v400_v56  ;;  %v1624_v52 = vadd.f32 %v6033_v8, %v4473_v42  ;;  %v1628_v44 = vadd.f32 %v6034_v50, %v4476_v55  ;;  %v6037_v21 = vld [vmem:[#allocation237_spill] sm:$0xff]  ;;  %v6038_v42 = vld [vmem:[#allocation238_spill] sm:$0xff]  ;;  %v6039_v8 = vld [vmem:[#allocation239_spill] sm:$0xff] }
 0x230   :  { %6024 = vst [vmem:[#allocation28_spill] sm:$0xff] %v4579_v33  ;;  %v1632_v14 = vadd.f32 %v6035_v58, %v4479_v63  ;;  %v1636_v57 = vadd.f32 %v6036_v31, %v4482_v32  ;;  %v6040_v50 = vld [vmem:[#allocation240_spill] sm:$0xff]  ;;  %v6041_v63 = vld [vmem:[#allocation31_spill] sm:$0xff]  ;;  %v6043_v31 = vld [vmem:[#allocation33_spill] sm:$0xff] }
 0x231   :  { %6025 = vst [vmem:[#allocation29_spill] sm:$0xff] %v4594_v53  ;;  %v1241_v12 = vmul.f32 %v4206_v3, %v517_v45  ;;  %v1245_v37 = vmul.f32 %v4208_v25, %v517_v45  ;;  %v1249_v24 = vmul.f32 %v4210_v60, %v517_v45  ;;  %v1253_v56 = vmul.f32 %v4228_v61, %v517_v45  ;;  %v6083_v53 = vld [vmem:[#allocation49_spill] sm:$0xff]  ;;  %v6084_v13 = vld [vmem:[#allocation50_spill] sm:$0xff] }
 0x232   :  { %6026 = vst [vmem:[#allocation30_spill] sm:$0xff] %v4597_v51  ;;  %v1257_v59 = vmul.f32 %v6037_v21, %v517_v45  ;;  %v1261_v36 = vmul.f32 %v6038_v42, %v517_v45  ;;  %v1265_v55 = vmul.f32 %v6039_v8, %v517_v45  ;;  %v1269_v30 = vmul.f32 %v6040_v50, %v517_v45  ;;  %v6050_v45 = vld [vmem:[#allocation56_spill] sm:$0xff] }
 0x233   :  { %6027 = vst [vmem:[#allocation160_spill] sm:$0xff] %v4600_v41  ;;  %v1273_v58 = vadd.f32 %v1241_v12, %v6041_v63  ;;  %v1277_v32 = vadd.f32 %v1245_v37, %v6042_v29  ;;  %v1281_v3 = vadd.f32 %v1249_v24, %v6043_v31  ;;  %v1285_v25 = vadd.f32 %v1253_v56, %v6044_v16  ;;  %v6051_v12 = vld [vmem:[#allocation57_spill] sm:$0xff]  ;;  %v6052_v37 = vld [vmem:[#allocation58_spill] sm:$0xff]  ;;  %v6053_v16 = vld [vmem:[#allocation59_spill] sm:$0xff]  ;;  %v612_v22 = vpop.f32.mrf.mxu3 }
 0x234   :  { %6028 = vst [vmem:[#allocation116_spill] sm:$0xff] %v4603_v17  ;;  %v1289_v60 = vadd.f32 %v1257_v59, %v6045_v15  ;;  %v1293_v61 = vadd.f32 %v1261_v36, %v6046_v1  ;;  %v6049_v17 = vld [vmem:[#allocation55_spill] sm:$0xff]  ;;  %v6054_v1 = vld [vmem:[#allocation60_spill] sm:$0xff] }
 0x235   :  { %6029 = vst [vmem:[#allocation117_spill] sm:$0xff] %v4606_v23  ;;  %v6048_v23 = vld [vmem:[#allocation38_spill] sm:$0xff]  ;;  %v4650_v8 = vadd.f32 %v6049_v17, %v1273_v58  ;;  %v4653_v50 = vadd.f32 %v6050_v45, %v1277_v32  ;;  %v4656_v29 = vadd.f32 %v6051_v12, %v1281_v3  ;;  %v4659_v24 = vadd.f32 %v6052_v37, %v1285_v25  ;;  %v6057_v59 = vld [vmem:[#allocation136_spill] sm:$0xff]  ;;  %v6060_v31 = vld [vmem:[#allocation139_spill] sm:$0xff] }
 0x236   :  { %6030 = vst [vmem:[#allocation118_spill] sm:$0xff] %v4609_v11  ;;  %v6047_v11 = vld [vmem:[#allocation37_spill] sm:$0xff]  ;;  %v1301_v42 = vadd.f32 %v1269_v30, %v6048_v23  ;;  %v4662_v15 = vadd.f32 %v6053_v16, %v1289_v60  ;;  %v4665_v56 = vadd.f32 %v6054_v1, %v1293_v61  ;;  %v6056_v17 = vld [vmem:[#allocation62_spill] sm:$0xff]  ;;  %v1640_v36 = vadd.f32 %v6057_v59, %v4485_v4  ;;  %v6061_v25 = vld [vmem:[#allocation191_spill] sm:$0xff] }
 0x237   :  { %6031 = vst [vmem:[#allocation119_spill] sm:$0xff] %v4614_v54  ;;  %v1297_v21 = vadd.f32 %v1265_v55, %v6047_v11  ;;  %v6055_v11 = vld [vmem:[#allocation61_spill] sm:$0xff]  ;;  %v6059_v58 = vld [vmem:[#allocation138_spill] sm:$0xff]  ;;  %v1652_v3 = vadd.f32 %v6060_v31, %v4494_v48  ;;  %v1800_v60 = vadd.f32 %v6061_v25, %v1624_v52  ;;  %v6062_v61 = vld [vmem:[#allocation192_spill] sm:$0xff]  ;;  %v1948_v48 = vmul.f32 %v4386_v49, %v610_v7 }
 0x238   :  { %6032 = vst [vmem:[#allocation120_spill] sm:$0xff] %v4617_v27  ;;  %v4671_v30 = vadd.f32 %v6056_v17, %v1301_v42  ;;  %v6058_v55 = vld [vmem:[#allocation137_spill] sm:$0xff]  ;;  %v1648_v32 = vadd.f32 %v6059_v58, %v4491_v10  ;;  %v6064_v42 = vld [vmem:[#allocation194_spill] sm:$0xff]  ;;  %v6065_v16 = vld [vmem:[#allocation195_spill] sm:$0xff]  ;;  %v1944_v10 = vmul.f32 %v4384_v6, %v610_v7  ;;  %v1952_v52 = vmul.f32 %v4388_v46, %v610_v7 }
 0x239   :  { %v4668_v23 = vadd.f32 %v6055_v11, %v1297_v21  ;;  %v1644_v63 = vadd.f32 %v6058_v55, %v4488_v18  ;;  %v1804_v21 = vadd.f32 %v6062_v61, %v1628_v44  ;;  %v6063_v45 = vld [vmem:[#allocation193_spill] sm:$0xff]  ;;  %v1812_v37 = vadd.f32 %v6064_v42, %v1636_v57  ;;  %v6066_v4 = vld [vmem:[#allocation196_spill] sm:$0xff]  ;;  %v6068_v59 = vld [vmem:[#allocation198_spill] sm:$0xff] }
 0x23a   :  { %v1808_v12 = vadd.f32 %v6063_v45, %v1632_v14  ;;  %v1816_v1 = vadd.f32 %v6065_v16, %v1640_v36  ;;  %v6067_v17 = vld [vmem:[#allocation197_spill] sm:$0xff]  ;;  %v1828_v55 = vadd.f32 %v6068_v59, %v1652_v3  ;;  %v1956_v44 = vmul.f32 %v4390_v19, %v610_v7  ;;  %v6081_v27 = vld [vmem:[#allocation47_spill] sm:$0xff]  ;;  %v6082_v41 = vld [vmem:[#allocation48_spill] sm:$0xff] }
 0x23b   :  { %v1820_v11 = vadd.f32 %v6066_v4, %v1644_v63  ;;  %v1824_v18 = vadd.f32 %v6067_v17, %v1648_v32  ;;  %v1960_v14 = vmul.f32 %v4392_v62, %v610_v7  ;;  %v1964_v57 = vmul.f32 %v4394_v47, %v610_v7 }
 0x23c   :  { %v1968_v36 = vmul.f32 %v4396_v26, %v610_v7  ;;  %v1972_v63 = vmul.f32 %v4398_v43, %v610_v7  ;;  %v1976_v58 = vadd.f32 %v1944_v10, %v1800_v60  ;;  %v1980_v32 = vadd.f32 %v1948_v48, %v1804_v21 }
 0x23d   :  { %v1984_v31 = vadd.f32 %v1952_v52, %v1808_v12  ;;  %v1988_v3 = vadd.f32 %v1956_v44, %v1812_v37  ;;  %v1992_v25 = vadd.f32 %v1960_v14, %v1816_v1  ;;  %v1996_v61 = vadd.f32 %v1964_v57, %v1820_v11  ;;  %v310_v37 = vpop.f32.mrf.mxu0  ;;  %v519_v1 = vpop.f32.mrf.mxu1  ;;  %v4732_v57 = vld [vmem:[%s5459_s1 + $0x18] sm:$0xff] }
 0x23e   :  { %v2000_v45 = vadd.f32 %v1968_v36, %v1824_v18  ;;  %v2004_v42 = vadd.f32 %v1972_v63, %v1828_v55  ;;  %v4698_v16 = vmul.f32 %v4531_v40, %v1976_v58  ;;  %v4701_v4 = vmul.f32 %v4533_v34, %v1980_v32 }
 0x23f   :  { %v4704_v17 = vmul.f32 %v4535_v5, %v1984_v31  ;;  %v4707_v59 = vmul.f32 %v4537_v9, %v1988_v3  ;;  %v4712_v21 = vmul.f32 %v4539_v35, %v1992_v25  ;;  %v4715_v12 = vmul.f32 %v4541_v38, %v1996_v61 }
 0x240   :  { %6069 = vst [vmem:[#allocation121_spill] sm:$0xff] %v4698_v16  ;;  %v4718_v11 = vmul.f32 %v4543_v39, %v2000_v45  ;;  %v4721_v18 = vmul.f32 %v4545_v2, %v2004_v42  ;;  %v520_v36 = vadd.f32 %v519_v1, %v310_v37  ;;  %v1303_v63 = vrot.slane %v4732_v57, 1  ;;  %v403_v16 = vpop.f32.mrf.mxu2 }
 0x241   :  { %6070 = vst [vmem:[#allocation122_spill] sm:$0xff] %v4701_v4  ;;  %v1304_v58 = vrot.slane %v4732_v57, 2  ;;  %v1305_v32 = vrot.slane %v4732_v57, 3  ;;  %v1306_v31 = vrot.slane %v4732_v57, 4  ;;  %v1307_v3 = vrot.slane %v4732_v57, 5 }
 0x242   :  { %6071 = vst [vmem:[#allocation123_spill] sm:$0xff] %v4704_v17  ;;  %v1308_v25 = vrot.slane %v4732_v57, 6  ;;  %v1309_v61 = vrot.slane %v4732_v57, 7  ;;  %v4742_v45 = vperm.slane %v4732_v57, 0  ;;  %v4744_v42 = vperm.slane %v1303_v63, 0  ;;  %v6080_v17 = vld [vmem:[#allocation202_spill] sm:$0xff] }
 0x243   :  { %6072 = vst [vmem:[#allocation177_spill] sm:$0xff] %v4707_v59  ;;  %v4746_v37 = vperm.slane %v1304_v58, 0  ;;  %v4748_v1 = vperm.slane %v1305_v32, 0  ;;  %v4750_v14 = vperm.slane %v1306_v31, 0  ;;  %v4752_v44 = vperm.slane %v1307_v3, 0 }
 0x244   :  { %6073 = vst [vmem:[#allocation178_spill] sm:$0xff] %v4712_v21  ;;  %v4754_v52 = vperm.slane %v1308_v25, 0  ;;  %v4756_v48 = vperm.slane %v1309_v61, 0  ;;  %v1326_v10 = vmul.f32 %v4742_v45, %v520_v36  ;;  %v1330_v55 = vmul.f32 %v4744_v42, %v520_v36  ;;  %v6077_v25 = vld [vmem:[#allocation199_spill] sm:$0xff]  ;;  %v6078_v61 = vld [vmem:[#allocation200_spill] sm:$0xff]  ;;  %v6079_v21 = vld [vmem:[#allocation201_spill] sm:$0xff] }
 0x245   :  { %6074 = vst [vmem:[#allocation179_spill] sm:$0xff] %v4715_v12  ;;  %v1334_v60 = vmul.f32 %v4746_v37, %v520_v36  ;;  %v1338_v63 = vmul.f32 %v4748_v1, %v520_v36  ;;  %v1342_v58 = vmul.f32 %v4750_v14, %v520_v36  ;;  %v1346_v32 = vmul.f32 %v4752_v44, %v520_v36 }
 0x246   :  { %6075 = vst [vmem:[#allocation180_spill] sm:$0xff] %v4718_v11  ;;  %v1350_v31 = vmul.f32 %v4754_v52, %v520_v36  ;;  %v1354_v3 = vmul.f32 %v4756_v48, %v520_v36  ;;  %v1358_v7 = vadd.f32 %v1326_v10, %v6077_v25  ;;  %v1362_v12 = vadd.f32 %v1330_v55, %v6078_v61  ;;  %v6086_v10 = vld [vmem:[#allocation72_spill] sm:$0xff]  ;;  %v6087_v55 = vld [vmem:[#allocation73_spill] sm:$0xff] }
 0x247   :  { %6076 = vst [vmem:[#allocation181_spill] sm:$0xff] %v4721_v18  ;;  %v1366_v59 = vadd.f32 %v1334_v60, %v6079_v21  ;;  %v1370_v4 = vadd.f32 %v1338_v63, %v6080_v17  ;;  %v1374_v54 = vadd.f32 %v1342_v58, %v6081_v27  ;;  %v1378_v51 = vadd.f32 %v1346_v32, %v6082_v41  ;;  %v6088_v17 = vld [vmem:[#allocation74_spill] sm:$0xff]  ;;  %v6089_v27 = vld [vmem:[#allocation75_spill] sm:$0xff]  ;;  %v6090_v41 = vld [vmem:[#allocation76_spill] sm:$0xff] }
 0x248   :  { %v1382_v33 = vadd.f32 %v1350_v31, %v6083_v53  ;;  %v1386_v28 = vadd.f32 %v1354_v3, %v6084_v13  ;;  %v4775_v36 = vadd.f32 %v6085_v20, %v1358_v7  ;;  %v4778_v25 = vadd.f32 %v6086_v10, %v1362_v12  ;;  %v6091_v13 = vld [vmem:[#allocation77_spill] sm:$0xff]  ;;  %v6092_v20 = vld [vmem:[#allocation78_spill] sm:$0xff]  ;;  %v6093_v32 = vld [vmem:[#allocation51_spill] sm:$0xff] }
 0x249   :  { %v4781_v60 = vadd.f32 %v6087_v55, %v1366_v59  ;;  %v4784_v21 = vadd.f32 %v6088_v17, %v1370_v4  ;;  %v4787_v63 = vadd.f32 %v6089_v27, %v1374_v54  ;;  %v4790_v53 = vadd.f32 %v6090_v41, %v1378_v51  ;;  %v6094_v31 = vld [vmem:[#allocation53_spill] sm:$0xff]  ;;  %v6095_v3 = vld [vmem:[#allocation54_spill] sm:$0xff]  ;;  %v6096_v61 = vld [vmem:[#allocation140_spill] sm:$0xff] }
 0x24a   :  { %v4793_v58 = vadd.f32 %v6091_v13, %v1382_v33  ;;  %v4796_v7 = vadd.f32 %v6092_v20, %v1386_v28  ;;  %v613_v12 = vadd.f32 %v612_v22, %v403_v16  ;;  %v1625_v59 = vadd.f32 %v6093_v32, %v4650_v8  ;;  %v6097_v10 = vld [vmem:[#allocation141_spill] sm:$0xff]  ;;  %v6098_v55 = vld [vmem:[#allocation142_spill] sm:$0xff]  ;;  %v6099_v22 = vld [vmem:[#allocation143_spill] sm:$0xff] }
 0x24b   :  { %v1629_v4 = vadd.f32 %v6094_v31, %v4653_v50  ;;  %v1633_v54 = vadd.f32 %v6095_v3, %v4656_v29  ;;  %v1637_v51 = vadd.f32 %v6096_v61, %v4659_v24  ;;  %v1641_v33 = vadd.f32 %v6097_v10, %v4662_v15  ;;  %v6100_v8 = vld [vmem:[#allocation144_spill] sm:$0xff]  ;;  %v6101_v27 = vld [vmem:[#allocation203_spill] sm:$0xff]  ;;  %v6103_v29 = vld [vmem:[#allocation205_spill] sm:$0xff] }
 0x24c   :  { %v1645_v28 = vadd.f32 %v6098_v55, %v4665_v56  ;;  %v1649_v16 = vadd.f32 %v6099_v22, %v4668_v23  ;;  %v1653_v17 = vadd.f32 %v6100_v8, %v4671_v30  ;;  %v1801_v50 = vadd.f32 %v6101_v27, %v1625_v59  ;;  %v6102_v41 = vld [vmem:[#allocation204_spill] sm:$0xff]  ;;  %v6104_v32 = vld [vmem:[#allocation206_spill] sm:$0xff]  ;;  %v6105_v31 = vld [vmem:[#allocation207_spill] sm:$0xff] }
 0x24d   :  { %v1805_v13 = vadd.f32 %v6102_v41, %v1629_v4  ;;  %v1809_v20 = vadd.f32 %v6103_v29, %v1633_v54  ;;  %v1813_v24 = vadd.f32 %v6104_v32, %v1637_v51  ;;  %v1817_v3 = vadd.f32 %v6105_v31, %v1641_v33  ;;  %v6106_v15 = vld [vmem:[#allocation208_spill] sm:$0xff]  ;;  %v6107_v10 = vld [vmem:[#allocation209_spill] sm:$0xff]  ;;  %v6108_v55 = vld [vmem:[#allocation210_spill] sm:$0xff] }
 0x24e   :  { %v1821_v61 = vadd.f32 %v6106_v15, %v1645_v28  ;;  %v1825_v56 = vadd.f32 %v6107_v10, %v1649_v16  ;;  %v1829_v0 = vadd.f32 %v6108_v55, %v1653_v17  ;;  %v1945_v23 = vmul.f32 %v4384_v6, %v613_v12  ;;  %v2415_v15 = vld [vmem:[%s5459_s1 + $0x8] sm:$0xff]  ;;  %v2416_v10 = vld [vmem:[%s5459_s1 + $0x10] sm:$0xff]  ;;  %v6142_v32 = vld [vmem:[#allocation212_spill] sm:$0xff] }
 0x24f   :  { %v1949_v30 = vmul.f32 %v4386_v49, %v613_v12  ;;  %v1953_v59 = vmul.f32 %v4388_v46, %v613_v12  ;;  %v1957_v4 = vmul.f32 %v4390_v19, %v613_v12  ;;  %v1961_v54 = vmul.f32 %v4392_v62, %v613_v12  ;;  %v6170_v18 = vld [vmem:[#allocation100_spill] sm:$0xff] }
 0x250   :  { %v1965_v51 = vmul.f32 %v4394_v47, %v613_v12  ;;  %v1969_v33 = vmul.f32 %v4396_v26, %v613_v12  ;;  %v1973_v28 = vmul.f32 %v4398_v43, %v613_v12  ;;  %v1977_v22 = vadd.f32 %v1945_v23, %v1801_v50  ;;  %v313_v47 = vpop.f32.mrf.mxu0  ;;  %v406_v26 = vpop.f32.mrf.mxu2  ;;  %v2417_v23 = vld [vmem:[%s5459_s1 + $0x20] sm:$0xff] }
 0x251   :  { %v1981_v16 = vadd.f32 %v1949_v30, %v1805_v13  ;;  %v1985_v8 = vadd.f32 %v1953_v59, %v1809_v20  ;;  %v1989_v17 = vadd.f32 %v1957_v4, %v1813_v24  ;;  %v1993_v27 = vadd.f32 %v1961_v54, %v1817_v3  ;;  %v615_v13 = vpop.f32.mrf.mxu3  ;;  %v6148_v20 = vld [vmem:[#allocation218_spill] sm:$0xff] }
 0x252   :  { %v1997_v6 = vadd.f32 %v1965_v51, %v1821_v61  ;;  %v2001_v41 = vadd.f32 %v1969_v33, %v1825_v56  ;;  %v2005_v49 = vadd.f32 %v1973_v28, %v1829_v0  ;;  %v4831_v46 = vmul.f32 %v4531_v40, %v1977_v22  ;;  %v522_v40 = vpop.f32.mrf.mxu1 }
 0x253   :  { %v4834_v19 = vmul.f32 %v4533_v34, %v1981_v16  ;;  %v4837_v62 = vmul.f32 %v4535_v5, %v1985_v8  ;;  %v4841_v12 = vmul.f32 %v4537_v9, %v1989_v17  ;;  %v4844_v50 = vmul.f32 %v4539_v35, %v1993_v27  ;;  %v6117_v16 = vld [vmem:[#allocation63_spill] sm:$0xff]  ;;  %v6118_v17 = vld [vmem:[#allocation64_spill] sm:$0xff] }
 0x254   :  { %6109 = vst [vmem:[#allocation182_spill] sm:$0xff] %v4831_v46  ;;  %v4847_v0 = vmul.f32 %v4541_v38, %v1997_v6  ;;  %v4851_v5 = vmul.f32 %v4543_v39, %v2001_v41  ;;  %v4854_v29 = vmul.f32 %v4545_v2, %v2005_v49  ;;  %v523_v31 = vadd.f32 %v522_v40, %v313_v47  ;;  %v2414_v39 = vld [vmem:[%s5459_s1] sm:$0xff]  ;;  %v6120_v49 = vld [vmem:[#allocation66_spill] sm:$0xff]  ;;  %v6125_v38 = vld [vmem:[#allocation84_spill] sm:$0xff] }
 0x255   :  { %6110 = vst [vmem:[#allocation183_spill] sm:$0xff] %v4834_v19  ;;  %v4862_v3 = vadd.f32 %v615_v13, %v406_v26  ;;  %v657_v2 = vsel %vm627_vm0, %v2414_v39, 0.0  ;;  %v658_v61 = vsel %vm627_vm0, %v2415_v15, 0.0  ;;  %v660_v56 = vsel %vm627_vm0, %v2416_v10, 0.0  ;;  %v6119_v6 = vld [vmem:[#allocation65_spill] sm:$0xff]  ;;  %v6121_v26 = vld [vmem:[#allocation67_spill] sm:$0xff] }
 0x256   :  { %6111 = vst [vmem:[#allocation184_spill] sm:$0xff] %v4837_v62  ;;  %v662_v55 = vsel %vm627_vm0, %v4732_v57, 0.0  ;;  %v664_v30 = vsel %vm627_vm0, %v2417_v23, 0.0  ;;  %v1327_v59 = vmul.f32 %v4742_v45, %v523_v31  ;;  %v1331_v4 = vmul.f32 %v4744_v42, %v523_v31  ;;  %v6122_v13 = vld [vmem:[#allocation68_spill] sm:$0xff]  ;;  %v6123_v15 = vld [vmem:[#allocation69_spill] sm:$0xff]  ;;  %v6124_v23 = vld [vmem:[#allocation70_spill] sm:$0xff] }
 0x257   :  { %6112 = vst [vmem:[#allocation124_spill] sm:$0xff] %v4841_v12  ;;  %v1335_v54 = vmul.f32 %v4746_v37, %v523_v31  ;;  %v1339_v51 = vmul.f32 %v4748_v1, %v523_v31  ;;  %v1343_v33 = vmul.f32 %v4750_v14, %v523_v31  ;;  %v1347_v28 = vmul.f32 %v4752_v44, %v523_v31  ;;  %v6168_v62 = vld [vmem:[#allocation81_spill] sm:$0xff] }
 0x258   :  { %6113 = vst [vmem:[#allocation125_spill] sm:$0xff] %v4844_v50  ;;  %v1351_v57 = vmul.f32 %v4754_v52, %v523_v31  ;;  %v1355_v22 = vmul.f32 %v4756_v48, %v523_v31  ;;  %v1359_v8 = vadd.f32 %v1327_v59, %v6117_v16  ;;  %v1363_v27 = vadd.f32 %v1331_v4, %v6118_v17  ;;  %v40_v31 = vld [vmem:[%s5459_s1 + $0x38] sm:$0xff]  ;;  %v6126_v4 = vld [vmem:[#allocation85_spill] sm:$0xff]  ;;  %v409_v43 = vpop.f32.mrf.mxu2 }
 0x259   :  { %6114 = vst [vmem:[#allocation126_spill] sm:$0xff] %v4847_v0  ;;  %v1367_v41 = vadd.f32 %v1335_v54, %v6119_v6  ;;  %v1371_v47 = vadd.f32 %v1339_v51, %v6120_v49  ;;  %v1375_v40 = vadd.f32 %v1343_v33, %v6121_v26  ;;  %v1379_v39 = vadd.f32 %v1347_v28, %v6122_v13  ;;  %v6127_v54 = vld [vmem:[#allocation86_spill] sm:$0xff]  ;;  %v6128_v33 = vld [vmem:[#allocation87_spill] sm:$0xff]  ;;  %v6129_v28 = vld [vmem:[#allocation88_spill] sm:$0xff]  ;;  %v618_v0 = vpop.f32.mrf.mxu3 }
 0x25a   :  { %6115 = vst [vmem:[#allocation127_spill] sm:$0xff] %v4851_v5  ;;  %v1383_v10 = vadd.f32 %v1351_v57, %v6123_v15  ;;  %v1387_v24 = vadd.f32 %v1355_v22, %v6124_v23  ;;  %v4902_v59 = vadd.f32 %v6125_v38, %v1359_v8  ;;  %v4905_v16 = vadd.f32 %v6126_v4, %v1363_v27  ;;  %v6130_v22 = vld [vmem:[#allocation89_spill] sm:$0xff]  ;;  %v6131_v49 = vld [vmem:[#allocation90_spill] sm:$0xff]  ;;  %v6132_v38 = vld [vmem:[#allocation91_spill] sm:$0xff] }
 0x25b   :  { %6116 = vst [vmem:[#allocation16_spill] sm:$0xff] %v4854_v29  ;;  %v4908_v51 = vadd.f32 %v6127_v54, %v1367_v41  ;;  %v4911_v17 = vadd.f32 %v6128_v33, %v1371_v47  ;;  %v4914_v57 = vadd.f32 %v6129_v28, %v1375_v40  ;;  %v4917_v6 = vadd.f32 %v6130_v22, %v1379_v39  ;;  %v2418_v41 = vld [vmem:[%s5459_s1 + $0x28] sm:$0xff]  ;;  %v2419_v40 = vld [vmem:[%s5459_s1 + $0x30] sm:$0xff]  ;;  %v6133_v15 = vld [vmem:[#allocation145_spill] sm:$0xff] }
 0x25c   :  { %v4920_v26 = vadd.f32 %v6131_v49, %v1383_v10  ;;  %v4923_v8 = vadd.f32 %v6132_v38, %v1387_v24  ;;  %v659_v27 = vadd.f32 %v658_v61, %v657_v2  ;;  %v666_v47 = vsel %vm627_vm0, %v2418_v41, 0.0  ;;  %v6134_v24 = vld [vmem:[#allocation146_spill] sm:$0xff]  ;;  %v6135_v61 = vld [vmem:[#allocation147_spill] sm:$0xff]  ;;  %v6136_v4 = vld [vmem:[#allocation148_spill] sm:$0xff] }
 0x25d   :  { %v668_v13 = vsel %vm627_vm0, %v2419_v40, 0.0  ;;  %v670_v39 = vsel %vm627_vm0, %v40_v31, 0.0  ;;  %v1710_v10 = vadd.f32 %v6133_v15, %v4775_v36  ;;  %v1714_v2 = vadd.f32 %v6134_v24, %v4778_v25  ;;  %v6137_v28 = vld [vmem:[#allocation149_spill] sm:$0xff]  ;;  %v6138_v49 = vld [vmem:[#allocation150_spill] sm:$0xff]  ;;  %v6139_v41 = vld [vmem:[#allocation151_spill] sm:$0xff] }
 0x25e   :  { %v1718_v23 = vadd.f32 %v6135_v61, %v4781_v60  ;;  %v1722_v54 = vadd.f32 %v6136_v4, %v4784_v21  ;;  %v661_v33 = vadd.f32 %v660_v56, %v659_v27  ;;  %v1726_v22 = vadd.f32 %v6137_v28, %v4787_v63  ;;  %v6140_v36 = vld [vmem:[#allocation152_spill] sm:$0xff]  ;;  %v6141_v25 = vld [vmem:[#allocation211_spill] sm:$0xff]  ;;  %v6143_v61 = vld [vmem:[#allocation213_spill] sm:$0xff] }
 0x25f   :  { %v1730_v38 = vadd.f32 %v6138_v49, %v4790_v53  ;;  %v1734_v40 = vadd.f32 %v6139_v41, %v4793_v58  ;;  %v1738_v15 = vadd.f32 %v6140_v36, %v4796_v7  ;;  %v1886_v24 = vadd.f32 %v6141_v25, %v1710_v10  ;;  %v6144_v56 = vld [vmem:[#allocation214_spill] sm:$0xff]  ;;  %v6145_v4 = vld [vmem:[#allocation215_spill] sm:$0xff]  ;;  %v6146_v28 = vld [vmem:[#allocation216_spill] sm:$0xff] }
 0x260   :  { %v1890_v60 = vadd.f32 %v6142_v32, %v1714_v2  ;;  %v1894_v35 = vadd.f32 %v6143_v61, %v1718_v23  ;;  %v663_v21 = vadd.f32 %v662_v55, %v661_v33  ;;  %v1898_v27 = vadd.f32 %v6144_v56, %v1722_v54  ;;  %v6147_v53 = vld [vmem:[#allocation217_spill] sm:$0xff]  ;;  %v6166_v29 = vld [vmem:[#allocation79_spill] sm:$0xff]  ;;  %v6167_v50 = vld [vmem:[#allocation80_spill] sm:$0xff] }
 0x261   :  { %v1902_v63 = vadd.f32 %v6145_v4, %v1726_v22  ;;  %v1906_v9 = vadd.f32 %v6146_v28, %v1730_v38  ;;  %v1910_v49 = vadd.f32 %v6147_v53, %v1734_v40  ;;  %v1914_v58 = vadd.f32 %v6148_v20, %v1738_v15 }
 0x262   :  { %v2007_v41 = vrot.slane %v40_v31, 1  ;;  %v2008_v34 = vrot.slane %v40_v31, 2  ;;  %v665_v7 = vadd.f32 %v664_v30, %v663_v21  ;;  %v2009_v36 = vrot.slane %v40_v31, 3 }
 0x263   :  { %v2010_v10 = vrot.slane %v40_v31, 4  ;;  %v2011_v25 = vrot.slane %v40_v31, 5  ;;  %v2012_v32 = vrot.slane %v40_v31, 6  ;;  %v2013_v2 = vrot.slane %v40_v31, 7 }
 0x264   :  { %v4958_v23 = vperm.slane %v40_v31, 0  ;;  %v4960_v55 = vperm.slane %v2007_v41, 0  ;;  %v667_v54 = vadd.f32 %v666_v47, %v665_v7  ;;  %v4962_v33 = vperm.slane %v2008_v34, 0 }
 0x265   :  { %v4964_v22 = vperm.slane %v2009_v36, 0  ;;  %v4966_v38 = vperm.slane %v2010_v10, 0  ;;  %v4968_v20 = vperm.slane %v2011_v25, 0  ;;  %v4970_v40 = vperm.slane %v2012_v32, 0  ;;  %v316_v36 = vpop.f32.mrf.mxu0  ;;  %v525_v10 = vpop.f32.mrf.mxu1 }
 0x266   :  { %6149 = vst [vmem:[#allocation17_spill] sm:$0xff] %v4958_v23  ;;  %v4972_v30 = vperm.slane %v2013_v2, 0  ;;  %v2030_v15 = vmul.f32 %v4958_v23, %v4862_v3  ;;  %v669_v31 = vadd.f32 %v668_v13, %v667_v54  ;;  %v2034_v61 = vmul.f32 %v4960_v55, %v4862_v3 }
 0x267   :  { %6150 = vst [vmem:[#allocation18_spill] sm:$0xff] %v4960_v55  ;;  %v2038_v34 = vmul.f32 %v4962_v33, %v4862_v3  ;;  %v2042_v47 = vmul.f32 %v4964_v22, %v4862_v3  ;;  %v2046_v21 = vmul.f32 %v4966_v38, %v4862_v3  ;;  %v2050_v56 = vmul.f32 %v4968_v20, %v4862_v3 }
 0x268   :  { %6151 = vst [vmem:[#allocation19_spill] sm:$0xff] %v4962_v33  ;;  %v2054_v4 = vmul.f32 %v4970_v40, %v4862_v3  ;;  %v2058_v13 = vmul.f32 %v4972_v30, %v4862_v3  ;;  %v671_v41 = vadd.f32 %v670_v39, %v669_v31  ;;  %v4992_v7 = vadd.f32 %v2030_v15, %v1886_v24 }
 0x269   :  { %6152 = vst [vmem:[#allocation20_spill] sm:$0xff] %v4964_v22  ;;  %v4994_v25 = vadd.f32 %v2034_v61, %v1890_v60  ;;  %v4996_v32 = vadd.f32 %v2038_v34, %v1894_v35  ;;  %v4998_v2 = vadd.f32 %v2042_v47, %v1898_v27  ;;  %v5000_v54 = vadd.f32 %v2046_v21, %v1902_v63  ;;  %v6157_v35 = vld [vmem:[#allocation83_spill] sm:$0xff]  ;;  %v6158_v63 = vld [vmem:[#allocation153_spill] sm:$0xff]  ;;  %v6159_v34 = vld [vmem:[#allocation154_spill] sm:$0xff] }
 0x26a   :  { %6153 = vst [vmem:[#allocation39_spill] sm:$0xff] %v4966_v38  ;;  %2408 = vrcp.f32 %v671_v41  ;;  %v683_v3 = vand.u32 2147483648, %v671_v41  ;;  %v5002_v28 = vadd.f32 %v2050_v56, %v1906_v9  ;;  %v5004_v53 = vadd.f32 %v2054_v4, %v1910_v49 }
 0x26b   :  { %6154 = vst [vmem:[#allocation40_spill] sm:$0xff] %v4968_v20  ;;  %vm677_vm5 = vweird.f32 %v671_v41  ;;  %v681_v39 = vand.u32 2147483647, %v671_v41  ;;  %v5006_v24 = vadd.f32 %v2058_v13, %v1914_v58  ;;  %v526_v60 = vadd.f32 %v525_v10, %v316_v36  ;;  %v6163_v13 = vld [vmem:[#allocation220_spill] sm:$0xff]  ;;  %v6164_v10 = vld [vmem:[#allocation221_spill] sm:$0xff] }
 0x26c   :  { %6155 = vst [vmem:[#allocation41_spill] sm:$0xff] %v4970_v40  ;;  %v1711_v15 = vadd.f32 %v6157_v35, %v4902_v59  ;;  %v684_v27 = vor.u32 1.1754944e-38, %v683_v3  ;;  %v619_v31 = vadd.f32 %v618_v0, %v409_v43  ;;  %v1715_v61 = vadd.f32 %v6158_v63, %v4905_v16  ;;  %v6165_v35 = vld [vmem:[#allocation222_spill] sm:$0xff] }
 0x26d   :  { %6156 = vst [vmem:[#allocation42_spill] sm:$0xff] %v4972_v30  ;;  %v1719_v47 = vadd.f32 %v6159_v34, %v4908_v51  ;;  %v1328_v9 = vmul.f32 %v4742_v45, %v526_v60  ;;  %v1332_v49 = vmul.f32 %v4744_v42, %v526_v60  ;;  %v1336_v21 = vmul.f32 %v4746_v37, %v526_v60  ;;  %v6162_v51 = vld [vmem:[#allocation219_spill] sm:$0xff] }
 0x26e   :  { %v1340_v58 = vmul.f32 %v4748_v1, %v526_v60  ;;  %v1344_v56 = vmul.f32 %v4750_v14, %v526_v60  ;;  %v1348_v59 = vmul.f32 %v4752_v44, %v526_v60  ;;  %v1352_v43 = vmul.f32 %v4754_v52, %v526_v60 }
 0x26f   :  { %v1356_v0 = vmul.f32 %v4756_v48, %v526_v60  ;;  %vm5022_vm6 = vcmp.eq.f32.partialorder %v681_v39, 8.507059e+37  ;;  %v1360_v4 = vadd.f32 %v1328_v9, %v6162_v51  ;;  %v1364_v36 = vadd.f32 %v1332_v49, %v6163_v13  ;;  %v6169_v60 = vld [vmem:[#allocation82_spill] sm:$0xff]  ;;  %v6171_v9 = vld [vmem:[#allocation101_spill] sm:$0xff] }
 0x270   :  { %v1368_v3 = vadd.f32 %v1336_v21, %v6164_v10  ;;  %v1372_v63 = vadd.f32 %v1340_v58, %v6165_v35  ;;  %v2409_v34 = vpop.eup %2408  ;;  %v1376_v5 = vadd.f32 %v1344_v56, %v6166_v29  ;;  %v1380_v12 = vadd.f32 %v1348_v59, %v6167_v50  ;;  %v6172_v21 = vld [vmem:[#allocation102_spill] sm:$0xff]  ;;  %v6173_v58 = vld [vmem:[#allocation103_spill] sm:$0xff]  ;;  %v6174_v29 = vld [vmem:[#allocation104_spill] sm:$0xff] }
 0x271   :  { %v1384_v19 = vadd.f32 %v1352_v43, %v6168_v62  ;;  %v1388_v39 = vadd.f32 %v1356_v0, %v6169_v60  ;;  %v673_v46 = vmul.f32 %v2409_v34, %v671_v41  ;;  %vm678_vm7 = vweird.f32 %v2409_v34  ;;  %v6175_v62 = vld [vmem:[#allocation105_spill] sm:$0xff]  ;;  %v6176_v43 = vld [vmem:[#allocation106_spill] sm:$0xff] }
 0x272   :  { %v5035_v11 = vadd.f32 %v6170_v18, %v1360_v4  ;;  %v5038_v49 = vadd.f32 %v6171_v9, %v1364_v36  ;;  %v5041_v51 = vadd.f32 %v6172_v21, %v1368_v3  ;;  %v5044_v13 = vadd.f32 %v6173_v58, %v1372_v63  ;;  %v6177_v18 = vld [vmem:[#allocation107_spill] sm:$0xff]  ;;  %v6180_v3 = vld [vmem:[#allocation156_spill] sm:$0xff]  ;;  %v6181_v63 = vld [vmem:[#allocation157_spill] sm:$0xff] }
 0x273   :  { %v5047_v50 = vadd.f32 %v6174_v29, %v1376_v5  ;;  %v5050_v56 = vadd.f32 %v6175_v62, %v1380_v12  ;;  %v674_v59 = vsub.f32 1.0, %v673_v46  ;;  %v5053_v0 = vadd.f32 %v6176_v43, %v1384_v19  ;;  %v6179_v36 = vld [vmem:[#allocation155_spill] sm:$0xff]  ;;  %v6182_v60 = vld [vmem:[#allocation158_spill] sm:$0xff]  ;;  %v6186_v62 = vld [vmem:[#allocation225_spill] sm:$0xff] }
 0x274   :  { %v5056_v4 = vadd.f32 %v6177_v18, %v1388_v39  ;;  %v1723_v10 = vadd.f32 %v6179_v36, %v4911_v17  ;;  %v1727_v35 = vadd.f32 %v6180_v3, %v4914_v57  ;;  %v1731_v5 = vadd.f32 %v6181_v63, %v4917_v6  ;;  %v6183_v46 = vld [vmem:[#allocation159_spill] sm:$0xff]  ;;  %v6185_v39 = vld [vmem:[#allocation224_spill] sm:$0xff]  ;;  %vm5073_vm8 = vmor %vm677_vm5, %vm678_vm7 }
 0x275   :  { %v1735_v12 = vadd.f32 %v6182_v60, %v4920_v26  ;;  %v1739_v9 = vadd.f32 %v6183_v46, %v4923_v8  ;;  %v675_v19 = vmul.f32 %v2409_v34, %v674_v59  ;;  %v6184_v21 = vld [vmem:[#allocation223_spill] sm:$0xff]  ;;  %v1891_v29 = vadd.f32 %v6185_v39, %v1715_v61  ;;  %v6189_v57 = vld [vmem:[#allocation226_spill] sm:$0xff]  ;;  %v6191_v36 = vld [vmem:[#allocation228_spill] sm:$0xff] }
 0x276   :  { %6178 = vst [vmem:[#allocation43_spill] sm:$0xff] %v5056_v4  ;;  %v1887_v58 = vadd.f32 %v6184_v21, %v1711_v15  ;;  %v1895_v43 = vadd.f32 %v6186_v62, %v1719_v47  ;;  %v1899_v6 = vadd.f32 %v6189_v57, %v1723_v10  ;;  %v6190_v18 = vld [vmem:[#allocation227_spill] sm:$0xff]  ;;  %v5082_v8 = vadd.f32 %v6191_v36, %v1731_v5  ;;  %v6192_v59 = vld [vmem:[#allocation229_spill] sm:$0xff]  ;;  %v6193_v3 = vld [vmem:[#allocation230_spill] sm:$0xff] }
 0x277   :  { %v5079_v26 = vadd.f32 %v6190_v18, %v1727_v35  ;;  %v5085_v15 = vadd.f32 %v6192_v59, %v1735_v12  ;;  %v676_v61 = vadd.f32 %v2409_v34, %v675_v19  ;;  %v5088_v47 = vadd.f32 %v6193_v3, %v1739_v9 }
 0x278   :  { %v2031_v41 = vmul.f32 %v4958_v23, %v619_v31  ;;  %v2035_v63 = vmul.f32 %v4960_v55, %v619_v31  ;;  %v2039_v60 = vmul.f32 %v4962_v33, %v619_v31  ;;  %v2043_v10 = vmul.f32 %v4964_v22, %v619_v31  ;;  %v6200_v55 = vld [vmem:[#allocation24_spill] sm:$0xff] }
 0x279   :  { %v2047_v35 = vmul.f32 %v4966_v38, %v619_v31  ;;  %v2051_v5 = vmul.f32 %v4968_v20, %v619_v31  ;;  %v680_v12 = vsel %vm5073_vm8, %v2409_v34, %v676_v61  ;;  %v2055_v46 = vmul.f32 %v4970_v40, %v619_v31  ;;  %v6198_v40 = vld [vmem:[#allocation23_spill] sm:$0xff] }
 0x27a   :  { %v2059_v9 = vmul.f32 %v4972_v30, %v619_v31  ;;  %v2063_v19 = vadd.f32 %v2031_v41, %v1887_v58  ;;  %v685_v21 = vsel %vm5022_vm6, %v684_v27, %v680_v12  ;;  %v2067_v39 = vadd.f32 %v2035_v63, %v1891_v29 }
 0x27b   :  { %v2071_v62 = vadd.f32 %v2039_v60, %v1895_v43  ;;  %v2075_v57 = vadd.f32 %v2043_v10, %v1899_v6  ;;  %v2183_v18 = vrot.slane %v685_v21, 1  ;;  %v2184_v36 = vrot.slane %v685_v21, 2 }
 0x27c   :  { %v2185_v59 = vrot.slane %v685_v21, 3  ;;  %v2186_v3 = vrot.slane %v685_v21, 4  ;;  %v2187_v38 = vrot.slane %v685_v21, 5  ;;  %v2188_v20 = vrot.slane %v685_v21, 6 }
 0x27d   :  { %v2189_v22 = vrot.slane %v685_v21, 7  ;;  %v5102_v17 = vperm.slane %v685_v21, 0  ;;  %v5104_v34 = vperm.slane %v2183_v18, 0  ;;  %v5106_v61 = vperm.slane %v2184_v36, 0  ;;  %v6194_v36 = vld [vmem:[#allocation6_spill] sm:$0xff] }
 0x27e   :  { %v5108_v31 = vperm.slane %v2185_v59, 0  ;;  %v5110_v16 = vperm.slane %v2186_v3, 0  ;;  %v5112_v27 = vperm.slane %v2187_v38, 0  ;;  %v5114_v58 = vperm.slane %v2188_v20, 0  ;;  %v6196_v3 = vld [vmem:[#allocation7_spill] sm:$0xff] }
 0x27f   :  { %v5116_v29 = vperm.slane %v2189_v22, 0  ;;  %v2206_v43 = vmul.f32 %v5102_v17, %v4992_v7  ;;  %v2210_v6 = vmul.f32 %v5104_v34, %v4994_v25  ;;  %v2214_v41 = vmul.f32 %v5106_v61, %v4996_v32 }
 0x280   :  { %v2218_v63 = vmul.f32 %v5108_v31, %v4998_v2  ;;  %v2222_v38 = vmul.f32 %v5110_v16, %v5000_v54  ;;  %v2226_v20 = vmul.f32 %v5112_v27, %v5002_v28  ;;  %v2230_v22 = vmul.f32 %v5114_v58, %v5004_v53 }
 0x281   :  { %v2234_v7 = vmul.f32 %v5116_v29, %v5006_v24  ;;  %v2238_v60 = vmax.f32 %v2206_v43, 0.0  ;;  %v2242_v25 = vmax.f32 %v2210_v6, 0.0  ;;  %v2246_v10 = vmax.f32 %v2214_v41, 0.0  ;;  %v6202_v43 = vld [vmem:[#allocation25_spill] sm:$0xff] }
 0x282   :  { %v2250_v12 = vmax.f32 %v2218_v63, 0.0  ;;  %v2254_v32 = vmax.f32 %v2222_v38, 0.0  ;;  %v2258_v21 = vmax.f32 %v2226_v20, 0.0  ;;  %v2262_v18 = vmax.f32 %v2230_v22, 0.0  ;;  %v6204_v63 = vld [vmem:[#allocation26_spill] sm:$0xff]  ;;  %v6206_v22 = vld [vmem:[#allocation27_spill] sm:$0xff] }
 0x283   :  { %v2266_v2 = vmax.f32 %v2234_v7, 0.0  ;;  %v6195_v59 = vmax.f32 %v6194_v36, 0.0  ;;  %v6197_v30 = vmax.f32 %v6196_v3, 0.0  ;;  %v6199_v33 = vmax.f32 %v6198_v40, 0.0  ;;  %v6208_v36 = vld [vmem:[#allocation28_spill] sm:$0xff] }
 0x284   :  { %v6201_v23 = vmax.f32 %v6200_v55, 0.0  ;;  %v6203_v6 = vmax.f32 %v6202_v43, 0.0  ;;  %v6205_v38 = vmax.f32 %v6204_v63, 0.0  ;;  %v6207_v7 = vmax.f32 %v6206_v22, 0.0 }
 0x285   :  { %v2270_v54 = vadd.f32 %v2238_v60, %v6195_v59  ;;  %v2274_v28 = vadd.f32 %v2242_v25, %v6197_v30  ;;  %v2278_v53 = vadd.f32 %v2246_v10, %v6199_v33  ;;  %v6209_v60 = vmax.f32 %v6208_v36, 0.0 }
 0x286   :  { %v2282_v24 = vadd.f32 %v2250_v12, %v6201_v23  ;;  %v2286_v41 = vadd.f32 %v2254_v32, %v6203_v6  ;;  %v2290_v20 = vadd.f32 %v2258_v21, %v6205_v38  ;;  %v2294_v4 = vadd.f32 %v2262_v18, %v6207_v7  ;;  %v6212_v6 = vld [vmem:[#allocation30_spill] sm:$0xff]  ;;  %v6214_v38 = vld [vmem:[#allocation160_spill] sm:$0xff] }
 0x287   :  { %v2298_v59 = vadd.f32 %v2266_v2, %v6209_v60  ;;  %v2302_v3 = vmul.f32 0.5, %v2270_v54  ;;  %v2306_v30 = vmul.f32 0.5, %v2274_v28  ;;  %v2310_v25 = vmul.f32 0.5, %v2278_v53  ;;  %v6210_v53 = vld [vmem:[#allocation29_spill] sm:$0xff]  ;;  %v6216_v7 = vld [vmem:[#allocation116_spill] sm:$0xff] }
 0x288   :  { %v2314_v40 = vmul.f32 0.5, %v2282_v24  ;;  %v2318_v33 = vmul.f32 0.5, %v2286_v41  ;;  %v2322_v10 = vmul.f32 0.5, %v2290_v20  ;;  %v2326_v55 = vmul.f32 0.5, %v2294_v4 }
 0x289   :  { %v2330_v23 = vmul.f32 0.5, %v2298_v59  ;;  %2334 = vst.msk [vmem:[%s5462_s4] sm:$0xff] %vm627_vm0, %v2302_v3  ;;  %v2079_v12 = vadd.f32 %v2047_v35, %v5079_v26  ;;  %v2083_v32 = vadd.f32 %v2051_v5, %v5082_v8  ;;  %v2087_v21 = vadd.f32 %v2055_v46, %v5085_v15  ;;  %v6218_v59 = vld [vmem:[#allocation117_spill] sm:$0xff] }
 0x28a   :  { %2338 = vst.msk [vmem:[%s5462_s4 + $0x20] sm:$0xff] %vm627_vm0, %v2306_v30  ;;  %v2091_v18 = vadd.f32 %v2059_v9, %v5088_v47  ;;  %v2207_v4 = vmul.f32 %v5102_v17, %v2063_v19  ;;  %v2211_v26 = vmul.f32 %v5104_v34, %v2067_v39  ;;  %v2215_v35 = vmul.f32 %v5106_v61, %v2071_v62 }
 0x28b   :  { %2342 = vst.msk [vmem:[%s5462_s4 + $0x40] sm:$0xff] %vm627_vm0, %v2310_v25  ;;  %v2219_v2 = vmul.f32 %v5108_v31, %v2075_v57  ;;  %v2223_v54 = vmul.f32 %v5110_v16, %v2079_v12  ;;  %v2227_v8 = vmul.f32 %v5112_v27, %v2083_v32  ;;  %v2231_v15 = vmul.f32 %v5114_v58, %v2087_v21  ;;  %v319_v25 = vpop.f32.mrf.mxu0  ;;  %v6222_v12 = vld [vmem:[#allocation119_spill] sm:$0xff] }
 0x28c   :  { %2346 = vst.msk [vmem:[%s5462_s4 + $0x60] sm:$0xff] %vm627_vm0, %v2314_v40  ;;  %v2235_v47 = vmul.f32 %v5116_v29, %v2091_v18  ;;  %v2239_v5 = vmax.f32 %v2207_v4, 0.0  ;;  %v2243_v46 = vmax.f32 %v2211_v26, 0.0  ;;  %v2247_v9 = vmax.f32 %v2215_v35, 0.0  ;;  %v528_v40 = vpop.f32.mrf.mxu1  ;;  %v6224_v18 = vld [vmem:[#allocation120_spill] sm:$0xff] }
 0x28d   :  { %2350 = vst.msk [vmem:[%s5462_s4 + $0x80] sm:$0xff] %vm627_vm0, %v2318_v33  ;;  %v2251_v19 = vmax.f32 %v2219_v2, 0.0  ;;  %v2255_v39 = vmax.f32 %v2223_v54, 0.0  ;;  %v2259_v62 = vmax.f32 %v2227_v8, 0.0  ;;  %v2263_v57 = vmax.f32 %v2231_v15, 0.0  ;;  %v6220_v33 = vld [vmem:[#allocation118_spill] sm:$0xff]  ;;  %v412_v2 = vpop.f32.mrf.mxu2  ;;  %v621_v54 = vpop.f32.mrf.mxu3 }
 0x28e   :  { %2354 = vst.msk [vmem:[%s5462_s4 + $0xa0] sm:$0xff] %vm627_vm0, %v2322_v10  ;;  %v2267_v28 = vmax.f32 %v2235_v47, 0.0  ;;  %v6211_v24 = vmax.f32 %v6210_v53, 0.0  ;;  %v6213_v41 = vmax.f32 %v6212_v6, 0.0  ;;  %v6215_v20 = vmax.f32 %v6214_v38, 0.0 }
 0x28f   :  { %2358 = vst.msk [vmem:[%s5462_s4 + $0xc0] sm:$0xff] %vm627_vm0, %v2326_v55  ;;  %v6217_v36 = vmax.f32 %v6216_v7, 0.0  ;;  %v6219_v3 = vmax.f32 %v6218_v59, 0.0  ;;  %v6221_v10 = vmax.f32 %v6220_v33, 0.0  ;;  %v6223_v32 = vmax.f32 %v6222_v12, 0.0  ;;  %v6235_v59 = vld [vmem:[#allocation97_spill] sm:$0xff] }
 0x290   :  { %v2271_v43 = vadd.f32 %v2239_v5, %v6211_v24  ;;  %v2275_v63 = vadd.f32 %v2243_v46, %v6213_v41  ;;  %v2279_v22 = vadd.f32 %v2247_v9, %v6215_v20  ;;  %2362 = vst.msk [vmem:[%s5462_s4 + $0xe0] sm:$0xff] %vm627_vm0, %v2330_v23  ;;  %v6225_v4 = vmax.f32 %v6224_v18, 0.0  ;;  %v6228_v24 = vld [vmem:[#allocation162_spill] sm:$0xff] }
 0x291   :  { %v2283_v60 = vadd.f32 %v2251_v19, %v6217_v36  ;;  %v2287_v30 = vadd.f32 %v2255_v39, %v6219_v3  ;;  %v2291_v55 = vadd.f32 %v2259_v62, %v6221_v10  ;;  %v2295_v21 = vadd.f32 %v2263_v57, %v6223_v32  ;;  %v6226_v62 = vld [vmem:[#allocation99_spill] sm:$0xff]  ;;  %v6232_v36 = vld [vmem:[#allocation94_spill] sm:$0xff]  ;;  %v6238_v10 = vld [vmem:[#allocation109_spill] sm:$0xff] }
 0x292   :  { %v2299_v26 = vadd.f32 %v2267_v28, %v6225_v4  ;;  %v2303_v35 = vmul.f32 0.5, %v2271_v43  ;;  %v2307_v8 = vmul.f32 0.5, %v2275_v63  ;;  %v2311_v15 = vmul.f32 0.5, %v2279_v22  ;;  %v6227_v28 = vld [vmem:[#allocation161_spill] sm:$0xff]  ;;  %v6239_v12 = vld [vmem:[#allocation110_spill] sm:$0xff]  ;;  %v6241_v4 = vld [vmem:[#allocation112_spill] sm:$0xff] }
 0x293   :  { %v2315_v47 = vmul.f32 0.5, %v2283_v60  ;;  %v2319_v5 = vmul.f32 0.5, %v2287_v30  ;;  %v2323_v46 = vmul.f32 0.5, %v2291_v55  ;;  %v2327_v9 = vmul.f32 0.5, %v2295_v21  ;;  %v6231_v22 = vld [vmem:[#allocation93_spill] sm:$0xff]  ;;  %v6236_v30 = vld [vmem:[#allocation98_spill] sm:$0xff] }
 0x294   :  { %v2331_v19 = vmul.f32 0.5, %v2299_v26  ;;  %2335 = vst.msk [vmem:[%s5462_s4 + $0x8] sm:$0xff] %vm627_vm0, %v2303_v35  ;;  %v529_v23 = vadd.f32 %v528_v40, %v319_v25  ;;  %v622_v39 = vadd.f32 %v621_v54, %v412_v2  ;;  %v1712_v57 = vadd.f32 %v6226_v62, %v5035_v11  ;;  %v6237_v40 = vld [vmem:[#allocation108_spill] sm:$0xff]  ;;  %v6240_v21 = vld [vmem:[#allocation111_spill] sm:$0xff]  ;;  %v6242_v35 = vld [vmem:[#allocation113_spill] sm:$0xff] }
 0x295   :  { %2339 = vst.msk [vmem:[%s5462_s4 + $0x28] sm:$0xff] %vm627_vm0, %v2307_v8  ;;  %v1716_v53 = vadd.f32 %v6227_v28, %v5038_v49  ;;  %v1720_v43 = vadd.f32 %v6228_v24, %v5041_v51  ;;  %v6243_v54 = vld [vmem:[#allocation114_spill] sm:$0xff] }
 0x296   :  { %2343 = vst.msk [vmem:[%s5462_s4 + $0x48] sm:$0xff] %vm627_vm0, %v2311_v15  ;;  %v1329_v6 = vmul.f32 %v4742_v45, %v529_v23  ;;  %v1333_v41 = vmul.f32 %v4744_v42, %v529_v23  ;;  %v1337_v63 = vmul.f32 %v4746_v37, %v529_v23  ;;  %v1341_v38 = vmul.f32 %v4748_v1, %v529_v23  ;;  %v6229_v45 = vld [vmem:[#allocation92_spill] sm:$0xff]  ;;  %v6230_v37 = vld [vmem:[#allocation231_spill] sm:$0xff]  ;;  %v6248_v28 = vld [vmem:[#allocation166_spill] sm:$0xff] }
 0x297   :  { %2347 = vst.msk [vmem:[%s5462_s4 + $0x68] sm:$0xff] %vm627_vm0, %v2315_v47  ;;  %v1345_v11 = vmul.f32 %v4750_v14, %v529_v23  ;;  %v1349_v49 = vmul.f32 %v4752_v44, %v529_v23  ;;  %v1353_v51 = vmul.f32 %v4754_v52, %v529_v23  ;;  %v1357_v20 = vmul.f32 %v4756_v48, %v529_v23  ;;  %v6233_v52 = vld [vmem:[#allocation95_spill] sm:$0xff]  ;;  %v6234_v44 = vld [vmem:[#allocation96_spill] sm:$0xff] }
 0x298   :  { %2351 = vst.msk [vmem:[%s5462_s4 + $0x88] sm:$0xff] %vm627_vm0, %v2319_v5  ;;  %v1361_v42 = vadd.f32 %v1329_v6, %v6229_v45  ;;  %v1365_v1 = vadd.f32 %v1333_v41, %v6230_v37  ;;  %v1369_v7 = vadd.f32 %v1337_v63, %v6231_v22  ;;  %v1373_v60 = vadd.f32 %v1341_v38, %v6232_v36  ;;  %v6244_v15 = vld [vmem:[#allocation115_spill] sm:$0xff]  ;;  %v6251_v38 = vld [vmem:[#allocation232_spill] sm:$0xff]  ;;  %v6258_v36 = vld [vmem:[#allocation10_spill] sm:$0xff] }
 0x299   :  { %2355 = vst.msk [vmem:[%s5462_s4 + $0xa8] sm:$0xff] %vm627_vm0, %v2323_v46  ;;  %v1377_v48 = vadd.f32 %v1345_v11, %v6233_v52  ;;  %v1381_v14 = vadd.f32 %v1349_v49, %v6234_v44  ;;  %v1385_v3 = vadd.f32 %v1353_v51, %v6235_v59  ;;  %v1389_v25 = vadd.f32 %v1357_v20, %v6236_v30  ;;  %v6245_v5 = vld [vmem:[#allocation163_spill] sm:$0xff]  ;;  %v6252_v49 = vld [vmem:[#allocation233_spill] sm:$0xff]  ;;  %v6253_v20 = vld [vmem:[#allocation234_spill] sm:$0xff] }
 0x29a   :  { %2359 = vst.msk [vmem:[%s5462_s4 + $0xc8] sm:$0xff] %vm627_vm0, %v2327_v9  ;;  %v5261_v33 = vadd.f32 %v6237_v40, %v1361_v42  ;;  %v5264_v55 = vadd.f32 %v6238_v10, %v1365_v1  ;;  %v5267_v32 = vadd.f32 %v6239_v12, %v1369_v7  ;;  %v5270_v18 = vadd.f32 %v6240_v21, %v1373_v60  ;;  %v6246_v9 = vld [vmem:[#allocation164_spill] sm:$0xff]  ;;  %v6249_v6 = vld [vmem:[#allocation43_spill] sm:$0xff]  ;;  %v6257_v7 = vld [vmem:[#allocation9_spill] sm:$0xff] }
 0x29b   :  { %2363 = vst.msk [vmem:[%s5462_s4 + $0xe8] sm:$0xff] %vm627_vm0, %v2331_v19  ;;  %v5277_v26 = vadd.f32 %v6241_v4, %v1377_v48  ;;  %v5280_v2 = vadd.f32 %v6242_v35, %v1381_v14  ;;  %v5283_v8 = vadd.f32 %v6243_v54, %v1385_v3  ;;  %v5286_v47 = vadd.f32 %v6244_v15, %v1389_v25  ;;  %v6247_v19 = vld [vmem:[#allocation165_spill] sm:$0xff]  ;;  %v6250_v41 = vld [vmem:[#allocation167_spill] sm:$0xff]  ;;  %v6255_v37 = vld [vmem:[#allocation236_spill] sm:$0xff] }
 0x29c   :  { %v1724_v46 = vadd.f32 %v6245_v5, %v5044_v13  ;;  %v1728_v23 = vadd.f32 %v6246_v9, %v5047_v50  ;;  %v1732_v62 = vadd.f32 %v6247_v19, %v5050_v56  ;;  %v1736_v24 = vadd.f32 %v6248_v28, %v5053_v0  ;;  %v6254_v42 = vld [vmem:[#allocation235_spill] sm:$0xff]  ;;  %v6256_v50 = vld [vmem:[#allocation8_spill] sm:$0xff]  ;;  %v6259_v0 = vld [vmem:[#allocation17_spill] sm:$0xff] }
 0x29d   :  { %v1740_v63 = vadd.f32 %v6250_v41, %v6249_v6  ;;  %v1888_v11 = vadd.f32 %v6251_v38, %v1712_v57  ;;  %v1892_v51 = vadd.f32 %v6252_v49, %v1716_v53  ;;  %v1896_v45 = vadd.f32 %v6253_v20, %v1720_v43  ;;  %v6260_v48 = vld [vmem:[#allocation18_spill] sm:$0xff]  ;;  %v6261_v14 = vld [vmem:[#allocation19_spill] sm:$0xff]  ;;  %v6262_v59 = vld [vmem:[#allocation20_spill] sm:$0xff] }
 0x29e   :  { %v1900_v13 = vadd.f32 %v6254_v42, %v1724_v46  ;;  %v1904_v1 = vadd.f32 %v6255_v37, %v1728_v23  ;;  %v1908_v22 = vadd.f32 %v6256_v50, %v1732_v62  ;;  %v1912_v56 = vadd.f32 %v6257_v7, %v1736_v24  ;;  %v6263_v3 = vld [vmem:[#allocation39_spill] sm:$0xff]  ;;  %v6264_v30 = vld [vmem:[#allocation40_spill] sm:$0xff]  ;;  %v6265_v40 = vld [vmem:[#allocation41_spill] sm:$0xff] }
 0x29f   :  { %v1916_v60 = vadd.f32 %v6258_v36, %v1740_v63  ;;  %v2032_v52 = vmul.f32 %v6259_v0, %v622_v39  ;;  %v2036_v44 = vmul.f32 %v6260_v48, %v622_v39  ;;  %v2040_v57 = vmul.f32 %v6261_v14, %v622_v39  ;;  %v6266_v12 = vld [vmem:[#allocation42_spill] sm:$0xff]  ;;  %v6267_v37 = vld [vmem:[#allocation121_spill] sm:$0xff]  ;;  %v6271_v36 = vld [vmem:[#allocation123_spill] sm:$0xff] }
 0x2a0   :  { %v2044_v53 = vmul.f32 %v6262_v59, %v622_v39  ;;  %v2048_v43 = vmul.f32 %v6263_v3, %v622_v39  ;;  %v2052_v25 = vmul.f32 %v6264_v30, %v622_v39  ;;  %v2056_v10 = vmul.f32 %v6265_v40, %v622_v39 }
 0x2a1   :  { %v2060_v21 = vmul.f32 %v6266_v12, %v622_v39  ;;  %v2064_v4 = vadd.f32 %v2032_v52, %v1888_v11  ;;  %v2068_v35 = vadd.f32 %v2036_v44, %v1892_v51  ;;  %v2072_v54 = vadd.f32 %v2040_v57, %v1896_v45  ;;  %v6273_v44 = vld [vmem:[#allocation177_spill] sm:$0xff] }
 0x2a2   :  { %v2076_v15 = vadd.f32 %v2044_v53, %v1900_v13  ;;  %v2080_v5 = vadd.f32 %v2048_v43, %v1904_v1  ;;  %v2084_v46 = vadd.f32 %v2052_v25, %v1908_v22  ;;  %v2088_v9 = vadd.f32 %v2056_v10, %v1912_v56  ;;  %v6269_v22 = vld [vmem:[#allocation122_spill] sm:$0xff] }
 0x2a3   :  { %v2092_v23 = vadd.f32 %v2060_v21, %v1916_v60  ;;  %v2208_v19 = vmul.f32 %v5102_v17, %v2064_v4  ;;  %v2212_v62 = vmul.f32 %v5104_v34, %v2068_v35  ;;  %v2216_v28 = vmul.f32 %v5106_v61, %v2072_v54  ;;  %v6275_v43 = vld [vmem:[#allocation178_spill] sm:$0xff]  ;;  %v6277_v21 = vld [vmem:[#allocation179_spill] sm:$0xff]  ;;  %v6279_v54 = vld [vmem:[#allocation180_spill] sm:$0xff] }
 0x2a4   :  { %v2220_v24 = vmul.f32 %v5108_v31, %v2076_v15  ;;  %v2224_v6 = vmul.f32 %v5110_v16, %v2080_v5  ;;  %v2228_v39 = vmul.f32 %v5112_v27, %v2084_v46  ;;  %v2232_v41 = vmul.f32 %v5114_v58, %v2088_v9  ;;  %v415_v46 = vpop.f32.mrf.mxu2  ;;  %v624_v9 = vpop.f32.mrf.mxu3 }
 0x2a5   :  { %v2236_v63 = vmul.f32 %v5116_v29, %v2092_v23  ;;  %v2240_v38 = vmax.f32 %v2208_v19, 0.0  ;;  %v2244_v11 = vmax.f32 %v2212_v62, 0.0  ;;  %v2248_v49 = vmax.f32 %v2216_v28, 0.0  ;;  %v6281_v23 = vld [vmem:[#allocation181_spill] sm:$0xff] }
 0x2a6   :  { %v2252_v51 = vmax.f32 %v2220_v24, 0.0  ;;  %v2256_v20 = vmax.f32 %v2224_v6, 0.0  ;;  %v2260_v45 = vmax.f32 %v2228_v39, 0.0  ;;  %v2264_v42 = vmax.f32 %v2232_v41, 0.0 }
 0x2a7   :  { %v2268_v13 = vmax.f32 %v2236_v63, 0.0  ;;  %v6268_v1 = vmax.f32 %v6267_v37, 0.0  ;;  %v6270_v7 = vmax.f32 %v6269_v22, 0.0  ;;  %v6272_v60 = vmax.f32 %v6271_v36, 0.0  ;;  %v6287_v22 = vld [vmem:[#allocation172_spill] sm:$0xff] }
 0x2a8   :  { %v6274_v57 = vmax.f32 %v6273_v44, 0.0  ;;  %v6276_v25 = vmax.f32 %v6275_v43, 0.0  ;;  %v6278_v4 = vmax.f32 %v6277_v21, 0.0  ;;  %v6280_v15 = vmax.f32 %v6279_v54, 0.0  ;;  %v6296_v21 = vld [vmem:[#allocation52_spill] sm:$0xff] }
 0x2a9   :  { %v2272_v50 = vadd.f32 %v2240_v38, %v6268_v1  ;;  %v2276_v56 = vadd.f32 %v2244_v11, %v6270_v7  ;;  %v2280_v52 = vadd.f32 %v2248_v49, %v6272_v60  ;;  %v6282_v19 = vmax.f32 %v6281_v23, 0.0  ;;  %v6286_v1 = vld [vmem:[#allocation171_spill] sm:$0xff]  ;;  %v6290_v60 = vld [vmem:[#allocation176_spill] sm:$0xff] }
 0x2aa   :  { %v2284_v53 = vadd.f32 %v2252_v51, %v6274_v57  ;;  %v2288_v10 = vadd.f32 %v2256_v20, %v6276_v25  ;;  %v2292_v35 = vadd.f32 %v2260_v45, %v6278_v4  ;;  %v2296_v5 = vadd.f32 %v2264_v42, %v6280_v15  ;;  %v6283_v51 = vld [vmem:[#allocation168_spill] sm:$0xff]  ;;  %v6284_v45 = vld [vmem:[#allocation169_spill] sm:$0xff]  ;;  %v6295_v25 = vld [vmem:[#allocation15_spill] sm:$0xff] }
 0x2ab   :  { %v2300_v62 = vadd.f32 %v2268_v13, %v6282_v19  ;;  %v2304_v28 = vmul.f32 0.5, %v2272_v50  ;;  %v2308_v24 = vmul.f32 0.5, %v2276_v56  ;;  %v2312_v6 = vmul.f32 0.5, %v2280_v52  ;;  %v6285_v13 = vld [vmem:[#allocation170_spill] sm:$0xff]  ;;  %v6291_v52 = vld [vmem:[#allocation11_spill] sm:$0xff] }
 0x2ac   :  { %v2316_v39 = vmul.f32 0.5, %v2284_v53  ;;  %v2320_v41 = vmul.f32 0.5, %v2288_v10  ;;  %v2324_v63 = vmul.f32 0.5, %v2292_v35  ;;  %v2328_v38 = vmul.f32 0.5, %v2296_v5  ;;  %v6288_v56 = vld [vmem:[#allocation174_spill] sm:$0xff]  ;;  %v6298_v35 = vld [vmem:[#allocation5_spill] sm:$0xff] }
 0x2ad   :  { %v2332_v11 = vmul.f32 0.5, %v2300_v62  ;;  %2336 = vst.msk [vmem:[%s5462_s4 + $0x10] sm:$0xff] %vm627_vm0, %v2304_v28  ;;  %v625_v49 = vadd.f32 %v624_v9, %v415_v46  ;;  %v1713_v20 = vadd.f32 %v6283_v51, %v5261_v33  ;;  %v1717_v42 = vadd.f32 %v6284_v45, %v5264_v55  ;;  %v6289_v55 = vld [vmem:[#allocation175_spill] sm:$0xff]  ;;  %v6294_v53 = vld [vmem:[#allocation14_spill] sm:$0xff] }
 0x2ae   :  { %2340 = vst.msk [vmem:[%s5462_s4 + $0x30] sm:$0xff] %vm627_vm0, %v2308_v24  ;;  %v1721_v37 = vadd.f32 %v6285_v13, %v5267_v32  ;;  %v1725_v50 = vadd.f32 %v6286_v1, %v5270_v18  ;;  %v1729_v7 = vadd.f32 %v6287_v22, %v5277_v26  ;;  %v1733_v33 = vadd.f32 %v6288_v56, %v5280_v2  ;;  %v6292_v18 = vld [vmem:[#allocation12_spill] sm:$0xff]  ;;  %v6293_v26 = vld [vmem:[#allocation13_spill] sm:$0xff]  ;;  %v6299_v1 = vld [vmem:[#allocation182_spill] sm:$0xff] }
 0x2af   :  { %2344 = vst.msk [vmem:[%s5462_s4 + $0x50] sm:$0xff] %vm627_vm0, %v2312_v6  ;;  %v1737_v36 = vadd.f32 %v6289_v55, %v5283_v8  ;;  %v1741_v32 = vadd.f32 %v6290_v60, %v5286_v47  ;;  %v1889_v44 = vadd.f32 %v6291_v52, %v1713_v20  ;;  %v1893_v57 = vadd.f32 %v6292_v18, %v1717_v42  ;;  %v6297_v47 = vld [vmem:[#allocation173_spill] sm:$0xff]  ;;  %v6311_v18 = vld [vmem:[#allocation127_spill] sm:$0xff] }
 0x2b0   :  { %2348 = vst.msk [vmem:[%s5462_s4 + $0x70] sm:$0xff] %vm627_vm0, %v2316_v39  ;;  %v1897_v2 = vadd.f32 %v6293_v26, %v1721_v37  ;;  %v1901_v43 = vadd.f32 %v6294_v53, %v1725_v50  ;;  %v1905_v10 = vadd.f32 %v6295_v25, %v1729_v7  ;;  %v1909_v8 = vadd.f32 %v6296_v21, %v1733_v33  ;;  %v6303_v7 = vld [vmem:[#allocation184_spill] sm:$0xff]  ;;  %v6307_v55 = vld [vmem:[#allocation125_spill] sm:$0xff] }
 0x2b1   :  { %2352 = vst.msk [vmem:[%s5462_s4 + $0x90] sm:$0xff] %vm627_vm0, %v2320_v41  ;;  %v1913_v4 = vadd.f32 %v6297_v47, %v1737_v36  ;;  %v1917_v54 = vadd.f32 %v6298_v35, %v1741_v32  ;;  %v2033_v15 = vmul.f32 %v6259_v0, %v625_v49  ;;  %v2037_v5 = vmul.f32 %v6260_v48, %v625_v49  ;;  %v6309_v32 = vld [vmem:[#allocation126_spill] sm:$0xff] }
 0x2b2   :  { %2356 = vst.msk [vmem:[%s5462_s4 + $0xb0] sm:$0xff] %vm627_vm0, %v2324_v63  ;;  %v2041_v46 = vmul.f32 %v6261_v14, %v625_v49  ;;  %v2045_v9 = vmul.f32 %v6262_v59, %v625_v49  ;;  %v2049_v23 = vmul.f32 %v6263_v3, %v625_v49  ;;  %v2053_v19 = vmul.f32 %v6264_v30, %v625_v49 }
 0x2b3   :  { %2360 = vst.msk [vmem:[%s5462_s4 + $0xd0] sm:$0xff] %vm627_vm0, %v2328_v38  ;;  %v2057_v0 = vmul.f32 %v6265_v40, %v625_v49  ;;  %v2061_v48 = vmul.f32 %v6266_v12, %v625_v49  ;;  %v2065_v62 = vadd.f32 %v2033_v15, %v1889_v44  ;;  %v2069_v28 = vadd.f32 %v2037_v5, %v1893_v57 }
 0x2b4   :  { %2364 = vst.msk [vmem:[%s5462_s4 + $0xf0] sm:$0xff] %vm627_vm0, %v2332_v11  ;;  %v2073_v14 = vadd.f32 %v2041_v46, %v1897_v2  ;;  %v2077_v59 = vadd.f32 %v2045_v9, %v1901_v43  ;;  %v2081_v3 = vadd.f32 %v2049_v23, %v1905_v10  ;;  %v2085_v30 = vadd.f32 %v2053_v19, %v1909_v8  ;;  %v6313_v2 = vld [vmem:[#allocation16_spill] sm:$0xff] }
 0x2b5   :  { %v2089_v24 = vadd.f32 %v2057_v0, %v1913_v4  ;;  %v2093_v6 = vadd.f32 %v2061_v48, %v1917_v54  ;;  %v2209_v39 = vmul.f32 %v5102_v17, %v2065_v62  ;;  %v2213_v41 = vmul.f32 %v5104_v34, %v2069_v28 }
 0x2b6   :  { %v2217_v40 = vmul.f32 %v5106_v61, %v2073_v14  ;;  %v2221_v12 = vmul.f32 %v5108_v31, %v2077_v59  ;;  %v2225_v63 = vmul.f32 %v5110_v16, %v2081_v3  ;;  %v2229_v38 = vmul.f32 %v5112_v27, %v2085_v30  ;;  %v6301_v31 = vld [vmem:[#allocation183_spill] sm:$0xff] }
 0x2b7   :  { %v2233_v11 = vmul.f32 %v5114_v58, %v2089_v24  ;;  %v2237_v49 = vmul.f32 %v5116_v29, %v2093_v6  ;;  %v2241_v51 = vmax.f32 %v2209_v39, 0.0  ;;  %v2245_v20 = vmax.f32 %v2213_v41, 0.0  ;;  %v6305_v58 = vld [vmem:[#allocation124_spill] sm:$0xff] }
 0x2b8   :  { %v2249_v45 = vmax.f32 %v2217_v40, 0.0  ;;  %v2253_v42 = vmax.f32 %v2221_v12, 0.0  ;;  %v2257_v13 = vmax.f32 %v2225_v63, 0.0  ;;  %v2261_v17 = vmax.f32 %v2229_v38, 0.0 }
 0x2b9   :  { %v2265_v37 = vmax.f32 %v2233_v11, 0.0  ;;  %v2269_v34 = vmax.f32 %v2237_v49, 0.0  ;;  %v6300_v61 = vmax.f32 %v6299_v1, 0.0  ;;  %v6302_v22 = vmax.f32 %v6301_v31, 0.0 }
 0x2ba   :  { %v6304_v27 = vmax.f32 %v6303_v7, 0.0  ;;  %v6306_v33 = vmax.f32 %v6305_v58, 0.0  ;;  %v6308_v36 = vmax.f32 %v6307_v55, 0.0  ;;  %v6310_v52 = vmax.f32 %v6309_v32, 0.0 }
 0x2bb   :  { %v2273_v50 = vadd.f32 %v2241_v51, %v6300_v61  ;;  %v2277_v16 = vadd.f32 %v2245_v20, %v6302_v22  ;;  %v6312_v57 = vmax.f32 %v6311_v18, 0.0  ;;  %v6314_v53 = vmax.f32 %v6313_v2, 0.0 }
 0x2bc   :  { %v2281_v56 = vadd.f32 %v2249_v45, %v6304_v27  ;;  %v2285_v29 = vadd.f32 %v2253_v42, %v6306_v33  ;;  %v2289_v60 = vadd.f32 %v2257_v13, %v6308_v36  ;;  %v2293_v44 = vadd.f32 %v2261_v17, %v6310_v52 }
 0x2bd   :  { %v2297_v26 = vadd.f32 %v2265_v37, %v6312_v57  ;;  %v2301_v43 = vadd.f32 %v2269_v34, %v6314_v53  ;;  %v2305_v25 = vmul.f32 0.5, %v2273_v50  ;;  %v2309_v10 = vmul.f32 0.5, %v2277_v16 }
 0x2be   :  { %v2313_v21 = vmul.f32 0.5, %v2281_v56  ;;  %v2317_v8 = vmul.f32 0.5, %v2285_v29  ;;  %v2321_v47 = vmul.f32 0.5, %v2289_v60  ;;  %v2325_v4 = vmul.f32 0.5, %v2293_v44 }
 0x2bf   :  { %2337 = vst.msk [vmem:[%s5462_s4 + $0x18] sm:$0xff] %vm627_vm0, %v2305_v25  ;;  %v2329_v35 = vmul.f32 0.5, %v2297_v26  ;;  %v2333_v54 = vmul.f32 0.5, %v2301_v43 }
 0x2c0   :  { %2341 = vst.msk [vmem:[%s5462_s4 + $0x38] sm:$0xff] %vm627_vm0, %v2309_v10 }
 0x2c1   :  { %2345 = vst.msk [vmem:[%s5462_s4 + $0x58] sm:$0xff] %vm627_vm0, %v2313_v21 }
 0x2c2   :  { %2349 = vst.msk [vmem:[%s5462_s4 + $0x78] sm:$0xff] %vm627_vm0, %v2317_v8 }
 0x2c3   :  { %2353 = vst.msk [vmem:[%s5462_s4 + $0x98] sm:$0xff] %vm627_vm0, %v2321_v47 }
 0x2c4   :  { %2357 = vst.msk [vmem:[%s5462_s4 + $0xb8] sm:$0xff] %vm627_vm0, %v2325_v4 }
 0x2c5   :  { %2361 = vst.msk [vmem:[%s5462_s4 + $0xd8] sm:$0xff] %vm627_vm0, %v2329_v35 }
 0x2c6   :  { %2365 = vst.msk [vmem:[%s5462_s4 + $0xf8] sm:$0xff] %vm627_vm0, %v2333_v54 }
 0x2c7   :  { %2370 = vsyncpa [#allocation3], 1 }

</bundles_post_ra>
